<compile_context>
chip_gen: v6e
topology: v6e:2x2x1
jax: 0.10.0
libtpu: 0.0.40
codegen_flags: <defaults>
</compile_context>

<pallas_src>
import functools

import jax
import jax.numpy as jnp
from jax.experimental import pallas as pl
from jax.experimental.pallas import tpu as pltpu

FILTER_SIZE = 512                 # AffineCoupling default filter_size
TM_MXU = 512                      # row-tile cap for the GEMM-heavy coupling net
TM_MEM = 4096                     # row-tile cap for the memory-bound kernels
_VMEM_LIMIT = 48 * 1024 * 1024    # raise v5e's scoped default explicitly


def _cparams():
    return pltpu.CompilerParams(
        dimension_semantics=("parallel",),   # shard N across v7x's 2 TCs
        vmem_limit_bytes=_VMEM_LIMIT)


def _row_spec(tm, cols):
    return pl.BlockSpec((tm, cols), lambda i: (i, 0))


def _full_spec(shape):
    # weights / biases: one full-extent block, constant index -> VMEM resident
    return pl.BlockSpec(shape, lambda i: (0,) * len(shape))


def _round_up(x, m):
    return ((x + m - 1) // m) * m


def _row_tile(n, cap):
    """Row tile: <= cap, 8-aligned, and guaranteeing >=2 grid steps when
    possible (so 'parallel' can use both v7x TensorCores and the pipeline
    always has at least one prefetch in flight)."""
    if n <= 8:
        return n
    nblk = max(2, pl.cdiv(n, cap))
    tm = _round_up(pl.cdiv(n, nblk), 8)
    return min(tm, n)


# ----------------------------- Pallas kernels -----------------------------

def actnorm_invconv_kernel(x_ref, w_ref, b_ref, o_ref):
    # ActNorm folded into the invertible 1x1 conv: z = x @ Wf + bf
    acc = jnp.dot(x_ref[...], w_ref[...], preferred_element_type=jnp.float32)
    o_ref[...] = (acc + b_ref[...]).astype(o_ref.dtype)


def coupling_net_kernel(p_ref, w1_ref, b1_ref, w2_ref, b2_ref, w3_ref,
                        qb_ref, q_ref):
    # 3x3 conv as a single K=round_up(9*half,128) matmul, + bias + ReLU
    h1 = jnp.dot(p_ref[...], w1_ref[...], preferred_element_type=jnp.float32)
    h1 = jnp.maximum(h1 + b1_ref[...], 0.0).astype(jnp.bfloat16)
    # 1x1 conv + bias + ReLU (fused: h1 never touches HBM)
    h2 = jnp.dot(h1, w2_ref[...], preferred_element_type=jnp.float32)
    h2 = jnp.maximum(h2 + b2_ref[...], 0.0).astype(jnp.bfloat16)
    # ZeroConv2d matmul part: per-pixel tap partials (spatial shift+sum done
    # in plain JAX); qb subtracts the ones-pad response so zero-filled
    # out-of-range taps reproduce the ones padding exactly.
    q = jnp.dot(h2, w3_ref[...], preferred_element_type=jnp.float32)
    q_ref[...] = (q + qb_ref[...]).astype(q_ref.dtype)


def combine_kernel(net_ref, z_ref, b3_ref, o_ref, *, half):
    # Affine-coupling combine on the already-summed ZeroConv output.
    net = net_ref[...] + b3_ref[...]              # (TM, C) f32
    z = z_ref[...].astype(jnp.float32)            # (TM, C)
    in_a = z[:, :half]
    in_b = z[:, half:]
    log_s = net[:, :half]
    t = net[:, half:]
    out_b = (in_b + t) * jax.nn.sigmoid(log_s + 2.0)
    o_ref[...] = jnp.concatenate([in_a, out_b], axis=-1).astype(o_ref.dtype)


# ----------------------------- kernel wrappers -----------------------------

def actnorm_invconv(xf, wf, bf):
    n, c = xf.shape
    tm = _row_tile(n, TM_MEM)
    return pl.pallas_call(
        actnorm_invconv_kernel,
        out_shape=jax.ShapeDtypeStruct((n, c), jnp.bfloat16),
        grid=(pl.cdiv(n, tm),),
        in_specs=[_row_spec(tm, c), _full_spec(wf.shape), _full_spec(bf.shape)],
        out_specs=_row_spec(tm, c),
        compiler_params=_cparams(),
    )(xf, wf, bf)


def coupling_net(patches, w1, b1, w2, b2, w3, qb):
    n, k_in = patches.shape
    c9 = w3.shape[1]
    tm = _row_tile(n, TM_MXU)
    return pl.pallas_call(
        coupling_net_kernel,
        out_shape=jax.ShapeDtypeStruct((n, c9), jnp.bfloat16),
        grid=(pl.cdiv(n, tm),),
        in_specs=[_row_spec(tm, k_in),
                  _full_spec(w1.shape), _full_spec(b1.shape),
                  _full_spec(w2.shape), _full_spec(b2.shape),
                  _full_spec(w3.shape), _full_spec(qb.shape)],
        out_specs=_row_spec(tm, c9),
        compiler_params=_cparams(),
    )(patches, w1, b1, w2, b2, w3, qb)


def combine(net, z, b3p, half):
    n, c = z.shape
    tm = _row_tile(n, TM_MEM)
    return pl.pallas_call(
        functools.partial(combine_kernel, half=half),
        out_shape=jax.ShapeDtypeStruct((n, c), jnp.bfloat16),
        grid=(pl.cdiv(n, tm),),
        in_specs=[_row_spec(tm, c), _row_spec(tm, c), _full_spec(b3p.shape)],
        out_specs=_row_spec(tm, c),
        compiler_params=_cparams(),
    )(net, z, b3p)


# ----------------------------- glue (plain JAX) -----------------------------

_TAPS = [(kh, kw) for kh in range(3) for kw in range(3)]


def im2col_3x3(x_nhwc, k_pad):
    """(B,H,W,C) -> lane-contiguous (B*H*W, k_pad) patches (zero pad=1).
    k_pad >= 9*C is the lane-padded K for the first GEMM (mult of 128)."""
    b, h, w, c = x_nhwc.shape
    xp = jnp.pad(x_nhwc, ((0, 0), (1, 1), (1, 1), (0, 0)))
    cols = [xp[:, kh:kh + h, kw:kw + w, :] for kh, kw in _TAPS]
    p = jnp.concatenate(cols, axis=-1).reshape(b * h * w, 9 * c)
    if k_pad > 9 * c:
        p = jnp.pad(p, ((0, 0), (0, k_pad - 9 * c)))
    return p


def gather_taps_sum(q, b, h, w, c):
    """Shift per-tap partials to their destination pixels (zero fill outside;
    the ZeroConv ones-pad constant is folded into qb/b3p at param setup) and
    sum the 9 taps in f32.  XLA fuses pad+slice+add into one pass over q, so
    the (N, 9C) intermediate never hits HBM again after the kernel store."""
    q5 = q.reshape(b, h, w, 9, c).astype(jnp.float32)
    qp = jnp.pad(q5, ((0, 0), (1, 1), (1, 1), (0, 0), (0, 0)))
    net = None
    for k, (kh, kw) in enumerate(_TAPS):
        s = qp[:, kh:kh + h, kw:kw + w, k, :]
        net = s if net is None else net + s
    return net.reshape(b * h * w, c)


def flow_forward(x, p):
    """One Flow: ActNorm -> InvConv2dLU -> AffineCoupling. x is (B,H,W,C) bf16."""
    b, h, w, c = x.shape
    half = c // 2
    n = b * h * w

    # ActNorm + invertible 1x1 conv (folded), tiled over N.
    z = actnorm_invconv(x.reshape(n, c), p["wf"], p["bf"])          # (N, C)

    # Coupling net: conv3x3+ReLU -> conv1x1+ReLU -> ZeroConv matmul, fused.
    in_a = z.reshape(b, h, w, c)[..., :half]
    patches = im2col_3x3(in_a, p["w1"].shape[0])
    q = coupling_net(patches, p["w1"], p["b1"],
                     p["w2"], p["b2"], p["w3"], p["qb"])            # (N, 9*C)

    # Spatial finish of the 3x3 ZeroConv (tap sum, in f32, fused by XLA)
    # then the affine-coupling combine in a Pallas kernel.
    net = gather_taps_sum(q, b, h, w, c)                            # (N, C) f32
    out = combine(net, z, p["b3p"], half)                           # (N, C)
    return out.reshape(b, h, w, c)


def block_forward(x_nchw, flow_params):
    # squeeze: (B, C, H, W) -> (B, 4C, H/2, W/2), exact PyTorch permutation.
    b, c, h, w = x_nchw.shape
    sq = x_nchw.reshape(b, c, h // 2, 2, w // 2, 2)
    sq = sq.transpose(0, 1, 3, 5, 2, 4).reshape(b, c * 4, h // 2, w // 2)
    x = sq.transpose(0, 2, 3, 1)  # NCHW -> channels-last for the kernels
    for p in flow_params:
        x = flow_forward(x, p)
    return x.transpose(0, 3, 1, 2)  # back to NCHW


def glow_forward(x_nchw, params):
    """Glow._forward_set: apply every Block in order."""
    z = x_nchw.astype(jnp.bfloat16)   # bf16 MXU operands; f32 accumulation
    for flow_params in params:
        z = block_forward(z, flow_params)
    return z.astype(jnp.float32)


# ----------------------------- parameter setup -----------------------------

def init_flow_params(key, c, filter_size=FILTER_SIZE):
    ks = jax.random.split(key, 8)
    half = c // 2
    f32 = jnp.float32
    bf16 = jnp.bfloat16

    # TODO(synk): ActNorm's data-dependent first-batch initialization is
    # stateful; loc/scale are fixed deterministic parameters here.
    loc = 0.1 * jax.random.normal(ks[0], (1, c), f32)
    scale = 1.0 + 0.1 * jax.random.normal(ks[1], (1, c), f32)
    # TODO(synk): InvConv2dLU stores an LU parametrization (and a logdet);
    # forward math is a 1x1 conv with an invertible matrix, so a random
    # rotation is used here.
    q_mat, _ = jnp.linalg.qr(jax.random.normal(ks[2], (c, c), f32))
    w_t = q_mat.T                                  # out = y @ W.T (1x1 conv)
    # Fold ActNorm into the inv-conv: ((x+loc)*scale) @ W.T = x @ Wf + bf
    wf = scale.reshape(c, 1) * w_t
    bf = (loc * scale) @ w_t                       # (1, C)

    # Coupling net, matching the module's init scale of normal(0, 0.05), zero bias.
    w1 = 0.05 * jax.random.normal(ks[3], (3, 3, half, filter_size), f32)
    w1_flat = w1.reshape(9 * half, filter_size)
    k_pad = _round_up(9 * half, 128)               # lane-dense K for GEMM #1
    w1_flat = jnp.pad(w1_flat, ((0, k_pad - 9 * half), (0, 0)))
    b1 = jnp.zeros((1, filter_size), f32)
    w2 = 0.05 * jax.random.normal(ks[4], (filter_size, filter_size), f32)
    b2 = jnp.zeros((1, filter_size), f32)
    # ZeroConv2d: true init is all-zero (degenerate output); use small
    # deterministic values so the tested path is numerically non-trivial.
    w3 = 0.01 * jax.random.normal(ks[5], (3, 3, filter_size, c), f32)
    b3 = 0.01 * jax.random.normal(ks[6], (1, c), f32)
    zscale = 0.01 * jax.random.normal(ks[7], (1, c), f32)
    mult = jnp.exp(zscale * 3.0)                   # ZeroConv2d output multiplier
    w3 = w3 * mult                                 # fold exp(scale*3) into w/b
    b3 = b3 * mult

    # Tap-shift bookkeeping: ZeroConv pads its input with ones (F.pad value=1).
    # onesum[kh,kw,:] = ones(F) @ w3[kh,kw] is the contribution of a padded
    # tap; subtract it from every tap partial (qb) and add it back once per
    # pixel (b3p) so zero-filled shifted taps reproduce the ones padding.
    onesum = w3.sum(axis=2)                        # (3, 3, C)
    qbias = -onesum.reshape(1, 9 * c)
    b3p = b3 + onesum.sum(axis=(0, 1)).reshape(1, c)

    return {
        "wf": wf.astype(bf16), "bf": bf,
        "w1": w1_flat.astype(bf16), "b1": b1,
        "w2": w2.astype(bf16), "b2": b2,
        "w3": w3.transpose(2, 0, 1, 3).reshape(filter_size, 9 * c).astype(bf16),
        "qb": qbias, "b3p": b3p,
    }


def init_glow_params(key, in_channel, n_flow, n_block, filter_size=FILTER_SIZE):
    params = []
    c = in_channel
    for _ in range(n_block):
        key, sub = jax.random.split(key)
        sq = c * 4  # squeeze_dim
        flow_keys = jax.random.split(sub, n_flow)
        params.append([init_flow_params(k, sq, filter_size) for k in flow_keys])
        c = sq
    return params


# ----------------------------- main -----------------------------

if __name__ == "__main__":
    key = jax.random.PRNGKey(0)
    k_x, k_p = jax.random.split(key)

    B, C, H, W = 2, 4, 16, 16
    n_flow, n_block = 2, 2

    x = jax.random.normal(k_x, (B, C, H, W), jnp.float32)   # NCHW, like torch
    params = init_glow_params(k_p, C, n_flow, n_block)

    out = jax.jit(glow_forward)(x, params)
    out = jax.block_until_ready(out)

    expected = (B, C * (4 ** n_block), H // (2 ** n_block), W // (2 ** n_block))
    assert out.shape == expected, (out.shape, expected)
    assert bool(jnp.all(jnp.isfinite(out)))
    print("KERNEL_OK")
</pallas_src>

<mosaic_0001>
module attributes {stable_mosaic.version = 11 : i64} {
  func.func @actnorm_invconv_kernel(%arg0: i32, %arg1: memref<64x16xbf16, #tpu.memory_space<vmem>>, %arg2: memref<16x16xbf16, #tpu.memory_space<vmem>>, %arg3: memref<1x16xf32, #tpu.memory_space<vmem>>, %arg4: memref<64x16xbf16, #tpu.memory_space<vmem>>) attributes {dimension_semantics = [#tpu.dimension_semantics<parallel>], iteration_bounds = array<i64: 2>, scalar_prefetch = 0 : i64, scratch_operands = 0 : i64, tpu.core_type = #tpu.core_type<tc>, window_params = [{transform_indices = @transform_0, window_bounds = array<i64: 64, 16>}, {pipeline_mode = #tpu.pipeline_mode<synchronous>, transform_indices = @transform_1, window_bounds = array<i64: 16, 16>}, {pipeline_mode = #tpu.pipeline_mode<synchronous>, transform_indices = @transform_2, window_bounds = array<i64: 1, 16>}, {transform_indices = @transform_3, window_bounds = array<i64: 64, 16>}]} {
    %c0 = arith.constant 0 : index
    %c0_0 = arith.constant 0 : index
    %0 = vector.load %arg1[%c0, %c0_0] : memref<64x16xbf16, #tpu.memory_space<vmem>>, vector<64x16xbf16>
    %c0_1 = arith.constant 0 : index
    %c0_2 = arith.constant 0 : index
    %1 = vector.load %arg2[%c0_1, %c0_2] : memref<16x16xbf16, #tpu.memory_space<vmem>>, vector<16x16xbf16>
    %cst = arith.constant dense<0.000000e+00> : vector<64x16xf32>
    %2 = tpu.matmul %0, %1, %cst {dimension_numbers = #tpu.dot_dimension_numbers<[1], [0], [0], [1], [0, 0, 1, 1], [], []>} : vector<64x16xbf16>, vector<16x16xbf16>, vector<64x16xf32> -> vector<64x16xf32>
    %c0_3 = arith.constant 0 : index
    %c0_4 = arith.constant 0 : index
    %3 = vector.load %arg3[%c0_3, %c0_4] : memref<1x16xf32, #tpu.memory_space<vmem>>, vector<1x16xf32>
    %4 = vector.broadcast %3 : vector<1x16xf32> to vector<64x16xf32>
    %5 = arith.addf %2, %4 : vector<64x16xf32>
    %6 = arith.truncf %5 : vector<64x16xf32> to vector<64x16xbf16>
    %c0_5 = arith.constant 0 : index
    %c0_6 = arith.constant 0 : index
    %7 = vector.load %arg4[%c0_5, %c0_6] : memref<64x16xbf16, #tpu.memory_space<vmem>>, vector<64x16xbf16>
    tpu.vector_store %arg4[%c0_5, %c0_6], %6 {strides = array<i32>} : memref<64x16xbf16, #tpu.memory_space<vmem>>, vector<64x16xbf16>,
    return
  }
  func.func @transform_0(%arg0: i32) -> (i32, i32) {
    %c0_i32 = arith.constant 0 : i32
    %c0_i32_0 = arith.constant 0 : i32
    return %arg0, %c0_i32 : i32, i32
  }
  func.func @transform_1(%arg0: i32) -> (i32, i32) {
    %c0_i32 = arith.constant 0 : i32
    %c0_i32_0 = arith.constant 0 : i32
    %c0_i32_1 = arith.constant 0 : i32
    return %c0_i32, %c0_i32_0 : i32, i32
  }
  func.func @transform_2(%arg0: i32) -> (i32, i32) {
    %c0_i32 = arith.constant 0 : i32
    %c0_i32_0 = arith.constant 0 : i32
    %c0_i32_1 = arith.constant 0 : i32
    return %c0_i32, %c0_i32_0 : i32, i32
  }
  func.func @transform_3(%arg0: i32) -> (i32, i32) {
    %c0_i32 = arith.constant 0 : i32
    %c0_i32_0 = arith.constant 0 : i32
    return %arg0, %c0_i32 : i32, i32
  }
}

module attributes {stable_mosaic.version = 11 : i64} {
  func.func @coupling_net_kernel(%arg0: i32, %arg1: memref<64x128xbf16, #tpu.memory_space<vmem>>, %arg2: memref<128x512xbf16, #tpu.memory_space<vmem>>, %arg3: memref<1x512xf32, #tpu.memory_space<vmem>>, %arg4: memref<512x512xbf16, #tpu.memory_space<vmem>>, %arg5: memref<1x512xf32, #tpu.memory_space<vmem>>, %arg6: memref<512x144xbf16, #tpu.memory_space<vmem>>, %arg7: memref<1x144xf32, #tpu.memory_space<vmem>>, %arg8: memref<64x144xbf16, #tpu.memory_space<vmem>>) attributes {dimension_semantics = [#tpu.dimension_semantics<parallel>], iteration_bounds = array<i64: 2>, scalar_prefetch = 0 : i64, scratch_operands = 0 : i64, tpu.core_type = #tpu.core_type<tc>, window_params = [{transform_indices = @transform_0, window_bounds = array<i64: 64, 128>}, {pipeline_mode = #tpu.pipeline_mode<synchronous>, transform_indices = @transform_1, window_bounds = array<i64: 128, 512>}, {pipeline_mode = #tpu.pipeline_mode<synchronous>, transform_indices = @transform_2, window_bounds = array<i64: 1, 512>}, {pipeline_mode = #tpu.pipeline_mode<synchronous>, transform_indices = @transform_3, window_bounds = array<i64: 512, 512>}, {pipeline_mode = #tpu.pipeline_mode<synchronous>, transform_indices = @transform_4, window_bounds = array<i64: 1, 512>}, {pipeline_mode = #tpu.pipeline_mode<synchronous>, transform_indices = @transform_5, window_bounds = array<i64: 512, 144>}, {pipeline_mode = #tpu.pipeline_mode<synchronous>, transform_indices = @transform_6, window_bounds = array<i64: 1, 144>}, {transform_indices = @transform_7, window_bounds = array<i64: 64, 144>}]} {
    %c0 = arith.constant 0 : index
    %c0_0 = arith.constant 0 : index
    %0 = vector.load %arg1[%c0, %c0_0] : memref<64x128xbf16, #tpu.memory_space<vmem>>, vector<64x128xbf16>
    %c0_1 = arith.constant 0 : index
    %c0_2 = arith.constant 0 : index
    %1 = vector.load %arg2[%c0_1, %c0_2] : memref<128x512xbf16, #tpu.memory_space<vmem>>, vector<128x512xbf16>
    %cst = arith.constant dense<0.000000e+00> : vector<64x512xf32>
    %2 = tpu.matmul %0, %1, %cst {dimension_numbers = #tpu.dot_dimension_numbers<[1], [0], [0], [1], [0, 0, 1, 1], [], []>} : vector<64x128xbf16>, vector<128x512xbf16>, vector<64x512xf32> -> vector<64x512xf32>
    %c0_3 = arith.constant 0 : index
    %c0_4 = arith.constant 0 : index
    %3 = vector.load %arg3[%c0_3, %c0_4] : memref<1x512xf32, #tpu.memory_space<vmem>>, vector<1x512xf32>
    %4 = vector.broadcast %3 : vector<1x512xf32> to vector<64x512xf32>
    %5 = arith.addf %2, %4 : vector<64x512xf32>
    %cst_5 = arith.constant 0.000000e+00 : f32
    %6 = vector.broadcast %cst_5 : f32 to vector<64x512xf32>
    %7 = arith.maximumf %5, %6 : vector<64x512xf32>
    %8 = arith.truncf %7 : vector<64x512xf32> to vector<64x512xbf16>
    %c0_6 = arith.constant 0 : index
    %c0_7 = arith.constant 0 : index
    %9 = vector.load %arg4[%c0_6, %c0_7] : memref<512x512xbf16, #tpu.memory_space<vmem>>, vector<512x512xbf16>
    %cst_8 = arith.constant dense<0.000000e+00> : vector<64x512xf32>
    %10 = tpu.matmul %8, %9, %cst_8 {dimension_numbers = #tpu.dot_dimension_numbers<[1], [0], [0], [1], [0, 0, 1, 1], [], []>} : vector<64x512xbf16>, vector<512x512xbf16>, vector<64x512xf32> -> vector<64x512xf32>
    %c0_9 = arith.constant 0 : index
    %c0_10 = arith.constant 0 : index
    %11 = vector.load %arg5[%c0_9, %c0_10] : memref<1x512xf32, #tpu.memory_space<vmem>>, vector<1x512xf32>
    %12 = vector.broadcast %11 : vector<1x512xf32> to vector<64x512xf32>
    %13 = arith.addf %10, %12 : vector<64x512xf32>
    %cst_11 = arith.constant 0.000000e+00 : f32
    %14 = vector.broadcast %cst_11 : f32 to vector<64x512xf32>
    %15 = arith.maximumf %13, %14 : vector<64x512xf32>
    %16 = arith.truncf %15 : vector<64x512xf32> to vector<64x512xbf16>
    %c0_12 = arith.constant 0 : index
    %c0_13 = arith.constant 0 : index
    %17 = vector.load %arg6[%c0_12, %c0_13] : memref<512x144xbf16, #tpu.memory_space<vmem>>, vector<512x144xbf16>
    %cst_14 = arith.constant dense<0.000000e+00> : vector<64x144xf32>
    %18 = tpu.matmul %16, %17, %cst_14 {dimension_numbers = #tpu.dot_dimension_numbers<[1], [0], [0], [1], [0, 0, 1, 1], [], []>} : vector<64x512xbf16>, vector<512x144xbf16>, vector<64x144xf32> -> vector<64x144xf32>
    %c0_15 = arith.constant 0 : index
    %c0_16 = arith.constant 0 : index
    %19 = vector.load %arg7[%c0_15, %c0_16] : memref<1x144xf32, #tpu.memory_space<vmem>>, vector<1x144xf32>
    %20 = vector.broadcast %19 : vector<1x144xf32> to vector<64x144xf32>
    %21 = arith.addf %18, %20 : vector<64x144xf32>
    %22 = arith.truncf %21 : vector<64x144xf32> to vector<64x144xbf16>
    %c0_17 = arith.constant 0 : index
    %c0_18 = arith.constant 0 : index
    %23 = vector.load %arg8[%c0_17, %c0_18] : memref<64x144xbf16, #tpu.memory_space<vmem>>, vector<64x144xbf16>
    tpu.vector_store %arg8[%c0_17, %c0_18], %22 {strides = array<i32>} : memref<64x144xbf16, #tpu.memory_space<vmem>>, vector<64x144xbf16>,
    return
  }
  func.func @transform_0(%arg0: i32) -> (i32, i32) {
    %c0_i32 = arith.constant 0 : i32
    %c0_i32_0 = arith.constant 0 : i32
    return %arg0, %c0_i32 : i32, i32
  }
  func.func @transform_1(%arg0: i32) -> (i32, i32) {
    %c0_i32 = arith.constant 0 : i32
    %c0_i32_0 = arith.constant 0 : i32
    %c0_i32_1 = arith.constant 0 : i32
    return %c0_i32, %c0_i32_0 : i32, i32
  }
  func.func @transform_2(%arg0: i32) -> (i32, i32) {
    %c0_i32 = arith.constant 0 : i32
    %c0_i32_0 = arith.constant 0 : i32
    %c0_i32_1 = arith.constant 0 : i32
    return %c0_i32, %c0_i32_0 : i32, i32
  }
  func.func @transform_3(%arg0: i32) -> (i32, i32) {
    %c0_i32 = arith.constant 0 : i32
    %c0_i32_0 = arith.constant 0 : i32
    %c0_i32_1 = arith.constant 0 : i32
    return %c0_i32, %c0_i32_0 : i32, i32
  }
  func.func @transform_4(%arg0: i32) -> (i32, i32) {
    %c0_i32 = arith.constant 0 : i32
    %c0_i32_0 = arith.constant 0 : i32
    %c0_i32_1 = arith.constant 0 : i32
    return %c0_i32, %c0_i32_0 : i32, i32
  }
  func.func @transform_5(%arg0: i32) -> (i32, i32) {
    %c0_i32 = arith.constant 0 : i32
    %c0_i32_0 = arith.constant 0 : i32
    %c0_i32_1 = arith.constant 0 : i32
    return %c0_i32, %c0_i32_0 : i32, i32
  }
  func.func @transform_6(%arg0: i32) -> (i32, i32) {
    %c0_i32 = arith.constant 0 : i32
    %c0_i32_0 = arith.constant 0 : i32
    %c0_i32_1 = arith.constant 0 : i32
    return %c0_i32, %c0_i32_0 : i32, i32
  }
  func.func @transform_7(%arg0: i32) -> (i32, i32) {
    %c0_i32 = arith.constant 0 : i32
    %c0_i32_0 = arith.constant 0 : i32
    return %arg0, %c0_i32 : i32, i32
  }
}

module attributes {stable_mosaic.version = 11 : i64} {
  func.func @combine_kernel(%arg0: i32, %arg1: memref<64x16xf32, #tpu.memory_space<vmem>>, %arg2: memref<64x16xbf16, #tpu.memory_space<vmem>>, %arg3: memref<1x16xf32, #tpu.memory_space<vmem>>, %arg4: memref<64x16xbf16, #tpu.memory_space<vmem>>) attributes {dimension_semantics = [#tpu.dimension_semantics<parallel>], iteration_bounds = array<i64: 2>, scalar_prefetch = 0 : i64, scratch_operands = 0 : i64, tpu.core_type = #tpu.core_type<tc>, window_params = [{transform_indices = @transform_0, window_bounds = array<i64: 64, 16>}, {transform_indices = @transform_1, window_bounds = array<i64: 64, 16>}, {pipeline_mode = #tpu.pipeline_mode<synchronous>, transform_indices = @transform_2, window_bounds = array<i64: 1, 16>}, {transform_indices = @transform_3, window_bounds = array<i64: 64, 16>}]} {
    %c0 = arith.constant 0 : index
    %c0_0 = arith.constant 0 : index
    %0 = vector.load %arg1[%c0, %c0_0] : memref<64x16xf32, #tpu.memory_space<vmem>>, vector<64x16xf32>
    %c0_1 = arith.constant 0 : index
    %c0_2 = arith.constant 0 : index
    %1 = vector.load %arg3[%c0_1, %c0_2] : memref<1x16xf32, #tpu.memory_space<vmem>>, vector<1x16xf32>
    %2 = vector.broadcast %1 : vector<1x16xf32> to vector<64x16xf32>
    %3 = arith.addf %0, %2 : vector<64x16xf32>
    %c0_3 = arith.constant 0 : index
    %c0_4 = arith.constant 0 : index
    %4 = vector.load %arg2[%c0_3, %c0_4] : memref<64x16xbf16, #tpu.memory_space<vmem>>, vector<64x16xbf16>
    %5 = arith.extf %4 : vector<64x16xbf16> to vector<64x16xf32>
    %6 = vector.extract_strided_slice %5 {offsets = [0, 0], sizes = [64, 8], strides = [1, 1]} : vector<64x16xf32> to vector<64x8xf32>
    %7 = vector.extract_strided_slice %5 {offsets = [0, 8], sizes = [64, 8], strides = [1, 1]} : vector<64x16xf32> to vector<64x8xf32>
    %8 = vector.extract_strided_slice %3 {offsets = [0, 0], sizes = [64, 8], strides = [1, 1]} : vector<64x16xf32> to vector<64x8xf32>
    %9 = vector.extract_strided_slice %3 {offsets = [0, 8], sizes = [64, 8], strides = [1, 1]} : vector<64x16xf32> to vector<64x8xf32>
    %10 = arith.addf %7, %9 : vector<64x8xf32>
    %cst = arith.constant 2.000000e+00 : f32
    %11 = vector.broadcast %cst : f32 to vector<64x8xf32>
    %12 = arith.addf %8, %11 : vector<64x8xf32>
    %13 = arith.negf %12 : vector<64x8xf32>
    %14 = math.exp %13 : vector<64x8xf32>
    %cst_5 = arith.constant 1.000000e+00 : f32
    %15 = vector.broadcast %cst_5 : f32 to vector<64x8xf32>
    %16 = arith.addf %15, %14 : vector<64x8xf32>
    %17 = arith.divf %15, %16 : vector<64x8xf32>
    %18 = arith.mulf %10, %17 : vector<64x8xf32>
    %19 = tpu.concatenate %6, %18 in 1 : vector<64x8xf32>, vector<64x8xf32> -> vector<64x16xf32>
    %20 = arith.truncf %19 : vector<64x16xf32> to vector<64x16xbf16>
    %c0_6 = arith.constant 0 : index
    %c0_7 = arith.constant 0 : index
    %21 = vector.load %arg4[%c0_6, %c0_7] : memref<64x16xbf16, #tpu.memory_space<vmem>>, vector<64x16xbf16>
    tpu.vector_store %arg4[%c0_6, %c0_7], %20 {strides = array<i32>} : memref<64x16xbf16, #tpu.memory_space<vmem>>, vector<64x16xbf16>,
    return
  }
  func.func @transform_0(%arg0: i32) -> (i32, i32) {
    %c0_i32 = arith.constant 0 : i32
    %c0_i32_0 = arith.constant 0 : i32
    return %arg0, %c0_i32 : i32, i32
  }
  func.func @transform_1(%arg0: i32) -> (i32, i32) {
    %c0_i32 = arith.constant 0 : i32
    %c0_i32_0 = arith.constant 0 : i32
    return %arg0, %c0_i32 : i32, i32
  }
  func.func @transform_2(%arg0: i32) -> (i32, i32) {
    %c0_i32 = arith.constant 0 : i32
    %c0_i32_0 = arith.constant 0 : i32
    %c0_i32_1 = arith.constant 0 : i32
    return %c0_i32, %c0_i32_0 : i32, i32
  }
  func.func @transform_3(%arg0: i32) -> (i32, i32) {
    %c0_i32 = arith.constant 0 : i32
    %c0_i32_0 = arith.constant 0 : i32
    return %arg0, %c0_i32 : i32, i32
  }
}

module attributes {stable_mosaic.version = 11 : i64} {
  func.func @actnorm_invconv_kernel(%arg0: i32, %arg1: memref<64x16xbf16, #tpu.memory_space<vmem>>, %arg2: memref<16x16xbf16, #tpu.memory_space<vmem>>, %arg3: memref<1x16xf32, #tpu.memory_space<vmem>>, %arg4: memref<64x16xbf16, #tpu.memory_space<vmem>>) attributes {dimension_semantics = [#tpu.dimension_semantics<parallel>], iteration_bounds = array<i64: 2>, scalar_prefetch = 0 : i64, scratch_operands = 0 : i64, tpu.core_type = #tpu.core_type<tc>, window_params = [{transform_indices = @transform_0, window_bounds = array<i64: 64, 16>}, {pipeline_mode = #tpu.pipeline_mode<synchronous>, transform_indices = @transform_1, window_bounds = array<i64: 16, 16>}, {pipeline_mode = #tpu.pipeline_mode<synchronous>, transform_indices = @transform_2, window_bounds = array<i64: 1, 16>}, {transform_indices = @transform_3, window_bounds = array<i64: 64, 16>}]} {
    %c0 = arith.constant 0 : index
    %c0_0 = arith.constant 0 : index
    %0 = vector.load %arg1[%c0, %c0_0] : memref<64x16xbf16, #tpu.memory_space<vmem>>, vector<64x16xbf16>
    %c0_1 = arith.constant 0 : index
    %c0_2 = arith.constant 0 : index
    %1 = vector.load %arg2[%c0_1, %c0_2] : memref<16x16xbf16, #tpu.memory_space<vmem>>, vector<16x16xbf16>
    %cst = arith.constant dense<0.000000e+00> : vector<64x16xf32>
    %2 = tpu.matmul %0, %1, %cst {dimension_numbers = #tpu.dot_dimension_numbers<[1], [0], [0], [1], [0, 0, 1, 1], [], []>} : vector<64x16xbf16>, vector<16x16xbf16>, vector<64x16xf32> -> vector<64x16xf32>
    %c0_3 = arith.constant 0 : index
    %c0_4 = arith.constant 0 : index
    %3 = vector.load %arg3[%c0_3, %c0_4] : memref<1x16xf32, #tpu.memory_space<vmem>>, vector<1x16xf32>
    %4 = vector.broadcast %3 : vector<1x16xf32> to vector<64x16xf32>
    %5 = arith.addf %2, %4 : vector<64x16xf32>
    %6 = arith.truncf %5 : vector<64x16xf32> to vector<64x16xbf16>
    %c0_5 = arith.constant 0 : index
    %c0_6 = arith.constant 0 : index
    %7 = vector.load %arg4[%c0_5, %c0_6] : memref<64x16xbf16, #tpu.memory_space<vmem>>, vector<64x16xbf16>
    tpu.vector_store %arg4[%c0_5, %c0_6], %6 {strides = array<i32>} : memref<64x16xbf16, #tpu.memory_space<vmem>>, vector<64x16xbf16>,
    return
  }
  func.func @transform_0(%arg0: i32) -> (i32, i32) {
    %c0_i32 = arith.constant 0 : i32
    %c0_i32_0 = arith.constant 0 : i32
    return %arg0, %c0_i32 : i32, i32
  }
  func.func @transform_1(%arg0: i32) -> (i32, i32) {
    %c0_i32 = arith.constant 0 : i32
    %c0_i32_0 = arith.constant 0 : i32
    %c0_i32_1 = arith.constant 0 : i32
    return %c0_i32, %c0_i32_0 : i32, i32
  }
  func.func @transform_2(%arg0: i32) -> (i32, i32) {
    %c0_i32 = arith.constant 0 : i32
    %c0_i32_0 = arith.constant 0 : i32
    %c0_i32_1 = arith.constant 0 : i32
    return %c0_i32, %c0_i32_0 : i32, i32
  }
  func.func @transform_3(%arg0: i32) -> (i32, i32) {
    %c0_i32 = arith.constant 0 : i32
    %c0_i32_0 = arith.constant 0 : i32
    return %arg0, %c0_i32 : i32, i32
  }
}

module attributes {stable_mosaic.version = 11 : i64} {
  func.func @actnorm_invconv_kernel(%arg0: i32, %arg1: memref<16x64xbf16, #tpu.memory_space<vmem>>, %arg2: memref<64x64xbf16, #tpu.memory_space<vmem>>, %arg3: memref<1x64xf32, #tpu.memory_space<vmem>>, %arg4: memref<16x64xbf16, #tpu.memory_space<vmem>>) attributes {dimension_semantics = [#tpu.dimension_semantics<parallel>], iteration_bounds = array<i64: 2>, scalar_prefetch = 0 : i64, scratch_operands = 0 : i64, tpu.core_type = #tpu.core_type<tc>, window_params = [{transform_indices = @transform_0, window_bounds = array<i64: 16, 64>}, {pipeline_mode = #tpu.pipeline_mode<synchronous>, transform_indices = @transform_1, window_bounds = array<i64: 64, 64>}, {pipeline_mode = #tpu.pipeline_mode<synchronous>, transform_indices = @transform_2, window_bounds = array<i64: 1, 64>}, {transform_indices = @transform_3, window_bounds = array<i64: 16, 64>}]} {
    %c0 = arith.constant 0 : index
    %c0_0 = arith.constant 0 : index
    %0 = vector.load %arg1[%c0, %c0_0] : memref<16x64xbf16, #tpu.memory_space<vmem>>, vector<16x64xbf16>
    %c0_1 = arith.constant 0 : index
    %c0_2 = arith.constant 0 : index
    %1 = vector.load %arg2[%c0_1, %c0_2] : memref<64x64xbf16, #tpu.memory_space<vmem>>, vector<64x64xbf16>
    %cst = arith.constant dense<0.000000e+00> : vector<16x64xf32>
    %2 = tpu.matmul %0, %1, %cst {dimension_numbers = #tpu.dot_dimension_numbers<[1], [0], [0], [1], [0, 0, 1, 1], [], []>} : vector<16x64xbf16>, vector<64x64xbf16>, vector<16x64xf32> -> vector<16x64xf32>
    %c0_3 = arith.constant 0 : index
    %c0_4 = arith.constant 0 : index
    %3 = vector.load %arg3[%c0_3, %c0_4] : memref<1x64xf32, #tpu.memory_space<vmem>>, vector<1x64xf32>
    %4 = vector.broadcast %3 : vector<1x64xf32> to vector<16x64xf32>
    %5 = arith.addf %2, %4 : vector<16x64xf32>
    %6 = arith.truncf %5 : vector<16x64xf32> to vector<16x64xbf16>
    %c0_5 = arith.constant 0 : index
    %c0_6 = arith.constant 0 : index
    %7 = vector.load %arg4[%c0_5, %c0_6] : memref<16x64xbf16, #tpu.memory_space<vmem>>, vector<16x64xbf16>
    tpu.vector_store %arg4[%c0_5, %c0_6], %6 {strides = array<i32>} : memref<16x64xbf16, #tpu.memory_space<vmem>>, vector<16x64xbf16>,
    return
  }
  func.func @transform_0(%arg0: i32) -> (i32, i32) {
    %c0_i32 = arith.constant 0 : i32
    %c0_i32_0 = arith.constant 0 : i32
    return %arg0, %c0_i32 : i32, i32
  }
  func.func @transform_1(%arg0: i32) -> (i32, i32) {
    %c0_i32 = arith.constant 0 : i32
    %c0_i32_0 = arith.constant 0 : i32
    %c0_i32_1 = arith.constant 0 : i32
    return %c0_i32, %c0_i32_0 : i32, i32
  }
  func.func @transform_2(%arg0: i32) -> (i32, i32) {
    %c0_i32 = arith.constant 0 : i32
    %c0_i32_0 = arith.constant 0 : i32
    %c0_i32_1 = arith.constant 0 : i32
    return %c0_i32, %c0_i32_0 : i32, i32
  }
  func.func @transform_3(%arg0: i32) -> (i32, i32) {
    %c0_i32 = arith.constant 0 : i32
    %c0_i32_0 = arith.constant 0 : i32
    return %arg0, %c0_i32 : i32, i32
  }
}

module attributes {stable_mosaic.version = 11 : i64} {
  func.func @coupling_net_kernel(%arg0: i32, %arg1: memref<16x384xbf16, #tpu.memory_space<vmem>>, %arg2: memref<384x512xbf16, #tpu.memory_space<vmem>>, %arg3: memref<1x512xf32, #tpu.memory_space<vmem>>, %arg4: memref<512x512xbf16, #tpu.memory_space<vmem>>, %arg5: memref<1x512xf32, #tpu.memory_space<vmem>>, %arg6: memref<512x576xbf16, #tpu.memory_space<vmem>>, %arg7: memref<1x576xf32, #tpu.memory_space<vmem>>, %arg8: memref<16x576xbf16, #tpu.memory_space<vmem>>) attributes {dimension_semantics = [#tpu.dimension_semantics<parallel>], iteration_bounds = array<i64: 2>, scalar_prefetch = 0 : i64, scratch_operands = 0 : i64, tpu.core_type = #tpu.core_type<tc>, window_params = [{transform_indices = @transform_0, window_bounds = array<i64: 16, 384>}, {pipeline_mode = #tpu.pipeline_mode<synchronous>, transform_indices = @transform_1, window_bounds = array<i64: 384, 512>}, {pipeline_mode = #tpu.pipeline_mode<synchronous>, transform_indices = @transform_2, window_bounds = array<i64: 1, 512>}, {pipeline_mode = #tpu.pipeline_mode<synchronous>, transform_indices = @transform_3, window_bounds = array<i64: 512, 512>}, {pipeline_mode = #tpu.pipeline_mode<synchronous>, transform_indices = @transform_4, window_bounds = array<i64: 1, 512>}, {pipeline_mode = #tpu.pipeline_mode<synchronous>, transform_indices = @transform_5, window_bounds = array<i64: 512, 576>}, {pipeline_mode = #tpu.pipeline_mode<synchronous>, transform_indices = @transform_6, window_bounds = array<i64: 1, 576>}, {transform_indices = @transform_7, window_bounds = array<i64: 16, 576>}]} {
    %c0 = arith.constant 0 : index
    %c0_0 = arith.constant 0 : index
    %0 = vector.load %arg1[%c0, %c0_0] : memref<16x384xbf16, #tpu.memory_space<vmem>>, vector<16x384xbf16>
    %c0_1 = arith.constant 0 : index
    %c0_2 = arith.constant 0 : index
    %1 = vector.load %arg2[%c0_1, %c0_2] : memref<384x512xbf16, #tpu.memory_space<vmem>>, vector<384x512xbf16>
    %cst = arith.constant dense<0.000000e+00> : vector<16x512xf32>
    %2 = tpu.matmul %0, %1, %cst {dimension_numbers = #tpu.dot_dimension_numbers<[1], [0], [0], [1], [0, 0, 1, 1], [], []>} : vector<16x384xbf16>, vector<384x512xbf16>, vector<16x512xf32> -> vector<16x512xf32>
    %c0_3 = arith.constant 0 : index
    %c0_4 = arith.constant 0 : index
    %3 = vector.load %arg3[%c0_3, %c0_4] : memref<1x512xf32, #tpu.memory_space<vmem>>, vector<1x512xf32>
    %4 = vector.broadcast %3 : vector<1x512xf32> to vector<16x512xf32>
    %5 = arith.addf %2, %4 : vector<16x512xf32>
    %cst_5 = arith.constant 0.000000e+00 : f32
    %6 = vector.broadcast %cst_5 : f32 to vector<16x512xf32>
    %7 = arith.maximumf %5, %6 : vector<16x512xf32>
    %8 = arith.truncf %7 : vector<16x512xf32> to vector<16x512xbf16>
    %c0_6 = arith.constant 0 : index
    %c0_7 = arith.constant 0 : index
    %9 = vector.load %arg4[%c0_6, %c0_7] : memref<512x512xbf16, #tpu.memory_space<vmem>>, vector<512x512xbf16>
    %cst_8 = arith.constant dense<0.000000e+00> : vector<16x512xf32>
    %10 = tpu.matmul %8, %9, %cst_8 {dimension_numbers = #tpu.dot_dimension_numbers<[1], [0], [0], [1], [0, 0, 1, 1], [], []>} : vector<16x512xbf16>, vector<512x512xbf16>, vector<16x512xf32> -> vector<16x512xf32>
    %c0_9 = arith.constant 0 : index
    %c0_10 = arith.constant 0 : index
    %11 = vector.load %arg5[%c0_9, %c0_10] : memref<1x512xf32, #tpu.memory_space<vmem>>, vector<1x512xf32>
    %12 = vector.broadcast %11 : vector<1x512xf32> to vector<16x512xf32>
    %13 = arith.addf %10, %12 : vector<16x512xf32>
    %cst_11 = arith.constant 0.000000e+00 : f32
    %14 = vector.broadcast %cst_11 : f32 to vector<16x512xf32>
    %15 = arith.maximumf %13, %14 : vector<16x512xf32>
    %16 = arith.truncf %15 : vector<16x512xf32> to vector<16x512xbf16>
    %c0_12 = arith.constant 0 : index
    %c0_13 = arith.constant 0 : index
    %17 = vector.load %arg6[%c0_12, %c0_13] : memref<512x576xbf16, #tpu.memory_space<vmem>>, vector<512x576xbf16>
    %cst_14 = arith.constant dense<0.000000e+00> : vector<16x576xf32>
    %18 = tpu.matmul %16, %17, %cst_14 {dimension_numbers = #tpu.dot_dimension_numbers<[1], [0], [0], [1], [0, 0, 1, 1], [], []>} : vector<16x512xbf16>, vector<512x576xbf16>, vector<16x576xf32> -> vector<16x576xf32>
    %c0_15 = arith.constant 0 : index
    %c0_16 = arith.constant 0 : index
    %19 = vector.load %arg7[%c0_15, %c0_16] : memref<1x576xf32, #tpu.memory_space<vmem>>, vector<1x576xf32>
    %20 = vector.broadcast %19 : vector<1x576xf32> to vector<16x576xf32>
    %21 = arith.addf %18, %20 : vector<16x576xf32>
    %22 = arith.truncf %21 : vector<16x576xf32> to vector<16x576xbf16>
    %c0_17 = arith.constant 0 : index
    %c0_18 = arith.constant 0 : index
    %23 = vector.load %arg8[%c0_17, %c0_18] : memref<16x576xbf16, #tpu.memory_space<vmem>>, vector<16x576xbf16>
    tpu.vector_store %arg8[%c0_17, %c0_18], %22 {strides = array<i32>} : memref<16x576xbf16, #tpu.memory_space<vmem>>, vector<16x576xbf16>,
    return
  }
  func.func @transform_0(%arg0: i32) -> (i32, i32) {
    %c0_i32 = arith.constant 0 : i32
    %c0_i32_0 = arith.constant 0 : i32
    return %arg0, %c0_i32 : i32, i32
  }
  func.func @transform_1(%arg0: i32) -> (i32, i32) {
    %c0_i32 = arith.constant 0 : i32
    %c0_i32_0 = arith.constant 0 : i32
    %c0_i32_1 = arith.constant 0 : i32
    return %c0_i32, %c0_i32_0 : i32, i32
  }
  func.func @transform_2(%arg0: i32) -> (i32, i32) {
    %c0_i32 = arith.constant 0 : i32
    %c0_i32_0 = arith.constant 0 : i32
    %c0_i32_1 = arith.constant 0 : i32
    return %c0_i32, %c0_i32_0 : i32, i32
  }
  func.func @transform_3(%arg0: i32) -> (i32, i32) {
    %c0_i32 = arith.constant 0 : i32
    %c0_i32_0 = arith.constant 0 : i32
    %c0_i32_1 = arith.constant 0 : i32
    return %c0_i32, %c0_i32_0 : i32, i32
  }
  func.func @transform_4(%arg0: i32) -> (i32, i32) {
    %c0_i32 = arith.constant 0 : i32
    %c0_i32_0 = arith.constant 0 : i32
    %c0_i32_1 = arith.constant 0 : i32
    return %c0_i32, %c0_i32_0 : i32, i32
  }
  func.func @transform_5(%arg0: i32) -> (i32, i32) {
    %c0_i32 = arith.constant 0 : i32
    %c0_i32_0 = arith.constant 0 : i32
    %c0_i32_1 = arith.constant 0 : i32
    return %c0_i32, %c0_i32_0 : i32, i32
  }
  func.func @transform_6(%arg0: i32) -> (i32, i32) {
    %c0_i32 = arith.constant 0 : i32
    %c0_i32_0 = arith.constant 0 : i32
    %c0_i32_1 = arith.constant 0 : i32
    return %c0_i32, %c0_i32_0 : i32, i32
  }
  func.func @transform_7(%arg0: i32) -> (i32, i32) {
    %c0_i32 = arith.constant 0 : i32
    %c0_i32_0 = arith.constant 0 : i32
    return %arg0, %c0_i32 : i32, i32
  }
}

module attributes {stable_mosaic.version = 11 : i64} {
  func.func @combine_kernel(%arg0: i32, %arg1: memref<16x64xf32, #tpu.memory_space<vmem>>, %arg2: memref<16x64xbf16, #tpu.memory_space<vmem>>, %arg3: memref<1x64xf32, #tpu.memory_space<vmem>>, %arg4: memref<16x64xbf16, #tpu.memory_space<vmem>>) attributes {dimension_semantics = [#tpu.dimension_semantics<parallel>], iteration_bounds = array<i64: 2>, scalar_prefetch = 0 : i64, scratch_operands = 0 : i64, tpu.core_type = #tpu.core_type<tc>, window_params = [{transform_indices = @transform_0, window_bounds = array<i64: 16, 64>}, {transform_indices = @transform_1, window_bounds = array<i64: 16, 64>}, {pipeline_mode = #tpu.pipeline_mode<synchronous>, transform_indices = @transform_2, window_bounds = array<i64: 1, 64>}, {transform_indices = @transform_3, window_bounds = array<i64: 16, 64>}]} {
    %c0 = arith.constant 0 : index
    %c0_0 = arith.constant 0 : index
    %0 = vector.load %arg1[%c0, %c0_0] : memref<16x64xf32, #tpu.memory_space<vmem>>, vector<16x64xf32>
    %c0_1 = arith.constant 0 : index
    %c0_2 = arith.constant 0 : index
    %1 = vector.load %arg3[%c0_1, %c0_2] : memref<1x64xf32, #tpu.memory_space<vmem>>, vector<1x64xf32>
    %2 = vector.broadcast %1 : vector<1x64xf32> to vector<16x64xf32>
    %3 = arith.addf %0, %2 : vector<16x64xf32>
    %c0_3 = arith.constant 0 : index
    %c0_4 = arith.constant 0 : index
    %4 = vector.load %arg2[%c0_3, %c0_4] : memref<16x64xbf16, #tpu.memory_space<vmem>>, vector<16x64xbf16>
    %5 = arith.extf %4 : vector<16x64xbf16> to vector<16x64xf32>
    %6 = vector.extract_strided_slice %5 {offsets = [0, 0], sizes = [16, 32], strides = [1, 1]} : vector<16x64xf32> to vector<16x32xf32>
    %7 = vector.extract_strided_slice %5 {offsets = [0, 32], sizes = [16, 32], strides = [1, 1]} : vector<16x64xf32> to vector<16x32xf32>
    %8 = vector.extract_strided_slice %3 {offsets = [0, 0], sizes = [16, 32], strides = [1, 1]} : vector<16x64xf32> to vector<16x32xf32>
    %9 = vector.extract_strided_slice %3 {offsets = [0, 32], sizes = [16, 32], strides = [1, 1]} : vector<16x64xf32> to vector<16x32xf32>
    %10 = arith.addf %7, %9 : vector<16x32xf32>
    %cst = arith.constant 2.000000e+00 : f32
    %11 = vector.broadcast %cst : f32 to vector<16x32xf32>
    %12 = arith.addf %8, %11 : vector<16x32xf32>
    %13 = arith.negf %12 : vector<16x32xf32>
    %14 = math.exp %13 : vector<16x32xf32>
    %cst_5 = arith.constant 1.000000e+00 : f32
    %15 = vector.broadcast %cst_5 : f32 to vector<16x32xf32>
    %16 = arith.addf %15, %14 : vector<16x32xf32>
    %17 = arith.divf %15, %16 : vector<16x32xf32>
    %18 = arith.mulf %10, %17 : vector<16x32xf32>
    %19 = tpu.concatenate %6, %18 in 1 : vector<16x32xf32>, vector<16x32xf32> -> vector<16x64xf32>
    %20 = arith.truncf %19 : vector<16x64xf32> to vector<16x64xbf16>
    %c0_6 = arith.constant 0 : index
    %c0_7 = arith.constant 0 : index
    %21 = vector.load %arg4[%c0_6, %c0_7] : memref<16x64xbf16, #tpu.memory_space<vmem>>, vector<16x64xbf16>
    tpu.vector_store %arg4[%c0_6, %c0_7], %20 {strides = array<i32>} : memref<16x64xbf16, #tpu.memory_space<vmem>>, vector<16x64xbf16>,
    return
  }
  func.func @transform_0(%arg0: i32) -> (i32, i32) {
    %c0_i32 = arith.constant 0 : i32
    %c0_i32_0 = arith.constant 0 : i32
    return %arg0, %c0_i32 : i32, i32
  }
  func.func @transform_1(%arg0: i32) -> (i32, i32) {
    %c0_i32 = arith.constant 0 : i32
    %c0_i32_0 = arith.constant 0 : i32
    return %arg0, %c0_i32 : i32, i32
  }
  func.func @transform_2(%arg0: i32) -> (i32, i32) {
    %c0_i32 = arith.constant 0 : i32
    %c0_i32_0 = arith.constant 0 : i32
    %c0_i32_1 = arith.constant 0 : i32
    return %c0_i32, %c0_i32_0 : i32, i32
  }
  func.func @transform_3(%arg0: i32) -> (i32, i32) {
    %c0_i32 = arith.constant 0 : i32
    %c0_i32_0 = arith.constant 0 : i32
    return %arg0, %c0_i32 : i32, i32
  }
}

</mosaic_0001>

<bundles_post_ra>
// kernel: glow_forward.12
= control target key start
LH: loop header
LB: loop body
LE: loop exit
PB: predicated region body
PF: predicated region fallthrough
CT: control target
= control target key end

     0   :  { %8 = vsyncpa [#allocation3], 0  ;;  %s702_s0 = inlined_call_operand.vmem [shape: bf16[128,16], index: 0, kind: input, shape index: {}]   ;;  %s703_s1 = inlined_call_operand.hbm [shape: bf16[16,16], index: 1, kind: input, shape index: {}]   ;;  %s704_s2 = inlined_call_operand.hbm [shape: f32[1,16], index: 2, kind: input, shape index: {}]   ;;  %s705_s3 = inlined_call_operand.vmem [shape: bf16[128,16], index: 3, kind: output, shape index: {}]  }
   0x1   :  { %9 = vsyncpa [#allocation5], 0  ;;  %s629_s12 = smov 0  }
   0x2 LB: > { %s443_s13 = sadd.s32 4294967295, %s603_s12   ;;  %p445_p0 = scmp.ge.s32.totalorder %s603_s12, 1  ;;  %s603_s12 = sphi %s629_s12, %s15_s12  }
   0x3   : > { %p114_p1 = scmp.lt.s32.totalorder %s603_s12, 3  ;;  %s605_s14 = smov [#allocation2]  }
   0x4   : > { %s126_s15 = sshll.u32 %s605_s14, 4  ;;  %p643_p3 = scmp.eq.s32.totalorder %s443_s13, 0  ;;  %s127_s15 = int_to_ptr.vmem [resolvable:$true] %s126_s15 }
   0x5   : > { %p637_p2 = pnand %p445_p0, %p114_p1  ;;  %s606_s18 = smov [#allocation4]  }
   0x6   : > { %s140_s19 = sshll.u32 %s606_s18, 4  ;;  %s548_s21 = scalar_lea.vmem %s127_s15, 128  ;;  %s141_s19 = int_to_ptr.vmem [resolvable:$true] %s140_s19 }
   0x7   : > { %p509_p4 = pneg %p637_p2  ;;  %p549_p7 = scmp.ne.s32.totalorder %s127_s15, %s548_s21 }
   0x8   : > { %p556_p10 = scmp.lt.s32.totalorder %s127_s15, %s127_s15  ;;  %p557_p11 = scmp.lt.s32.totalorder %s548_s21, %s548_s21 }
   0x9   : > { %p651_p5 = pnand %p643_p3, %p509_p4 }
   0xa   : > { %p558_p12 = por %p557_p11, %p556_p10 }
   0xb   : > { %p539_p6 = pneg %p651_p5 }
   0xd   : > { %p551_p8 = pnand %p549_p7, %p539_p6 }
   0xf   : > { %p552_p9 = pneg %p551_p8 }
  0x11   : > { %p559_p13 = pnand %p558_p12, %p552_p9 }
  0x13   : > { %562 = shalt.err (!%p559_p13)
}
  0x14   : > { %s607_s22 = smov 64   ;;  %s608_s23 = smov 4  }
  0x15   : > { %512 = dma.hbm_to_vmem [thread:$0]  (!%p651_p5), %s703_s1, 128, %s127_s15, [#allocation3], %s607_s22, %s607_s22, %s608_s23  }
  0x16   : > { %s574_s26 = scalar_lea.vmem %s141_s19, 16  ;;  %s581_s27 = scalar_lea.vmem %s141_s19, 32 }
  0x17   : > { %p575_p0 = scmp.ne.s32.totalorder %s141_s19, %s574_s26  ;;  %p582_p7 = scmp.lt.s32.totalorder %s141_s19, %s141_s19 }
  0x18   : > { %p583_p8 = scmp.lt.s32.totalorder %s581_s27, %s574_s26 }
  0x19   : > { %p577_p1 = pnand %p575_p0, %p539_p6 }
  0x1a   : > { %p584_p9 = por %p583_p8, %p582_p7 }
  0x1b   : > { %p578_p4 = pneg %p577_p1 }
  0x1d   : > { %p585_p10 = pnand %p584_p9, %p578_p4 }
  0x1f   : > { %588 = shalt.err (!%p585_p10)
}
  0x20   : > { %515 = dma.hbm_to_vmem [thread:$0]  (!%p651_p5), %s704_s2, 16, %s141_s19, [#allocation5]  }
  0x21   : > { %162 = sbr.rel (%p637_p2) target bundleno = 253 (0xfd), region = 32 }
  0x26   : > { %594 = dma.done.wait (%p643_p3), [#allocation3], 128  }
  0x27   : > { %596 = vsyncadd (%p643_p3), [#allocation3], 4294967168 }
  0x28   : > { %598 = dma.done.wait (%p643_p3), [#allocation5], 16  }
  0x29   : > { %600 = vsyncadd (%p643_p3), [#allocation5], 4294967280  ;;  %s452_s30 = sshll.u32 %s443_s13, 3  ;;  %v532_v0 = vld [vmem:[#allocation2] sm:$0xff]   ;;  %vm246_vm0 = vcmask 130048   ;;  %vm356_vm1 = vcmask 125952  }
  0x2a   : > { %p191_p6 = scmp.lt.s32.totalorder %s452_s30, 15  ;;  %489 = vmatprep.subr.bf16.mxu0 %v532_v0  ;;  %499 = vmatprep.subr.bf16.mxu1 %v532_v0  ;;  %v456_v5 = vld [vmem:[#allocation4] ss:$0 sm:$0xff] }
  0x2b   : > { %490 = vmatpush3.bf16.msra.mxu0 %v532_v0  ;;  %500 = vmatpush3.bf16.msra.mxu1 %v532_v0 }
  0x2c   : > { %s710_s30 = smov (!%p191_p6, %s452_s30), 15 }
  0x2d   : > { %s453_s4 = sshll.u32 %s710_s30, 2 }
  0x2e   : > { %s194_s7 = scalar_lea.vmem %s702_s0, %s453_s4  ;;  %s200_s10 = scalar_lea.vmem %s705_s3, %s453_s4 }
  0x2f   : > { %v533_v1 = vld [vmem:[%s194_s7] sm:$0xff]   ;;  %v534_v2 = vld [vmem:[%s194_s7 + $0x10] sm:$0xff]   ;;  %v535_v3 = vld [vmem:[%s194_s7 + $0x8] sm:$0xff]  }
  0x30   : > { %491 = vmatprep.mubr.msk.bf16.mxu0 %vm246_vm0, %v533_v1  ;;  %495 = vmatprep.mubr.msk.bf16.mxu1 %vm246_vm0, %v534_v2  ;;  %v536_v4 = vld [vmem:[%s194_s7 + $0x18] sm:$0xff]  }
  0x31   : > { %492 = vmatmul.mubr.msk.bf16.vlgmr.msra.gmra.mxu0 %vm246_vm0, %v535_v3  ;;  %496 = vmatmul.mubr.msk.bf16.vlgmr.msra.gmra.mxu1 %vm246_vm0, %v536_v4 }
  0xf1   : > { %v493_v6 = vpop.f32.mrf.mxu0  ;;  %v497_v7 = vpop.f32.mrf.mxu1 }
  0xf2   : > { %v302_v8 = vadd.f32 %v493_v6, %v456_v5  ;;  %v318_v9 = vadd.f32 %v497_v7, %v456_v5 }
  0xf3   : > { %v293_v10 = vpop.f32.mrf.mxu0  ;;  %v309_v11 = vpop.f32.mrf.mxu1 }
  0xf4   : > { %v478_v12 = vpack.c.bf16 %v302_v8, %v302_v8  ;;  %v482_v13 = vpack.c.bf16 %v318_v9, %v318_v9  ;;  %v294_v14 = vadd.f32 %v456_v5, %v293_v10  ;;  %v310_v15 = vadd.f32 %v456_v5, %v309_v11 }
  0xf5   : > { %v494_v16 = vpop.f32.mrf.mxu0  ;;  %v498_v17 = vpop.f32.mrf.mxu1 }
  0xf6   : > { %359 = vst.msk [vmem:[%s200_s10 + $0x8] sm:$0xf] %vm356_vm1, %v478_v12  ;;  %363 = vst.msk [vmem:[%s200_s10 + $0x18] sm:$0xf] %vm356_vm1, %v482_v13  ;;  %v476_v18 = vpack.c.bf16 %v294_v14, %v294_v14  ;;  %v480_v19 = vpack.c.bf16 %v310_v15, %v310_v15  ;;  %v305_v20 = vadd.f32 %v494_v16, %v456_v5 }
  0xf7   : > { %v321_v21 = vadd.f32 %v498_v17, %v456_v5  ;;  %v296_v22 = vpop.f32.mrf.mxu0  ;;  %v312_v23 = vpop.f32.mrf.mxu1 }
  0xf8   : > { %357 = vst.msk [vmem:[%s200_s10] sm:$0xf] %vm356_vm1, %v476_v18  ;;  %361 = vst.msk [vmem:[%s200_s10 + $0x10] sm:$0xf] %vm356_vm1, %v480_v19  ;;  %v479_v24 = vpack.c.bf16 %v305_v20, %v305_v20  ;;  %v297_v26 = vadd.f32 %v456_v5, %v296_v22  ;;  %v313_v27 = vadd.f32 %v456_v5, %v312_v23 }
  0xf9   : > { %v483_v25 = vpack.c.bf16 %v321_v21, %v321_v21 }
  0xfa   : > { %360 = vst.msk [vmem:[%s200_s10 + $0xc] sm:$0xf] %vm356_vm1, %v479_v24  ;;  %v477_v28 = vpack.c.bf16 %v297_v26, %v297_v26  ;;  %v481_v29 = vpack.c.bf16 %v313_v27, %v313_v27 }
  0xfb   : > { %364 = vst.msk [vmem:[%s200_s10 + $0x1c] sm:$0xf] %vm356_vm1, %v483_v25 }
  0xfc   : > { %358 = vst.msk [vmem:[%s200_s10 + $0x4] sm:$0xf] %vm356_vm1, %v477_v28  ;;  %362 = vst.msk [vmem:[%s200_s10 + $0x14] sm:$0xf] %vm356_vm1, %v481_v29 }
  0xfd PF: > { %s15_s12 = sadd.s32 1, %s603_s12  }
  0xfe   : > { %p12_p2 = scmp.ge.s32.totalorder %s15_s12, 4  }
 0x100   :  { %14 = sbr.rel (!%p12_p2) target bundleno = 2 (0x2), region = 71 }
 0x105   :  { %387 = vsyncpa [#allocation3], 1 }
 0x106   :  { %389 = vsyncpa [#allocation3 + $0x1], 1 }
 0x107   :  { %390 = vsyncpa [#allocation5], 1 }

// kernel: glow_forward.14
= control target key start
LH: loop header
LB: loop body
LE: loop exit
PB: predicated region body
PF: predicated region fallthrough
CT: control target
= control target key end

     0   :  { %s584_s12 = smov 0   ;;  %s691_s0 = inlined_call_operand.vmem [shape: f32[128,16], index: 0, kind: input, shape index: {}]   ;;  %s692_s1 = inlined_call_operand.vmem [shape: bf16[128,16], index: 1, kind: input, shape index: {}]   ;;  %s693_s2 = inlined_call_operand.vmem [shape: f32[1,16], index: 2, kind: input, shape index: {}]   ;;  %s694_s3 = inlined_call_operand.vmem [shape: bf16[128,16], index: 3, kind: output, shape index: {}]  }
   0x1 LB: > { %s457_s13 = sadd.s32 4294967295, %s561_s12   ;;  %p461_p0 = scmp.ge.s32.totalorder %s561_s12, 1  ;;  %s561_s12 = sphi %s584_s12, %s13_s12  }
   0x2   : > { %p149_p1 = scmp.lt.s32.totalorder %s561_s12, 3 }
   0x4   : > { %p150_p2 = pnand %p461_p0, %p149_p1 }
   0x5   : > { %s462_s14 = sshll.u32 (!%p150_p2), %s457_s13, 3  ;;  %s563_s25 = smov (!%p150_p2), 8  }
   0x6   : > { %153 = sbr.rel (%p150_p2) target bundleno = 185 (0xb9), region = 32  ;;  %p179_p3 = scmp.lt.s32.totalorder (!%p150_p2), %s462_s14, 15 }
   0xb   : > { %s696_s14 = smov (!%p179_p3, %s462_s14), 15  ;;  %v468_v0 = vld [vmem:[%s693_s2] ss:$0 sm:$0xff]  ;;  %vm339_vm0 = vcmask 64512   ;;  %vm380_vm1 = vcmask 125952  }
   0xc   : > { %s463_s15 = sshll.u32 %s696_s14, 3  ;;  %s465_s21 = sshll.u32 %s696_s14, 2 }
   0xd   : > { %s182_s20 = scalar_lea.vmem %s691_s0, %s463_s15  ;;  %s622_s24 = scalar_lea.vmem %s692_s1, %s465_s21 }
   0xe   : > { %v198_v1 = vld [vmem:[%s182_s20 + $0x10] sm:$0xff]  ;;  %v196_v2 = vld [vmem:[%s182_s20] sm:$0xff]  ;;  %v199_v3 = vld [vmem:[%s182_s20 + $0x18] sm:$0xff]  ;;  %s658_s28 = scalar_lea.vmem %s694_s3, %s465_s21 }
   0xf   : > { %v213_v4 = vadd.f32 %v468_v0, %v198_v1  ;;  %v211_v5 = vadd.f32 %v468_v0, %v196_v2  ;;  %v601_v6 = vadd.f32 %v468_v0, %v199_v3  ;;  %v197_v7 = vld [vmem:[%s182_s20 + $0x8] sm:$0xff]  ;;  %v200_v9 = vld [vmem:[%s182_s20 + $0x20] sm:$0xff]  ;;  %v203_v13 = vld [vmem:[%s182_s20 + $0x38] sm:$0xff] }
  0x10   : > { %v201_v8 = vld [vmem:[%s182_s20 + $0x28] sm:$0xff]  ;;  %v212_v10 = vadd.f32 %v468_v0, %v197_v7  ;;  %v605_v12 = vadd.f32 %v468_v0, %v200_v9  ;;  %v202_v14 = vld [vmem:[%s182_s20 + $0x30] sm:$0xff]  ;;  %v608_v18 = vadd.f32 %v468_v0, %v203_v13  ;;  %v629_v36 = vld [vmem:[%s622_s24] sm:$0xff]  }
  0x11   : > { %v603_v11 = vadd.f32 %v468_v0, %v201_v8  ;;  %v245_v15 = vadd.f32 2.0, %v213_v4  ;;  %v243_v16 = vadd.f32 2.0, %v211_v5  ;;  %v246_v17 = vadd.f32 2.0, %v601_v6  ;;  %v625_v33 = vld [vmem:[%s622_s24 + $0x8] sm:$0xff]   ;;  %v640_v57 = vld [vmem:[%s622_s24 + $0x10] sm:$0xff]  }
  0x12   : > { %v244_v19 = vadd.f32 2.0, %v212_v10  ;;  %v247_v21 = vadd.f32 2.0, %v605_v12  ;;  %v612_v22 = vadd.f32 %v468_v0, %v202_v14  ;;  %v250_v28 = vadd.f32 2.0, %v608_v18  ;;  %v647_v0 = vld [vmem:[%s622_s24 + $0x18] sm:$0xff]  }
  0x13   : > { %v248_v20 = vadd.f32 2.0, %v603_v11  ;;  %v471_v23 = vmul.f32 -1.442695, %v245_v15  ;;  %v469_v24 = vmul.f32 -1.442695, %v243_v16  ;;  %v501_v34 = vunpack.c.l.bf16 %v625_v33 }
  0x14   : > { %v472_v25 = vmul.f32 -1.442695, %v246_v17  ;;  %v470_v26 = vmul.f32 -1.442695, %v244_v19  ;;  %v249_v29 = vadd.f32 2.0, %v612_v22  ;;  %v497_v39 = vunpack.c.l.bf16 %v629_v36 }
  0x15   : > { %523 = vpow2.f32 %v471_v23  ;;  %v474_v27 = vmul.f32 -1.442695, %v248_v20  ;;  %v473_v30 = vmul.f32 -1.442695, %v247_v21  ;;  %v476_v31 = vmul.f32 -1.442695, %v250_v28 }
  0x16   : > { %525 = vpow2.f32 %v469_v24  ;;  %v475_v32 = vmul.f32 -1.442695, %v249_v29  ;;  %v237_v44 = vadd.f32 %v501_v34, %v213_v4  ;;  %v235_v45 = vadd.f32 %v497_v39, %v211_v5 }
  0x17   : > { %527 = vpow2.f32 %v472_v25  ;;  %v502_v50 = vunpack.c.h.bf16 %v625_v33  ;;  %v498_v51 = vunpack.c.h.bf16 %v629_v36  ;;  %v506_v59 = vunpack.c.h.bf16 %v640_v57 }
  0x18   : > { %529 = vpow2.f32 %v470_v26  ;;  %v505_v60 = vunpack.c.l.bf16 %v640_v57  ;;  %v510_v1 = vunpack.c.h.bf16 %v647_v0  ;;  %v509_v2 = vunpack.c.l.bf16 %v647_v0 }
  0x19   : > { %531 = vpow2.f32 %v474_v27  ;;  %v238_v55 = vadd.f32 %v502_v50, %v601_v6  ;;  %v236_v56 = vadd.f32 %v498_v51, %v212_v10  ;;  %v240_v62 = vadd.f32 %v506_v59, %v603_v11 }
  0x1a   : > { %533 = vpow2.f32 %v473_v30  ;;  %v239_v63 = vadd.f32 %v505_v60, %v605_v12  ;;  %v242_v3 = vadd.f32 %v510_v1, %v608_v18  ;;  %v241_v4 = vadd.f32 %v509_v2, %v612_v22 }
  0x1b   : > { %535 = vpow2.f32 %v476_v31 }
  0x1c   : > { %537 = vpow2.f32 %v475_v32 }
  0x22   : > { %v524_v35 = vpop.eup %523 }
  0x23   : > { %v526_v37 = vpop.eup %525  ;;  %v277_v38 = vadd.f32 1.0, %v524_v35 }
  0x24   : > { %v528_v40 = vpop.eup %527  ;;  %v275_v41 = vadd.f32 1.0, %v526_v37 }
  0x25   : > { %v530_v42 = vpop.eup %529  ;;  %539 = vrcp.f32 %v277_v38  ;;  %v278_v43 = vadd.f32 1.0, %v528_v40 }
  0x26   : > { %v532_v46 = vpop.eup %531  ;;  %541 = vrcp.f32 %v275_v41  ;;  %v276_v47 = vadd.f32 1.0, %v530_v42 }
  0x27   : > { %v534_v48 = vpop.eup %533  ;;  %543 = vrcp.f32 %v278_v43  ;;  %v280_v49 = vadd.f32 1.0, %v532_v46 }
  0x28   : > { %v536_v52 = vpop.eup %535  ;;  %545 = vrcp.f32 %v276_v47  ;;  %v279_v53 = vadd.f32 1.0, %v534_v48 }
  0x29   : > { %v538_v54 = vpop.eup %537  ;;  %547 = vrcp.f32 %v280_v49  ;;  %v282_v58 = vadd.f32 1.0, %v536_v52 }
  0x2a   : > { %549 = vrcp.f32 %v279_v53  ;;  %v281_v61 = vadd.f32 1.0, %v538_v54 }
  0x2b   : > { %551 = vrcp.f32 %v282_v58 }
  0x2c   : > { %553 = vrcp.f32 %v281_v61 }
  0x32   : > { %v540_v5 = vpop.eup %539 }
  0x33   : > { %v542_v6 = vpop.eup %541  ;;  %311 = vrot.lane.b32.xlu1 %v540_v5, %s563_s25 }
  0x34   : > { %v544_v7 = vpop.eup %543  ;;  %307 = vrot.lane.b32.xlu0 %v542_v6, %s563_s25 }
  0x35   : > { %v546_v8 = vpop.eup %545 }
  0x36   : > { %v548_v9 = vpop.eup %547 }
  0x37   : > { %313 = vrot.lane.b32.xlu1 %v544_v7, %s563_s25  ;;  %v550_v10 = vpop.eup %549 }
  0x38   : > { %309 = vrot.lane.b32.xlu0 %v546_v8, %s563_s25  ;;  %v552_v11 = vpop.eup %551 }
  0x39   : > { %v554_v12 = vpop.eup %553 }
  0x3b   : > { %317 = vrot.lane.b32.xlu1 %v548_v9, %s563_s25 }
  0x3c   : > { %315 = vrot.lane.b32.xlu0 %v550_v10, %s563_s25 }
  0x3f   : > { %321 = vrot.lane.b32.xlu1 %v552_v11, %s563_s25 }
  0x40   : > { %319 = vrot.lane.b32.xlu0 %v554_v12, %s563_s25 }
  0xa5   : > { %v312_v13 = vpop.permute.xlu1 %311 }
  0xa6   : > { %v333_v14 = vmul.f32 %v312_v13, %v237_v44  ;;  %v308_v15 = vpop.permute.xlu0 %307 }
  0xa7   : > { %v331_v16 = vmul.f32 %v308_v15, %v235_v45 }
  0xa8   : > { %v342_v17 = vsel %vm339_vm0, %v501_v34, %v333_v14 }
  0xa9   : > { %v489_v18 = vpack.c.bf16 %v342_v17, %v342_v17  ;;  %v340_v19 = vsel %vm339_vm0, %v497_v39, %v331_v16  ;;  %v314_v20 = vpop.permute.xlu1 %313 }
  0xaa   : > { %v487_v21 = vpack.c.bf16 %v340_v19, %v340_v19  ;;  %v334_v22 = vmul.f32 %v314_v20, %v238_v55  ;;  %v310_v23 = vpop.permute.xlu0 %309 }
  0xab   : > { %383 = vst.msk [vmem:[%s658_s28 + $0x8] sm:$0xf] %vm380_vm1, %v489_v18  ;;  %v332_v24 = vmul.f32 %v310_v23, %v236_v56 }
  0xac   : > { %381 = vst.msk [vmem:[%s658_s28] sm:$0xf] %vm380_vm1, %v487_v21  ;;  %v343_v25 = vsel %vm339_vm0, %v502_v50, %v334_v22 }
  0xad   : > { %v490_v26 = vpack.c.bf16 %v343_v25, %v343_v25  ;;  %v341_v27 = vsel %vm339_vm0, %v498_v51, %v332_v24  ;;  %v318_v28 = vpop.permute.xlu1 %317 }
  0xae   : > { %v488_v29 = vpack.c.bf16 %v341_v27, %v341_v27  ;;  %v336_v30 = vmul.f32 %v318_v28, %v240_v62  ;;  %v316_v31 = vpop.permute.xlu0 %315 }
  0xaf   : > { %384 = vst.msk [vmem:[%s658_s28 + $0xc] sm:$0xf] %vm380_vm1, %v490_v26  ;;  %v335_v32 = vmul.f32 %v316_v31, %v239_v63 }
  0xb0   : > { %382 = vst.msk [vmem:[%s658_s28 + $0x4] sm:$0xf] %vm380_vm1, %v488_v29  ;;  %v345_v33 = vsel %vm339_vm0, %v506_v59, %v336_v30 }
  0xb1   : > { %v492_v34 = vpack.c.bf16 %v345_v33, %v345_v33  ;;  %v344_v35 = vsel %vm339_vm0, %v505_v60, %v335_v32  ;;  %v322_v36 = vpop.permute.xlu1 %321 }
  0xb2   : > { %v491_v37 = vpack.c.bf16 %v344_v35, %v344_v35  ;;  %v338_v38 = vmul.f32 %v322_v36, %v242_v3  ;;  %v320_v39 = vpop.permute.xlu0 %319 }
  0xb3   : > { %386 = vst.msk [vmem:[%s658_s28 + $0x14] sm:$0xf] %vm380_vm1, %v492_v34  ;;  %v337_v40 = vmul.f32 %v320_v39, %v241_v4 }
  0xb4   : > { %385 = vst.msk [vmem:[%s658_s28 + $0x10] sm:$0xf] %vm380_vm1, %v491_v37  ;;  %v347_v41 = vsel %vm339_vm0, %v510_v1, %v338_v38 }
  0xb5   : > { %v494_v42 = vpack.c.bf16 %v347_v41, %v347_v41  ;;  %v346_v43 = vsel %vm339_vm0, %v509_v2, %v337_v40 }
  0xb6   : > { %v493_v44 = vpack.c.bf16 %v346_v43, %v346_v43 }
  0xb7   : > { %388 = vst.msk [vmem:[%s658_s28 + $0x1c] sm:$0xf] %vm380_vm1, %v494_v42 }
  0xb8   : > { %387 = vst.msk [vmem:[%s658_s28 + $0x18] sm:$0xf] %vm380_vm1, %v493_v44 }
  0xb9 PF: > { %s13_s12 = sadd.s32 1, %s561_s12  }
  0xba   : > { %p10_p4 = scmp.ge.s32.totalorder %s13_s12, 4  }
  0xbc   :  { %12 = sbr.rel (!%p10_p4) target bundleno = 1 (0x1), region = 65 }

// kernel: glow_forward.15
= control target key start
LH: loop header
LB: loop body
LE: loop exit
PB: predicated region body
PF: predicated region fallthrough
CT: control target
= control target key end

     0   :  { %s488_s12 = smov 0   ;;  %s519_s0 = inlined_call_operand.vmem [shape: bf16[128,16], index: 0, kind: input, shape index: {}]   ;;  %s520_s1 = inlined_call_operand.vmem [shape: bf16[16,16], index: 1, kind: input, shape index: {}]   ;;  %s521_s2 = inlined_call_operand.vmem [shape: f32[1,16], index: 2, kind: input, shape index: {}]   ;;  %s522_s3 = inlined_call_operand.vmem [shape: bf16[128,16], index: 3, kind: output, shape index: {}]  }
   0x1 LB: > { %s393_s13 = sadd.s32 4294967295, %s466_s12   ;;  %p397_p0 = scmp.ge.s32.totalorder %s466_s12, 1  ;;  %s466_s12 = sphi %s488_s12, %s13_s12  }
   0x2   : > { %p138_p1 = scmp.lt.s32.totalorder %s466_s12, 3 }
   0x4   : > { %p139_p2 = pnand %p397_p0, %p138_p1 }
   0x5   : > { %s398_s16 = sshll.u32 (!%p139_p2), %s393_s13, 3 }
   0x6   : > { %142 = sbr.rel (%p139_p2) target bundleno = 220 (0xdc), region = 32  ;;  %p163_p3 = scmp.lt.s32.totalorder (!%p139_p2), %s398_s16, 15 }
   0xb   : > { %v455_v0 = vld [vmem:[%s520_s1] sm:$0xff]   ;;  %s524_s16 = smov (!%p163_p3, %s398_s16), 15  ;;  %vm218_vm0 = vcmask 130048   ;;  %vm328_vm1 = vcmask 125952  }
   0xc   : > { %435 = vmatprep.subr.bf16.mxu0 %v455_v0  ;;  %445 = vmatprep.subr.bf16.mxu1 %v455_v0  ;;  %s399_s17 = sshll.u32 %s524_s16, 2  ;;  %v402_v5 = vld [vmem:[%s521_s2] ss:$0 sm:$0xff] }
   0xd   : > { %436 = vmatpush3.bf16.msra.mxu0 %v455_v0  ;;  %446 = vmatpush3.bf16.msra.mxu1 %v455_v0  ;;  %s166_s20 = scalar_lea.vmem %s519_s0, %s399_s17  ;;  %s172_s25 = scalar_lea.vmem %s522_s3, %s399_s17 }
   0xe   : > { %v456_v1 = vld [vmem:[%s166_s20] sm:$0xff]   ;;  %v457_v2 = vld [vmem:[%s166_s20 + $0x10] sm:$0xff]   ;;  %v458_v3 = vld [vmem:[%s166_s20 + $0x8] sm:$0xff]  }
   0xf   : > { %437 = vmatprep.mubr.msk.bf16.mxu0 %vm218_vm0, %v456_v1  ;;  %441 = vmatprep.mubr.msk.bf16.mxu1 %vm218_vm0, %v457_v2  ;;  %v459_v4 = vld [vmem:[%s166_s20 + $0x18] sm:$0xff]  }
  0x10   : > { %438 = vmatmul.mubr.msk.bf16.vlgmr.msra.gmra.mxu0 %vm218_vm0, %v458_v3  ;;  %442 = vmatmul.mubr.msk.bf16.vlgmr.msra.gmra.mxu1 %vm218_vm0, %v459_v4 }
  0xd0   : > { %v439_v6 = vpop.f32.mrf.mxu0  ;;  %v443_v8 = vpop.f32.mrf.mxu1 }
  0xd1   : > { %v274_v7 = vadd.f32 %v439_v6, %v402_v5  ;;  %v290_v9 = vadd.f32 %v443_v8, %v402_v5 }
  0xd2   : > { %v265_v10 = vpop.f32.mrf.mxu0  ;;  %v281_v13 = vpop.f32.mrf.mxu1 }
  0xd3   : > { %v424_v11 = vpack.c.bf16 %v274_v7, %v274_v7  ;;  %v266_v12 = vadd.f32 %v402_v5, %v265_v10  ;;  %v428_v14 = vpack.c.bf16 %v290_v9, %v290_v9  ;;  %v282_v15 = vadd.f32 %v402_v5, %v281_v13 }
  0xd4   : > { %v440_v16 = vpop.f32.mrf.mxu0  ;;  %v444_v19 = vpop.f32.mrf.mxu1 }
  0xd5   : > { %331 = vst.msk [vmem:[%s172_s25 + $0x8] sm:$0xf] %vm328_vm1, %v424_v11  ;;  %v422_v17 = vpack.c.bf16 %v266_v12, %v266_v12  ;;  %v277_v18 = vadd.f32 %v440_v16, %v402_v5  ;;  %335 = vst.msk [vmem:[%s172_s25 + $0x18] sm:$0xf] %vm328_vm1, %v428_v14  ;;  %v426_v20 = vpack.c.bf16 %v282_v15, %v282_v15 }
  0xd6   : > { %v293_v21 = vadd.f32 %v444_v19, %v402_v5  ;;  %v268_v22 = vpop.f32.mrf.mxu0  ;;  %v284_v25 = vpop.f32.mrf.mxu1 }
  0xd7   : > { %329 = vst.msk [vmem:[%s172_s25] sm:$0xf] %vm328_vm1, %v422_v17  ;;  %v425_v23 = vpack.c.bf16 %v277_v18, %v277_v18  ;;  %v269_v24 = vadd.f32 %v402_v5, %v268_v22  ;;  %333 = vst.msk [vmem:[%s172_s25 + $0x10] sm:$0xf] %vm328_vm1, %v426_v20  ;;  %v285_v27 = vadd.f32 %v402_v5, %v284_v25 }
  0xd8   : > { %v429_v26 = vpack.c.bf16 %v293_v21, %v293_v21 }
  0xd9   : > { %332 = vst.msk [vmem:[%s172_s25 + $0xc] sm:$0xf] %vm328_vm1, %v425_v23  ;;  %v423_v28 = vpack.c.bf16 %v269_v24, %v269_v24  ;;  %v427_v29 = vpack.c.bf16 %v285_v27, %v285_v27 }
  0xda   : > { %336 = vst.msk [vmem:[%s172_s25 + $0x1c] sm:$0xf] %vm328_vm1, %v429_v26 }
  0xdb   : > { %330 = vst.msk [vmem:[%s172_s25 + $0x4] sm:$0xf] %vm328_vm1, %v423_v28  ;;  %334 = vst.msk [vmem:[%s172_s25 + $0x14] sm:$0xf] %vm328_vm1, %v427_v29 }
  0xdc PF: > { %s13_s12 = sadd.s32 1, %s466_s12  }
  0xdd   : > { %p10_p4 = scmp.ge.s32.totalorder %s13_s12, 4  }
  0xdf   :  { %12 = sbr.rel (!%p10_p4) target bundleno = 1 (0x1), region = 62 }

// kernel: glow_forward.13
= control target key start
LH: loop header
LB: loop body
LE: loop exit
PB: predicated region body
PF: predicated region fallthrough
CT: control target
= control target key end

     0   :  { %s3169_s24 = smov 0   ;;  %s4109_s0 = inlined_call_operand.vmem [shape: bf16[128,128], index: 0, kind: input, shape index: {}]   ;;  %s4110_s1 = inlined_call_operand.vmem [shape: bf16[128,512], index: 1, kind: input, shape index: {}]   ;;  %s4111_s2 = inlined_call_operand.vmem [shape: f32[1,512], index: 2, kind: input, shape index: {}]   ;;  %s4112_s3 = inlined_call_operand.vmem [shape: bf16[512,512], index: 3, kind: input, shape index: {}]   ;;  %s4113_s4 = inlined_call_operand.vmem [shape: f32[1,512], index: 4, kind: input, shape index: {}]   ;;  %s4114_s5 = inlined_call_operand.vmem [shape: bf16[512,144], index: 5, kind: input, shape index: {}]   ;;  %s4115_s6 = inlined_call_operand.vmem [shape: f32[1,144], index: 6, kind: input, shape index: {}]   ;;  %s4116_s7 = inlined_call_operand.vmem [shape: bf16[128,144], index: 7, kind: output, shape index: {}]  }
   0x1 LB: > { %s2514_s25 = sadd.s32 4294967295, %s3126_s24   ;;  %p2518_p0 = scmp.ge.s32.totalorder %s3126_s24, 1  ;;  %s3126_s24 = sphi %s3169_s24, %s17_s24  }
   0x2   : > { %p238_p1 = scmp.lt.s32.totalorder %s3126_s24, 3 }
   0x4   : > { %p239_p2 = pnand %p2518_p0, %p238_p1 }
   0x5   : > { %s2519_s21 = sshll.u32 (!%p239_p2), %s2514_s25, 3 }
   0x6   : > { %242 = sbr.rel (%p239_p2) target bundleno = 751 (0x2ef), region = 48  ;;  %p272_p3 = scmp.lt.s32.totalorder (!%p239_p2), %s2519_s21, 15 }
   0xb   : > { %v2780_v0 = vld [vmem:[%s4110_s1 + $0xe4] ss:$16 sps:$4 sm:$0xff]   ;;  %v2782_v1 = vld [vmem:[%s4110_s1 + $0xec] ss:$16 sps:$4 sm:$0xff]   ;;  %v3128_v2 = vmov 0   ;;  %s4120_s21 = smov (!%p272_p3, %s2519_s21), 15 }
   0xc   : > { %563 = vmatprep.mubr.bf16.mxu0 %v3128_v2  ;;  %636 = vmatprep.mubr.bf16.mxu1 %v3128_v2  ;;  %v2784_v3 = vld [vmem:[%s4110_s1 + $0xe0] ss:$16 sps:$4 sm:$0xff]   ;;  %v2785_v4 = vld [vmem:[%s4110_s1 + $0xe8] ss:$16 sps:$4 sm:$0xff]   ;;  %v2786_v5 = vld [vmem:[%s4110_s1 + $0xc4] ss:$16 sps:$4 sm:$0xff]  }
   0xd   : > { %531 = vmatprep.subr.bf16.mxu0 %v2780_v0  ;;  %604 = vmatprep.subr.bf16.mxu1 %v2782_v1  ;;  %v2788_v6 = vld [vmem:[%s4110_s1 + $0xcc] ss:$16 sps:$4 sm:$0xff]   ;;  %v2790_v7 = vld [vmem:[%s4110_s1 + $0xc0] ss:$16 sps:$4 sm:$0xff]   ;;  %v2791_v8 = vld [vmem:[%s4110_s1 + $0xc8] ss:$16 sps:$4 sm:$0xff]  }
   0xe   : > { %532 = vmatpush1.bf16.msra.mxu0 %v2784_v3  ;;  %605 = vmatpush1.bf16.msra.mxu1 %v2785_v4  ;;  %v2792_v9 = vld [vmem:[%s4110_s1 + $0xa4] ss:$16 sps:$4 sm:$0xff]   ;;  %v2794_v10 = vld [vmem:[%s4110_s1 + $0xac] ss:$16 sps:$4 sm:$0xff]   ;;  %v2796_v11 = vld [vmem:[%s4110_s1 + $0xa0] ss:$16 sps:$4 sm:$0xff]  }
   0xf   : > { %533 = vmatprep.subr.bf16.mxu0 %v2786_v5  ;;  %606 = vmatprep.subr.bf16.mxu1 %v2788_v6  ;;  %v2797_v12 = vld [vmem:[%s4110_s1 + $0xa8] ss:$16 sps:$4 sm:$0xff]   ;;  %v2798_v13 = vld [vmem:[%s4110_s1 + $0x84] ss:$16 sps:$4 sm:$0xff]   ;;  %v2800_v14 = vld [vmem:[%s4110_s1 + $0x8c] ss:$16 sps:$4 sm:$0xff]  }
  0x10   : > { %v2802_v15 = vld [vmem:[%s4110_s1 + $0x80] ss:$16 sps:$4 sm:$0xff]   ;;  %v2803_v16 = vld [vmem:[%s4110_s1 + $0x88] ss:$16 sps:$4 sm:$0xff]   ;;  %v2804_v17 = vld [vmem:[%s4110_s1 + $0x64] ss:$16 sps:$4 sm:$0xff]  }
  0x11   : > { %v2806_v18 = vld [vmem:[%s4110_s1 + $0x6c] ss:$16 sps:$4 sm:$0xff]   ;;  %v2808_v19 = vld [vmem:[%s4110_s1 + $0x60] ss:$16 sps:$4 sm:$0xff]   ;;  %v2809_v20 = vld [vmem:[%s4110_s1 + $0x68] ss:$16 sps:$4 sm:$0xff]  }
  0x12   : > { %534 = vmatpush1.bf16.msra.mxu0 %v2790_v7  ;;  %607 = vmatpush1.bf16.msra.mxu1 %v2791_v8  ;;  %v2810_v21 = vld [vmem:[%s4110_s1 + $0x44] ss:$16 sps:$4 sm:$0xff]   ;;  %v2812_v22 = vld [vmem:[%s4110_s1 + $0x4c] ss:$16 sps:$4 sm:$0xff]   ;;  %s2520_s29 = sshll.u32 %s4120_s21, 2  ;;  %s2762_s26 = sshll.u32 %s4120_s21, 3 }
  0x13   : > { %535 = vmatprep.subr.bf16.mxu0 %v2792_v9  ;;  %608 = vmatprep.subr.bf16.mxu1 %v2794_v10  ;;  %v2814_v23 = vld [vmem:[%s4110_s1 + $0x40] ss:$16 sps:$4 sm:$0xff]   ;;  %v2815_v24 = vld [vmem:[%s4110_s1 + $0x48] ss:$16 sps:$4 sm:$0xff]   ;;  %v2816_v25 = vld [vmem:[%s4110_s1 + $0x24] ss:$16 sps:$4 sm:$0xff]   ;;  %s3260_s14 = scalar_lea.vmem %s4109_s0, %s2520_s29  ;;  %s4062_s29 = scalar_lea.vmem %s4116_s7, %s2762_s26 }
  0x14   : > { %v2818_v26 = vld [vmem:[%s4110_s1 + $0x2c] ss:$16 sps:$4 sm:$0xff]   ;;  %v2820_v27 = vld [vmem:[%s4110_s1 + $0x20] ss:$16 sps:$4 sm:$0xff]   ;;  %v2821_v28 = vld [vmem:[%s4110_s1 + $0x28] ss:$16 sps:$4 sm:$0xff]  }
  0x15   : > { %v2822_v29 = vld [vmem:[%s4110_s1 + $0x4] ss:$16 sps:$4 sm:$0xff]   ;;  %v2824_v30 = vld [vmem:[%s4110_s1 + $0xc] ss:$16 sps:$4 sm:$0xff]   ;;  %v2826_v31 = vld [vmem:[%s4110_s1] ss:$16 sps:$4 sm:$0xff]  }
  0x16   : > { %536 = vmatpush1.bf16.msra.mxu0 %v2796_v11  ;;  %609 = vmatpush1.bf16.msra.mxu1 %v2797_v12  ;;  %v2827_v32 = vld [vmem:[%s4110_s1 + $0x8] ss:$16 sps:$4 sm:$0xff]   ;;  %v2834_v33 = vld [vmem:[%s4112_s3 + $0xe4] ss:$16 sps:$4 sm:$0xff]   ;;  %v2832_v36 = vld [vmem:[%s4112_s3 + $0xe0] ss:$16 sps:$4 sm:$0xff]  }
  0x17   : > { %537 = vmatprep.subr.bf16.mxu0 %v2798_v13  ;;  %610 = vmatprep.subr.bf16.mxu1 %v2800_v14  ;;  %v2837_v34 = vld [vmem:[%s4112_s3 + $0x2e4] ss:$16 sps:$4 sm:$0xff]   ;;  %v2835_v37 = vld [vmem:[%s4112_s3 + $0x2e0] ss:$16 sps:$4 sm:$0xff]   ;;  %v2829_v44 = vld [vmem:[%s3260_s14 + $0x8] sm:$0xff]   ;;  %vm2445_vm0 = vcmask 1043456  }
  0x18   : > { %v2828_v35 = vld [vmem:[%s3260_s14] sm:$0xff]   ;;  %v2830_v53 = vld [vmem:[%s3260_s14 + $0x10] sm:$0xff]   ;;  %v2831_v62 = vld [vmem:[%s3260_s14 + $0x18] sm:$0xff]   ;;  %vm2446_vm1 = vcmask 130052  }
  0x19   : > { %v2840_v38 = vld [vmem:[%s4112_s3 + $0xc4] ss:$16 sps:$4 sm:$0xff]   ;;  %v2838_v40 = vld [vmem:[%s4112_s3 + $0xc0] ss:$16 sps:$4 sm:$0xff]   ;;  %vm4064_vm2 = vmor %vm2446_vm1, %vm2445_vm0 }
  0x1a   : > { %538 = vmatpush1.bf16.msra.mxu0 %v2802_v15  ;;  %611 = vmatpush1.bf16.msra.mxu1 %v2803_v16  ;;  %v2843_v39 = vld [vmem:[%s4112_s3 + $0x2c4] ss:$16 sps:$4 sm:$0xff]   ;;  %v2841_v41 = vld [vmem:[%s4112_s3 + $0x2c0] ss:$16 sps:$4 sm:$0xff]  }
  0x1b   : > { %539 = vmatprep.subr.bf16.mxu0 %v2804_v17  ;;  %612 = vmatprep.subr.bf16.mxu1 %v2806_v18  ;;  %v2846_v42 = vld [vmem:[%s4112_s3 + $0xa4] ss:$16 sps:$4 sm:$0xff]   ;;  %v2844_v45 = vld [vmem:[%s4112_s3 + $0xa0] ss:$16 sps:$4 sm:$0xff]  }
  0x1c   : > { %v2849_v43 = vld [vmem:[%s4112_s3 + $0x2a4] ss:$16 sps:$4 sm:$0xff]   ;;  %v2847_v46 = vld [vmem:[%s4112_s3 + $0x2a0] ss:$16 sps:$4 sm:$0xff]  }
  0x1d   : > { %v2852_v47 = vld [vmem:[%s4112_s3 + $0x84] ss:$16 sps:$4 sm:$0xff]   ;;  %v2850_v49 = vld [vmem:[%s4112_s3 + $0x80] ss:$16 sps:$4 sm:$0xff]  }
  0x1e   : > { %540 = vmatpush1.bf16.msra.mxu0 %v2808_v19  ;;  %613 = vmatpush1.bf16.msra.mxu1 %v2809_v20  ;;  %v2855_v48 = vld [vmem:[%s4112_s3 + $0x284] ss:$16 sps:$4 sm:$0xff]   ;;  %v2853_v50 = vld [vmem:[%s4112_s3 + $0x280] ss:$16 sps:$4 sm:$0xff]  }
  0x1f   : > { %541 = vmatprep.subr.bf16.mxu0 %v2810_v21  ;;  %614 = vmatprep.subr.bf16.mxu1 %v2812_v22  ;;  %v2858_v51 = vld [vmem:[%s4112_s3 + $0x64] ss:$16 sps:$4 sm:$0xff]   ;;  %v2856_v54 = vld [vmem:[%s4112_s3 + $0x60] ss:$16 sps:$4 sm:$0xff]  }
  0x20   : > { %v2861_v52 = vld [vmem:[%s4112_s3 + $0x264] ss:$16 sps:$4 sm:$0xff]   ;;  %v2859_v55 = vld [vmem:[%s4112_s3 + $0x260] ss:$16 sps:$4 sm:$0xff]  }
  0x21   : > { %v2864_v56 = vld [vmem:[%s4112_s3 + $0x44] ss:$16 sps:$4 sm:$0xff]   ;;  %v2862_v58 = vld [vmem:[%s4112_s3 + $0x40] ss:$16 sps:$4 sm:$0xff]  }
  0x22   : > { %542 = vmatpush1.bf16.msra.mxu0 %v2814_v23  ;;  %615 = vmatpush1.bf16.msra.mxu1 %v2815_v24  ;;  %v2867_v57 = vld [vmem:[%s4112_s3 + $0x244] ss:$16 sps:$4 sm:$0xff]   ;;  %v2865_v59 = vld [vmem:[%s4112_s3 + $0x240] ss:$16 sps:$4 sm:$0xff]  }
  0x23   : > { %543 = vmatprep.subr.bf16.mxu0 %v2816_v25  ;;  %616 = vmatprep.subr.bf16.mxu1 %v2818_v26  ;;  %v2870_v60 = vld [vmem:[%s4112_s3 + $0x24] ss:$16 sps:$4 sm:$0xff]   ;;  %v2868_v63 = vld [vmem:[%s4112_s3 + $0x20] ss:$16 sps:$4 sm:$0xff]  }
  0x24   : > { %v2873_v61 = vld [vmem:[%s4112_s3 + $0x224] ss:$16 sps:$4 sm:$0xff]   ;;  %v2871_v0 = vld [vmem:[%s4112_s3 + $0x220] ss:$16 sps:$4 sm:$0xff]  }
  0x25   : > { %v2876_v1 = vld [vmem:[%s4112_s3 + $0x4] ss:$16 sps:$4 sm:$0xff]   ;;  %v2874_v3 = vld [vmem:[%s4112_s3] ss:$16 sps:$4 sm:$0xff]  }
  0x26   : > { %544 = vmatpush1.bf16.msra.mxu0 %v2820_v27  ;;  %617 = vmatpush1.bf16.msra.mxu1 %v2821_v28  ;;  %v2877_v4 = vld [vmem:[%s4112_s3 + $0x200] ss:$16 sps:$4 sm:$0xff]   ;;  %v2882_v5 = vld [vmem:[%s4112_s3 + $0x1e4] ss:$16 sps:$4 sm:$0xff]  }
  0x27   : > { %545 = vmatprep.subr.bf16.mxu0 %v2822_v29  ;;  %618 = vmatprep.subr.bf16.mxu1 %v2824_v30  ;;  %v2885_v6 = vld [vmem:[%s4112_s3 + $0x3e4] ss:$16 sps:$4 sm:$0xff]   ;;  %v2880_v7 = vld [vmem:[%s4112_s3 + $0x1e0] ss:$16 sps:$4 sm:$0xff]  }
  0x28   : > { %v2883_v8 = vld [vmem:[%s4112_s3 + $0x3e0] ss:$16 sps:$4 sm:$0xff]   ;;  %v2888_v9 = vld [vmem:[%s4112_s3 + $0x1c4] ss:$16 sps:$4 sm:$0xff]  }
  0x29   : > { %v2891_v10 = vld [vmem:[%s4112_s3 + $0x3c4] ss:$16 sps:$4 sm:$0xff]   ;;  %v2886_v11 = vld [vmem:[%s4112_s3 + $0x1c0] ss:$16 sps:$4 sm:$0xff]  }
  0x2a   : > { %546 = vmatpush1.bf16.msra.mxu0 %v2826_v31  ;;  %619 = vmatpush1.bf16.msra.mxu1 %v2827_v32  ;;  %v2889_v12 = vld [vmem:[%s4112_s3 + $0x3c0] ss:$16 sps:$4 sm:$0xff]   ;;  %v2894_v13 = vld [vmem:[%s4112_s3 + $0x1a4] ss:$16 sps:$4 sm:$0xff]  }
  0x2b   : > { %1515 = vmatprep.subr.bf16.mxu0 %v2834_v33  ;;  %1588 = vmatprep.subr.bf16.mxu1 %v2837_v34  ;;  %v2897_v14 = vld [vmem:[%s4112_s3 + $0x3a4] ss:$16 sps:$4 sm:$0xff]   ;;  %v2892_v15 = vld [vmem:[%s4112_s3 + $0x1a0] ss:$16 sps:$4 sm:$0xff]  }
  0x2c   : > { %v2895_v16 = vld [vmem:[%s4112_s3 + $0x3a0] ss:$16 sps:$4 sm:$0xff]   ;;  %v2900_v17 = vld [vmem:[%s4112_s3 + $0x184] ss:$16 sps:$4 sm:$0xff]  }
  0x2d   : > { %564 = vmatmul.mubr.bf16.vlgmr.msra.gmra.mxu0 %v2828_v35  ;;  %637 = vmatmul.mubr.bf16.vlgmr.msra.gmra.mxu1 %v2828_v35  ;;  %v2903_v18 = vld [vmem:[%s4112_s3 + $0x384] ss:$16 sps:$4 sm:$0xff]   ;;  %v2898_v19 = vld [vmem:[%s4112_s3 + $0x180] ss:$16 sps:$4 sm:$0xff]  }
  0x2e   : > { %573 = vmatprep.mubr.bf16.mxu0 %v3128_v2  ;;  %646 = vmatprep.mubr.bf16.mxu1 %v3128_v2  ;;  %v2901_v20 = vld [vmem:[%s4112_s3 + $0x380] ss:$16 sps:$4 sm:$0xff]   ;;  %v2906_v21 = vld [vmem:[%s4112_s3 + $0x164] ss:$16 sps:$4 sm:$0xff]  }
  0x2f   : > { %1516 = vmatpush1.bf16.msra.mxu0 %v2832_v36  ;;  %1589 = vmatpush1.bf16.msra.mxu1 %v2835_v37  ;;  %v2909_v22 = vld [vmem:[%s4112_s3 + $0x364] ss:$16 sps:$4 sm:$0xff]   ;;  %v2904_v23 = vld [vmem:[%s4112_s3 + $0x160] ss:$16 sps:$4 sm:$0xff]   ;;  %v2930_v37 = vld [vmem:[%s4112_s3 + $0xec] ss:$16 sps:$4 sm:$0xff]  }
  0x30   : > { %1517 = vmatprep.subr.bf16.mxu0 %v2840_v38  ;;  %1590 = vmatprep.subr.bf16.mxu1 %v2843_v39  ;;  %v2907_v24 = vld [vmem:[%s4112_s3 + $0x360] ss:$16 sps:$4 sm:$0xff]   ;;  %v2912_v25 = vld [vmem:[%s4112_s3 + $0x144] ss:$16 sps:$4 sm:$0xff]   ;;  %v2933_v38 = vld [vmem:[%s4112_s3 + $0x2ec] ss:$16 sps:$4 sm:$0xff]   ;;  %v327_v39 = vlaneseq }
  0x31   : > { %v2915_v26 = vld [vmem:[%s4112_s3 + $0x344] ss:$16 sps:$4 sm:$0xff]   ;;  %v2910_v27 = vld [vmem:[%s4112_s3 + $0x140] ss:$16 sps:$4 sm:$0xff]  }
  0x32   : > { %v2913_v28 = vld [vmem:[%s4112_s3 + $0x340] ss:$16 sps:$4 sm:$0xff]   ;;  %v2918_v29 = vld [vmem:[%s4112_s3 + $0x124] ss:$16 sps:$4 sm:$0xff]  }
  0x33   : > { %1518 = vmatpush1.bf16.msra.mxu0 %v2838_v40  ;;  %1591 = vmatpush1.bf16.msra.mxu1 %v2841_v41  ;;  %v2921_v30 = vld [vmem:[%s4112_s3 + $0x324] ss:$16 sps:$4 sm:$0xff]   ;;  %v2916_v31 = vld [vmem:[%s4112_s3 + $0x120] ss:$16 sps:$4 sm:$0xff]   ;;  %v3491_v40 = vshrl.u32 %v327_v39, 7 }
  0x34   : > { %1519 = vmatprep.subr.bf16.mxu0 %v2846_v42  ;;  %1592 = vmatprep.subr.bf16.mxu1 %v2849_v43  ;;  %v2919_v32 = vld [vmem:[%s4112_s3 + $0x320] ss:$16 sps:$4 sm:$0xff]   ;;  %v2924_v33 = vld [vmem:[%s4112_s3 + $0x104] ss:$16 sps:$4 sm:$0xff]  }
  0x35   : > { %574 = vmatmul.mubr.bf16.gmra.mxu0 %v2829_v44  ;;  %647 = vmatmul.mubr.bf16.gmra.mxu1 %v2829_v44  ;;  %v2927_v34 = vld [vmem:[%s4112_s3 + $0x304] ss:$16 sps:$4 sm:$0xff]   ;;  %v2922_v35 = vld [vmem:[%s4112_s3 + $0x100] ss:$16 sps:$4 sm:$0xff]   ;;  %v3494_v41 = vsub.s32 1, %v3491_v40  ;;  %v341_v42 = vsub.s32 3, %v3491_v40 }
  0x36   : > { %583 = vmatprep.mubr.bf16.mxu0 %v3128_v2  ;;  %656 = vmatprep.mubr.bf16.mxu1 %v3128_v2  ;;  %v2925_v36 = vld [vmem:[%s4112_s3 + $0x300] ss:$16 sps:$4 sm:$0xff]   ;;  %v3498_v43 = vsub.s32 0, %v3491_v40  ;;  %v337_v44 = vsub.s32 2, %v3491_v40 }
  0x37   : > { %1520 = vmatpush1.bf16.msra.mxu0 %v2844_v45  ;;  %1593 = vmatpush1.bf16.msra.mxu1 %v2847_v46  ;;  %v325_v45 = vld [vmem:[%s4111_s2] sm:$0xf] }
  0x38   : > { %1521 = vmatprep.subr.bf16.mxu0 %v2852_v47  ;;  %1594 = vmatprep.subr.bf16.mxu1 %v2855_v48  ;;  %v3505_v48 = vrot.slane %v325_v45, %v3494_v41 }
  0x3b   : > { %1522 = vmatpush1.bf16.msra.mxu0 %v2850_v49  ;;  %1595 = vmatpush1.bf16.msra.mxu1 %v2853_v50  ;;  %v3509_v49 = vrot.slane %v325_v45, %v341_v42  ;;  %v3512_v50 = vrot.slane %v325_v45, %v3498_v43 }
  0x3c   : > { %1523 = vmatprep.subr.bf16.mxu0 %v2858_v51  ;;  %1596 = vmatprep.subr.bf16.mxu1 %v2861_v52  ;;  %v3516_v51 = vrot.slane %v325_v45, %v337_v44  ;;  %v2934_v45 = vld [vmem:[%s4112_s3 + $0xc8] ss:$16 sps:$4 sm:$0xff]  }
  0x3d   : > { %584 = vmatmul.mubr.bf16.gmra.mxu0 %v2830_v53  ;;  %657 = vmatmul.mubr.bf16.gmra.mxu1 %v2830_v53 }
  0x3e   : > { %593 = vmatprep.mubr.bf16.mxu0 %v3128_v2  ;;  %666 = vmatprep.mubr.bf16.mxu1 %v3128_v2  ;;  %v2879_v2 = vld [vmem:[%s4112_s3 + $0x204] ss:$16 sps:$4 sm:$0xff]  }
  0x3f   : > { %1524 = vmatpush1.bf16.msra.mxu0 %v2856_v54  ;;  %1597 = vmatpush1.bf16.msra.mxu1 %v2859_v55 }
  0x40   : > { %1525 = vmatprep.subr.bf16.mxu0 %v2864_v56  ;;  %1598 = vmatprep.subr.bf16.mxu1 %v2867_v57 }
  0x43   : > { %1526 = vmatpush1.bf16.msra.mxu0 %v2862_v58  ;;  %1599 = vmatpush1.bf16.msra.mxu1 %v2865_v59 }
  0x44   : > { %1527 = vmatprep.subr.bf16.mxu0 %v2870_v60  ;;  %1600 = vmatprep.subr.bf16.mxu1 %v2873_v61 }
  0x45   : > { %594 = vmatmul.mubr.bf16.gmra.mxu0 %v2831_v62  ;;  %667 = vmatmul.mubr.bf16.gmra.mxu1 %v2831_v62 }
  0x47   : > { %1528 = vmatpush1.bf16.msra.mxu0 %v2868_v63  ;;  %1601 = vmatpush1.bf16.msra.mxu1 %v2871_v0 }
  0x48   : > { %1529 = vmatprep.subr.bf16.mxu0 %v2876_v1  ;;  %1602 = vmatprep.subr.bf16.mxu1 %v2879_v2 }
  0x4b   : > { %1530 = vmatpush1.bf16.msra.mxu0 %v2874_v3  ;;  %1603 = vmatpush1.bf16.msra.mxu1 %v2877_v4 }
  0x4c   : > { %1531 = vmatprep.subr.bf16.mxu0 %v2882_v5  ;;  %1604 = vmatprep.subr.bf16.mxu1 %v2885_v6 }
  0x4f   : > { %1532 = vmatpush2.bf16.msra.mxu0 %v2880_v7  ;;  %1605 = vmatpush2.bf16.msra.mxu1 %v2883_v8 }
  0x50   : > { %1533 = vmatprep.subr.bf16.mxu0 %v2888_v9  ;;  %1606 = vmatprep.subr.bf16.mxu1 %v2891_v10 }
  0x53   : > { %1534 = vmatpush2.bf16.msra.mxu0 %v2886_v11  ;;  %1607 = vmatpush2.bf16.msra.mxu1 %v2889_v12 }
  0x54   : > { %1535 = vmatprep.subr.bf16.mxu0 %v2894_v13  ;;  %1608 = vmatprep.subr.bf16.mxu1 %v2897_v14 }
  0x57   : > { %1536 = vmatpush2.bf16.msra.mxu0 %v2892_v15  ;;  %1609 = vmatpush2.bf16.msra.mxu1 %v2895_v16 }
  0x58   : > { %1537 = vmatprep.subr.bf16.mxu0 %v2900_v17  ;;  %1610 = vmatprep.subr.bf16.mxu1 %v2903_v18 }
  0x5b   : > { %1538 = vmatpush2.bf16.msra.mxu0 %v2898_v19  ;;  %1611 = vmatpush2.bf16.msra.mxu1 %v2901_v20  ;;  %v2928_v20 = vld [vmem:[%s4112_s3 + $0xe8] ss:$16 sps:$4 sm:$0xff]  }
  0x5c   : > { %1539 = vmatprep.subr.bf16.mxu0 %v2906_v21  ;;  %1612 = vmatprep.subr.bf16.mxu1 %v2909_v22  ;;  %v2931_v21 = vld [vmem:[%s4112_s3 + $0x2e8] ss:$16 sps:$4 sm:$0xff]  }
  0x5f   : > { %1540 = vmatpush2.bf16.msra.mxu0 %v2904_v23  ;;  %1613 = vmatpush2.bf16.msra.mxu1 %v2907_v24 }
  0x60   : > { %1541 = vmatprep.subr.bf16.mxu0 %v2912_v25  ;;  %1614 = vmatprep.subr.bf16.mxu1 %v2915_v26  ;;  %v2936_v26 = vld [vmem:[%s4112_s3 + $0xcc] ss:$16 sps:$4 sm:$0xff]  }
  0x63   : > { %1542 = vmatpush2.bf16.msra.mxu0 %v2910_v27  ;;  %1615 = vmatpush2.bf16.msra.mxu1 %v2913_v28  ;;  %v2939_v27 = vld [vmem:[%s4112_s3 + $0x2cc] ss:$16 sps:$4 sm:$0xff]  }
  0x64   : > { %1543 = vmatprep.subr.bf16.mxu0 %v2918_v29  ;;  %1616 = vmatprep.subr.bf16.mxu1 %v2921_v30 }
  0x67   : > { %1544 = vmatpush2.bf16.msra.mxu0 %v2916_v31  ;;  %1617 = vmatpush2.bf16.msra.mxu1 %v2919_v32 }
  0x68   : > { %1545 = vmatprep.subr.bf16.mxu0 %v2924_v33  ;;  %1618 = vmatprep.subr.bf16.mxu1 %v2927_v34 }
  0x6b   : > { %1546 = vmatpush2.bf16.msra.mxu0 %v2922_v35  ;;  %1619 = vmatpush2.bf16.msra.mxu1 %v2925_v36 }
  0x6c   : > { %1661 = vmatprep.subr.bf16.mxu0 %v2930_v37  ;;  %1734 = vmatprep.subr.bf16.mxu1 %v2933_v38 }
  0xed   : > { %v565_v46 = vpop.f32.mrf.mxu0  ;;  %v638_v47 = vpop.f32.mrf.mxu1 }
  0xee   : > { %v566_v60 = vadd.f32 %v565_v46, %v3512_v50  ;;  %v639_v61 = vadd.f32 %v638_v47, %v3516_v51 }
  0xef   : > { %v567_v52 = vpop.f32.mrf.mxu0  ;;  %v640_v53 = vpop.f32.mrf.mxu1 }
  0xf0   : > { %v568_v56 = vadd.f32 %v567_v52, %v3505_v48  ;;  %v641_v57 = vadd.f32 %v640_v53, %v3509_v49  ;;  %v677_v10 = vmax.f32 %v566_v60, 0.0  ;;  %v679_v11 = vmax.f32 %v639_v61, 0.0  ;;  %v2937_v52 = vld [vmem:[%s4112_s3 + $0x2c8] ss:$16 sps:$4 sm:$0xff]   ;;  %v2942_v53 = vld [vmem:[%s4112_s3 + $0xac] ss:$16 sps:$4 sm:$0xff]  }
  0xf1   : > { %v569_v54 = vpop.f32.mrf.mxu0  ;;  %v642_v55 = vpop.f32.mrf.mxu1 }
  0xf2   : > { %v570_v58 = vadd.f32 %v569_v54, %v3512_v50  ;;  %v643_v59 = vadd.f32 %v642_v55, %v3516_v51  ;;  %v678_v6 = vmax.f32 %v568_v56, 0.0  ;;  %v680_v7 = vmax.f32 %v641_v57, 0.0 }
  0xf3   : > { %v571_v62 = vpop.f32.mrf.mxu0  ;;  %v644_v63 = vpop.f32.mrf.mxu1 }
  0xf4   : > { %v572_v0 = vadd.f32 %v571_v62, %v3505_v48  ;;  %v645_v1 = vadd.f32 %v644_v63, %v3509_v49  ;;  %v681_v2 = vmax.f32 %v570_v58, 0.0  ;;  %v683_v3 = vmax.f32 %v643_v59, 0.0  ;;  %v2945_v62 = vld [vmem:[%s4112_s3 + $0x2ac] ss:$16 sps:$4 sm:$0xff]  }
  0xf5   : > { %v575_v4 = vpop.f32.mrf.mxu0  ;;  %v648_v5 = vpop.f32.mrf.mxu1 }
  0xf6   : > { %v682_v8 = vmax.f32 %v572_v0, 0.0  ;;  %v684_v9 = vmax.f32 %v645_v1, 0.0  ;;  %v576_v12 = vadd.f32 %v575_v4, %v3512_v50  ;;  %v649_v13 = vadd.f32 %v648_v5, %v3516_v51 }
  0xf7   : > { %v577_v14 = vpop.f32.mrf.mxu0  ;;  %v650_v15 = vpop.f32.mrf.mxu1  ;;  %v3540_v22 = vpack.c.bf16 %v681_v2, %v677_v10  ;;  %v3542_v23 = vpack.c.bf16 %v683_v3, %v679_v11  ;;  %v2940_v3 = vld [vmem:[%s4112_s3 + $0xa8] ss:$16 sps:$4 sm:$0xff]   ;;  %v2951_v10 = vld [vmem:[%s4112_s3 + $0x28c] ss:$16 sps:$4 sm:$0xff]  }
  0xf8   : > { %v3528_v16 = vpack.c.bf16 %v682_v8, %v678_v6  ;;  %v3530_v17 = vpack.c.bf16 %v684_v9, %v680_v7  ;;  %v578_v18 = vadd.f32 %v577_v14, %v3505_v48  ;;  %v651_v19 = vadd.f32 %v650_v15, %v3509_v49  ;;  %v2943_v6 = vld [vmem:[%s4112_s3 + $0x2a8] ss:$16 sps:$4 sm:$0xff]   ;;  %v2948_v7 = vld [vmem:[%s4112_s3 + $0x8c] ss:$16 sps:$4 sm:$0xff]  }
  0xf9   : > { %v579_v24 = vpop.f32.mrf.mxu0  ;;  %v652_v25 = vpop.f32.mrf.mxu1  ;;  %v685_v30 = vmax.f32 %v576_v12, 0.0  ;;  %v687_v31 = vmax.f32 %v649_v13, 0.0 }
  0xfa   : > { %v580_v28 = vadd.f32 %v579_v24, %v3512_v50  ;;  %v653_v29 = vadd.f32 %v652_v25, %v3516_v51  ;;  %1547 = vmatprep.mubr.bf16.mxu0 %v3528_v16  ;;  %1620 = vmatprep.mubr.bf16.mxu1 %v3530_v17  ;;  %v686_v32 = vmax.f32 %v578_v18, 0.0  ;;  %v688_v33 = vmax.f32 %v651_v19, 0.0  ;;  %v2946_v25 = vld [vmem:[%s4112_s3 + $0x88] ss:$16 sps:$4 sm:$0xff]  }
  0xfb   : > { %v581_v34 = vpop.f32.mrf.mxu0  ;;  %v654_v35 = vpop.f32.mrf.mxu1  ;;  %1548 = vmatmul.mubr.bf16.vlgmr.msra.gmra.mxu0 %v3540_v22  ;;  %1621 = vmatmul.mubr.bf16.vlgmr.msra.gmra.mxu1 %v3542_v23 }
  0xfc   : > { %v689_v36 = vmax.f32 %v580_v28, 0.0  ;;  %v691_v37 = vmax.f32 %v653_v29, 0.0  ;;  %v582_v38 = vadd.f32 %v581_v34, %v3505_v48  ;;  %v655_v39 = vadd.f32 %v654_v35, %v3509_v49  ;;  %1662 = vmatpush1.bf16.msra.mxu0 %v2928_v20  ;;  %1735 = vmatpush1.bf16.msra.mxu1 %v2931_v21  ;;  %v2949_v28 = vld [vmem:[%s4112_s3 + $0x288] ss:$16 sps:$4 sm:$0xff]   ;;  %v2954_v29 = vld [vmem:[%s4112_s3 + $0x6c] ss:$16 sps:$4 sm:$0xff]  }
  0xfd   : > { %v585_v46 = vpop.f32.mrf.mxu0  ;;  %v658_v47 = vpop.f32.mrf.mxu1  ;;  %1663 = vmatprep.subr.bf16.mxu0 %v2936_v26  ;;  %1736 = vmatprep.subr.bf16.mxu1 %v2939_v27 }
  0xfe   : > { %v690_v54 = vmax.f32 %v582_v38, 0.0  ;;  %v692_v55 = vmax.f32 %v655_v39, 0.0  ;;  %v3567_v56 = vpack.c.bf16 %v689_v36, %v685_v30  ;;  %v3569_v57 = vpack.c.bf16 %v691_v37, %v687_v31  ;;  %v2957_v38 = vld [vmem:[%s4112_s3 + $0x26c] ss:$16 sps:$4 sm:$0xff]  }
  0xff   : > { %v586_v58 = vadd.f32 %v585_v46, %v3512_v50  ;;  %v659_v59 = vadd.f32 %v658_v47, %v3516_v51  ;;  %v587_v60 = vpop.f32.mrf.mxu0  ;;  %v660_v61 = vpop.f32.mrf.mxu1 }
 0x100   : > { %v3576_v63 = vpack.c.bf16 %v690_v54, %v686_v32  ;;  %v3578_v0 = vpack.c.bf16 %v692_v55, %v688_v33  ;;  %v588_v1 = vadd.f32 %v587_v60, %v3505_v48  ;;  %v661_v2 = vadd.f32 %v660_v61, %v3509_v49  ;;  %1664 = vmatpush1.bf16.msra.mxu0 %v2934_v45  ;;  %v2955_v55 = vld [vmem:[%s4112_s3 + $0x268] ss:$16 sps:$4 sm:$0xff]   ;;  %v2963_v61 = vld [vmem:[%s4112_s3 + $0x24c] ss:$16 sps:$4 sm:$0xff]  }
 0x101   : > { %1737 = vmatpush1.bf16.msra.mxu1 %v2937_v52  ;;  %v589_v4 = vpop.f32.mrf.mxu0  ;;  %v662_v5 = vpop.f32.mrf.mxu1  ;;  %1665 = vmatprep.subr.bf16.mxu0 %v2942_v53  ;;  %v693_v11 = vmax.f32 %v586_v58, 0.0  ;;  %v695_v12 = vmax.f32 %v659_v59, 0.0  ;;  %v2952_v52 = vld [vmem:[%s4112_s3 + $0x68] ss:$16 sps:$4 sm:$0xff]   ;;  %v2960_v58 = vld [vmem:[%s4112_s3 + $0x4c] ss:$16 sps:$4 sm:$0xff]  }
 0x102   : > { %v590_v8 = vadd.f32 %v589_v4, %v3512_v50  ;;  %v663_v9 = vadd.f32 %v662_v5, %v3516_v51  ;;  %1557 = vmatprep.mubr.bf16.mxu0 %v3576_v63  ;;  %1630 = vmatprep.mubr.bf16.mxu1 %v3578_v0  ;;  %v694_v13 = vmax.f32 %v588_v1, 0.0  ;;  %v696_v14 = vmax.f32 %v661_v2, 0.0 }
 0x103   : > { %1738 = vmatprep.subr.bf16.mxu1 %v2945_v62  ;;  %v591_v15 = vpop.f32.mrf.mxu0  ;;  %v664_v18 = vpop.f32.mrf.mxu1  ;;  %1558 = vmatmul.mubr.bf16.gmra.mxu0 %v3567_v56 }
 0x104   : > { %v697_v19 = vmax.f32 %v590_v8, 0.0  ;;  %v699_v20 = vmax.f32 %v663_v9, 0.0  ;;  %v592_v21 = vadd.f32 %v591_v15, %v3505_v48  ;;  %v665_v24 = vadd.f32 %v664_v18, %v3509_v49  ;;  %1631 = vmatmul.mubr.bf16.gmra.mxu1 %v3569_v57  ;;  %1666 = vmatpush1.bf16.msra.mxu0 %v2940_v3  ;;  %v2958_v8 = vld [vmem:[%s4112_s3 + $0x48] ss:$16 sps:$4 sm:$0xff]  }
 0x105   : > { %1739 = vmatpush1.bf16.msra.mxu1 %v2943_v6  ;;  %v595_v26 = vpop.f32.mrf.mxu0  ;;  %v668_v27 = vpop.f32.mrf.mxu1  ;;  %1667 = vmatprep.subr.bf16.mxu0 %v2948_v7  ;;  %v2961_v9 = vld [vmem:[%s4112_s3 + $0x248] ss:$16 sps:$4 sm:$0xff]  }
 0x106   : > { %v698_v30 = vmax.f32 %v592_v21, 0.0  ;;  %v700_v31 = vmax.f32 %v665_v24, 0.0  ;;  %1740 = vmatprep.subr.bf16.mxu1 %v2951_v10  ;;  %v3611_v32 = vpack.c.bf16 %v697_v19, %v693_v11  ;;  %v3613_v33 = vpack.c.bf16 %v699_v20, %v695_v12  ;;  %v2966_v10 = vld [vmem:[%s4112_s3 + $0x2c] ss:$16 sps:$4 sm:$0xff]   ;;  %v2964_v18 = vld [vmem:[%s4112_s3 + $0x28] ss:$16 sps:$4 sm:$0xff]  }
 0x107   : > { %v596_v34 = vadd.f32 %v595_v26, %v3512_v50  ;;  %v669_v35 = vadd.f32 %v668_v27, %v3516_v51  ;;  %v597_v36 = vpop.f32.mrf.mxu0  ;;  %v670_v37 = vpop.f32.mrf.mxu1  ;;  %v2969_v12 = vld [vmem:[%s4112_s3 + $0x22c] ss:$16 sps:$4 sm:$0xff]   ;;  %v2967_v19 = vld [vmem:[%s4112_s3 + $0x228] ss:$16 sps:$4 sm:$0xff]  }
 0x108   : > { %v3620_v39 = vpack.c.bf16 %v698_v30, %v694_v13  ;;  %v3622_v45 = vpack.c.bf16 %v700_v31, %v696_v14  ;;  %v598_v46 = vadd.f32 %v597_v36, %v3505_v48  ;;  %v671_v47 = vadd.f32 %v670_v37, %v3509_v49  ;;  %1668 = vmatpush1.bf16.msra.mxu0 %v2946_v25  ;;  %v2972_v20 = vld [vmem:[%s4112_s3 + $0xc] ss:$16 sps:$4 sm:$0xff]   ;;  %v2970_v24 = vld [vmem:[%s4112_s3 + $0x8] ss:$16 sps:$4 sm:$0xff]  }
 0x109   : > { %1741 = vmatpush1.bf16.msra.mxu1 %v2949_v28  ;;  %v599_v53 = vpop.f32.mrf.mxu0  ;;  %v672_v54 = vpop.f32.mrf.mxu1  ;;  %1669 = vmatprep.subr.bf16.mxu0 %v2954_v29  ;;  %v701_v62 = vmax.f32 %v596_v34, 0.0  ;;  %v703_v1 = vmax.f32 %v669_v35, 0.0  ;;  %v2975_v21 = vld [vmem:[%s4112_s3 + $0x20c] ss:$16 sps:$4 sm:$0xff]   ;;  %v2973_v25 = vld [vmem:[%s4112_s3 + $0x208] ss:$16 sps:$4 sm:$0xff]  }
 0x10a   : > { %v600_v59 = vadd.f32 %v599_v53, %v3512_v50  ;;  %v673_v60 = vadd.f32 %v672_v54, %v3516_v51  ;;  %1567 = vmatprep.mubr.bf16.mxu0 %v3620_v39  ;;  %1640 = vmatprep.mubr.bf16.mxu1 %v3622_v45  ;;  %v702_v2 = vmax.f32 %v598_v46, 0.0  ;;  %v704_v3 = vmax.f32 %v671_v47, 0.0  ;;  %v2978_v26 = vld [vmem:[%s4112_s3 + $0x1ec] ss:$16 sps:$4 sm:$0xff]   ;;  %v2979_v28 = vld [vmem:[%s4112_s3 + $0x3e8] ss:$16 sps:$4 sm:$0xff]  }
 0x10b   : > { %1742 = vmatprep.subr.bf16.mxu1 %v2957_v38  ;;  %v601_v4 = vpop.f32.mrf.mxu0  ;;  %v674_v5 = vpop.f32.mrf.mxu1  ;;  %1568 = vmatmul.mubr.bf16.gmra.mxu0 %v3611_v32  ;;  %v2981_v27 = vld [vmem:[%s4112_s3 + $0x3ec] ss:$16 sps:$4 sm:$0xff]   ;;  %v2982_v30 = vld [vmem:[%s4112_s3 + $0x1c8] ss:$16 sps:$4 sm:$0xff]  }
 0x10c   : > { %v705_v50 = vmax.f32 %v600_v59, 0.0  ;;  %v707_v6 = vmax.f32 %v673_v60, 0.0  ;;  %v602_v51 = vadd.f32 %v601_v4, %v3505_v48  ;;  %v675_v7 = vadd.f32 %v674_v5, %v3509_v49  ;;  %1641 = vmatmul.mubr.bf16.gmra.mxu1 %v3613_v33  ;;  %1670 = vmatpush1.bf16.msra.mxu0 %v2952_v52  ;;  %v2987_v29 = vld [vmem:[%s4112_s3 + $0x3cc] ss:$16 sps:$4 sm:$0xff]   ;;  %v2985_v31 = vld [vmem:[%s4112_s3 + $0x3c8] ss:$16 sps:$4 sm:$0xff]  }
 0x10d   : > { %1743 = vmatpush1.bf16.msra.mxu1 %v2955_v55  ;;  %1671 = vmatprep.subr.bf16.mxu0 %v2960_v58  ;;  %v2990_v34 = vld [vmem:[%s4112_s3 + $0x1ac] ss:$16 sps:$4 sm:$0xff]   ;;  %v2988_v36 = vld [vmem:[%s4112_s3 + $0x1a8] ss:$16 sps:$4 sm:$0xff]  }
 0x10e   : > { %v706_v48 = vmax.f32 %v602_v51, 0.0  ;;  %v708_v11 = vmax.f32 %v675_v7, 0.0  ;;  %1744 = vmatprep.subr.bf16.mxu1 %v2963_v61  ;;  %v3655_v49 = vpack.c.bf16 %v705_v50, %v701_v62  ;;  %v3660_v13 = vpack.c.bf16 %v707_v6, %v703_v1  ;;  %v2993_v35 = vld [vmem:[%s4112_s3 + $0x3ac] ss:$16 sps:$4 sm:$0xff]   ;;  %v2991_v37 = vld [vmem:[%s4112_s3 + $0x3a8] ss:$16 sps:$4 sm:$0xff]  }
 0x10f   : > { %v2996_v38 = vld [vmem:[%s4112_s3 + $0x18c] ss:$16 sps:$4 sm:$0xff]   ;;  %v2994_v47 = vld [vmem:[%s4112_s3 + $0x188] ss:$16 sps:$4 sm:$0xff]  }
 0x110   : > { %v3662_v14 = vpack.c.bf16 %v706_v48, %v702_v2  ;;  %v3664_v15 = vpack.c.bf16 %v708_v11, %v704_v3  ;;  %1672 = vmatpush1.bf16.msra.mxu0 %v2958_v8  ;;  %v2999_v46 = vld [vmem:[%s4112_s3 + $0x38c] ss:$16 sps:$4 sm:$0xff]   ;;  %v2997_v52 = vld [vmem:[%s4112_s3 + $0x388] ss:$16 sps:$4 sm:$0xff]  }
 0x111   : > { %1745 = vmatpush1.bf16.msra.mxu1 %v2961_v9  ;;  %1673 = vmatprep.subr.bf16.mxu0 %v2966_v10  ;;  %v3002_v53 = vld [vmem:[%s4112_s3 + $0x16c] ss:$16 sps:$4 sm:$0xff]   ;;  %v3000_v55 = vld [vmem:[%s4112_s3 + $0x168] ss:$16 sps:$4 sm:$0xff]  }
 0x112   : > { %1577 = vmatprep.mubr.bf16.mxu0 %v3662_v14  ;;  %1650 = vmatprep.mubr.bf16.mxu1 %v3664_v15  ;;  %v3005_v54 = vld [vmem:[%s4112_s3 + $0x36c] ss:$16 sps:$4 sm:$0xff]   ;;  %v3003_v58 = vld [vmem:[%s4112_s3 + $0x368] ss:$16 sps:$4 sm:$0xff]  }
 0x113   : > { %1746 = vmatprep.subr.bf16.mxu1 %v2969_v12  ;;  %1578 = vmatmul.mubr.bf16.gmra.mxu0 %v3655_v49  ;;  %v3008_v59 = vld [vmem:[%s4112_s3 + $0x14c] ss:$16 sps:$4 sm:$0xff]   ;;  %v3006_v61 = vld [vmem:[%s4112_s3 + $0x148] ss:$16 sps:$4 sm:$0xff]  }
 0x114   : > { %1651 = vmatmul.mubr.bf16.gmra.mxu1 %v3660_v13  ;;  %1674 = vmatpush1.bf16.msra.mxu0 %v2964_v18  ;;  %v3011_v60 = vld [vmem:[%s4112_s3 + $0x34c] ss:$16 sps:$4 sm:$0xff]   ;;  %v3009_v62 = vld [vmem:[%s4112_s3 + $0x348] ss:$16 sps:$4 sm:$0xff]  }
 0x115   : > { %1747 = vmatpush1.bf16.msra.mxu1 %v2967_v19  ;;  %1693 = vmatprep.mubr.bf16.mxu0 %v3528_v16  ;;  %v2976_v16 = vld [vmem:[%s4112_s3 + $0x1e8] ss:$16 sps:$4 sm:$0xff]   ;;  %v3014_v1 = vld [vmem:[%s4112_s3 + $0x12c] ss:$16 sps:$4 sm:$0xff]  }
 0x116   : > { %1766 = vmatprep.mubr.bf16.mxu1 %v3530_v17  ;;  %1675 = vmatprep.subr.bf16.mxu0 %v2972_v20  ;;  %v2984_v17 = vld [vmem:[%s4112_s3 + $0x1cc] ss:$16 sps:$4 sm:$0xff]   ;;  %v3012_v3 = vld [vmem:[%s4112_s3 + $0x128] ss:$16 sps:$4 sm:$0xff]  }
 0x117   : > { %1748 = vmatprep.subr.bf16.mxu1 %v2975_v21  ;;  %v3017_v2 = vld [vmem:[%s4112_s3 + $0x32c] ss:$16 sps:$4 sm:$0xff]   ;;  %v3015_v4 = vld [vmem:[%s4112_s3 + $0x328] ss:$16 sps:$4 sm:$0xff]  }
 0x118   : > { %1676 = vmatpush1.bf16.msra.mxu0 %v2970_v24  ;;  %v3020_v5 = vld [vmem:[%s4112_s3 + $0x10c] ss:$16 sps:$4 sm:$0xff]   ;;  %v3018_v6 = vld [vmem:[%s4112_s3 + $0x108] ss:$16 sps:$4 sm:$0xff]  }
 0x119   : > { %1749 = vmatpush1.bf16.msra.mxu1 %v2973_v25  ;;  %1677 = vmatprep.subr.bf16.mxu0 %v2978_v26  ;;  %v3023_v50 = vld [vmem:[%s4112_s3 + $0x30c] ss:$16 sps:$4 sm:$0xff]   ;;  %v3021_v51 = vld [vmem:[%s4112_s3 + $0x308] ss:$16 sps:$4 sm:$0xff]  }
 0x11a   : > { %1750 = vmatprep.subr.bf16.mxu1 %v2981_v27  ;;  %v3026_v7 = vld [vmem:[%s4114_s5 + $0x74] ss:$8 sps:$4 sm:$0xff]   ;;  %v3024_v8 = vld [vmem:[%s4114_s5 + $0x70] ss:$8 sps:$4 sm:$0xff]   ;;  %v3029_v9 = vld [vmem:[%s4114_s5 + $0x64] ss:$8 sps:$4 sm:$0xff]  }
 0x11b   : > { %v3027_v10 = vld [vmem:[%s4114_s5 + $0x60] ss:$8 sps:$4 sm:$0xff]   ;;  %v3032_v48 = vld [vmem:[%s4114_s5 + $0x54] ss:$8 sps:$4 sm:$0xff]   ;;  %v3077_v11 = vld [vmem:[%s4114_s5 + $0x164] ss:$8 sps:$4 sm:$0xff]  }
 0x11c   : > { %1678 = vmatpush2.bf16.msra.mxu0 %v2976_v16  ;;  %v3039_v12 = vld [vmem:[%s4114_s5 + $0x20] ss:$8 sps:$4 sm:$0xff]   ;;  %v3047_v18 = vld [vmem:[%s4114_s5 + $0x4] ss:$8 sps:$4 sm:$0xff]   ;;  %v3078_v19 = vld [vmem:[%s4114_s5 + $0x150] ss:$8 sps:$4 sm:$0xff]  }
 0x11d   : > { %1751 = vmatpush2.bf16.msra.mxu1 %v2979_v28  ;;  %1679 = vmatprep.subr.bf16.mxu0 %v2984_v17  ;;  %v3083_v20 = vld [vmem:[%s4114_s5 + $0x144] ss:$8 sps:$4 sm:$0xff]   ;;  %v3045_v21 = vld [vmem:[%s4114_s5] ss:$8 sps:$4 sm:$0xff]   ;;  %v3086_v24 = vld [vmem:[%s4114_s5 + $0x134] ss:$8 sps:$4 sm:$0xff]  }
 0x11e   : > { %1752 = vmatprep.subr.bf16.mxu1 %v2987_v29  ;;  %v3048_v25 = vld [vmem:[%s4114_s5 + $0xf0] ss:$8 sps:$4 sm:$0xff]   ;;  %v3053_v26 = vld [vmem:[%s4114_s5 + $0xe4] ss:$8 sps:$4 sm:$0xff]   ;;  %v3051_v28 = vld [vmem:[%s4114_s5 + $0xe0] ss:$8 sps:$4 sm:$0xff]  }
 0x11f   : > { %v3084_v27 = vld [vmem:[%s4114_s5 + $0x130] ss:$8 sps:$4 sm:$0xff]   ;;  %v3089_v16 = vld [vmem:[%s4114_s5 + $0x124] ss:$8 sps:$4 sm:$0xff]   ;;  %v3056_v17 = vld [vmem:[%s4114_s5 + $0xd4] ss:$8 sps:$4 sm:$0xff]  }
 0x120   : > { %1680 = vmatpush2.bf16.msra.mxu0 %v2982_v30  ;;  %v3087_v29 = vld [vmem:[%s4114_s5 + $0x120] ss:$8 sps:$4 sm:$0xff]   ;;  %v3092_v30 = vld [vmem:[%s4114_s5 + $0x114] ss:$8 sps:$4 sm:$0xff]  }
 0x121   : > { %1753 = vmatpush2.bf16.msra.mxu1 %v2985_v31  ;;  %1681 = vmatprep.subr.bf16.mxu0 %v2990_v34  ;;  %v3054_v31 = vld [vmem:[%s4114_s5 + $0xd0] ss:$8 sps:$4 sm:$0xff]   ;;  %v3059_v34 = vld [vmem:[%s4114_s5 + $0xc4] ss:$8 sps:$4 sm:$0xff]  }
 0x122   : > { %1754 = vmatprep.subr.bf16.mxu1 %v2993_v35  ;;  %v3090_v35 = vld [vmem:[%s4114_s5 + $0x110] ss:$8 sps:$4 sm:$0xff]  }
 0x124   : > { %1682 = vmatpush2.bf16.msra.mxu0 %v2988_v36  ;;  %v3095_v36 = vld [vmem:[%s4114_s5 + $0x104] ss:$8 sps:$4 sm:$0xff]  }
 0x125   : > { %1755 = vmatpush2.bf16.msra.mxu1 %v2991_v37  ;;  %1683 = vmatprep.subr.bf16.mxu0 %v2996_v38  ;;  %v3057_v37 = vld [vmem:[%s4114_s5 + $0xc0] ss:$8 sps:$4 sm:$0xff]   ;;  %v3062_v38 = vld [vmem:[%s4114_s5 + $0xb4] ss:$8 sps:$4 sm:$0xff]  }
 0x126   : > { %1756 = vmatprep.subr.bf16.mxu1 %v2999_v46  ;;  %v3093_v46 = vld [vmem:[%s4114_s5 + $0x100] ss:$8 sps:$4 sm:$0xff]  }
 0x128   : > { %1684 = vmatpush2.bf16.msra.mxu0 %v2994_v47  ;;  %v3098_v47 = vld [vmem:[%s4114_s5 + $0x1f4] ss:$8 sps:$4 sm:$0xff]  }
 0x129   : > { %1757 = vmatpush2.bf16.msra.mxu1 %v2997_v52  ;;  %1685 = vmatprep.subr.bf16.mxu0 %v3002_v53  ;;  %v3060_v52 = vld [vmem:[%s4114_s5 + $0xb0] ss:$8 sps:$4 sm:$0xff]   ;;  %v3065_v53 = vld [vmem:[%s4114_s5 + $0xa4] ss:$8 sps:$4 sm:$0xff]  }
 0x12a   : > { %1758 = vmatprep.subr.bf16.mxu1 %v3005_v54  ;;  %v3096_v54 = vld [vmem:[%s4114_s5 + $0x1f0] ss:$8 sps:$4 sm:$0xff]  }
 0x12c   : > { %1686 = vmatpush2.bf16.msra.mxu0 %v3000_v55  ;;  %v3101_v55 = vld [vmem:[%s4114_s5 + $0x1e4] ss:$8 sps:$4 sm:$0xff]  }
 0x12d   : > { %1759 = vmatpush2.bf16.msra.mxu1 %v3003_v58  ;;  %1687 = vmatprep.subr.bf16.mxu0 %v3008_v59  ;;  %v3063_v58 = vld [vmem:[%s4114_s5 + $0xa0] ss:$8 sps:$4 sm:$0xff]   ;;  %v3068_v59 = vld [vmem:[%s4114_s5 + $0x94] ss:$8 sps:$4 sm:$0xff]  }
 0x12e   : > { %1760 = vmatprep.subr.bf16.mxu1 %v3011_v60  ;;  %v3099_v60 = vld [vmem:[%s4114_s5 + $0x1e0] ss:$8 sps:$4 sm:$0xff]  }
 0x130   : > { %1688 = vmatpush2.bf16.msra.mxu0 %v3006_v61  ;;  %v3104_v61 = vld [vmem:[%s4114_s5 + $0x1d4] ss:$8 sps:$4 sm:$0xff]  }
 0x131   : > { %1761 = vmatpush2.bf16.msra.mxu1 %v3009_v62  ;;  %1689 = vmatprep.subr.bf16.mxu0 %v3014_v1  ;;  %v3066_v62 = vld [vmem:[%s4114_s5 + $0x90] ss:$8 sps:$4 sm:$0xff]   ;;  %v3071_v1 = vld [vmem:[%s4114_s5 + $0x84] ss:$8 sps:$4 sm:$0xff]  }
 0x132   : > { %1762 = vmatprep.subr.bf16.mxu1 %v3017_v2  ;;  %v3102_v2 = vld [vmem:[%s4114_s5 + $0x1d0] ss:$8 sps:$4 sm:$0xff]  }
 0x134   : > { %1690 = vmatpush2.bf16.msra.mxu0 %v3012_v3  ;;  %v3107_v3 = vld [vmem:[%s4114_s5 + $0x1c4] ss:$8 sps:$4 sm:$0xff]  }
 0x135   : > { %1763 = vmatpush2.bf16.msra.mxu1 %v3015_v4  ;;  %1691 = vmatprep.subr.bf16.mxu0 %v3020_v5  ;;  %v3069_v4 = vld [vmem:[%s4114_s5 + $0x80] ss:$8 sps:$4 sm:$0xff]  }
 0x136   : > { %1764 = vmatprep.subr.bf16.mxu1 %v3023_v50  ;;  %v3105_v5 = vld [vmem:[%s4114_s5 + $0x1c0] ss:$8 sps:$4 sm:$0xff]   ;;  %v3110_v50 = vld [vmem:[%s4114_s5 + $0x1b4] ss:$8 sps:$4 sm:$0xff]  }
 0x138   : > { %1692 = vmatpush2.bf16.msra.mxu0 %v3018_v6  ;;  %v3108_v6 = vld [vmem:[%s4114_s5 + $0x1b0] ss:$8 sps:$4 sm:$0xff]  }
 0x139   : > { %1765 = vmatpush2.bf16.msra.mxu1 %v3021_v51  ;;  %2251 = vmatprep.subr.bf16.mxu0 %v3026_v7  ;;  %v3113_v51 = vld [vmem:[%s4114_s5 + $0x1a4] ss:$8 sps:$4 sm:$0xff]   ;;  %v3111_v7 = vld [vmem:[%s4114_s5 + $0x1a0] ss:$8 sps:$4 sm:$0xff]  }
 0x13b   : > { %1694 = vmatmul.mubr.bf16.vlgmr.msra.gmra.mxu0 %v3540_v22  ;;  %v3030_v22 = vld [vmem:[%s4114_s5 + $0x50] ss:$8 sps:$4 sm:$0xff]  }
 0x13c   : > { %1767 = vmatmul.mubr.bf16.vlgmr.msra.gmra.mxu1 %v3542_v23  ;;  %1703 = vmatprep.mubr.bf16.mxu0 %v3576_v63  ;;  %v3035_v23 = vld [vmem:[%s4114_s5 + $0x44] ss:$8 sps:$4 sm:$0xff]   ;;  %v3033_v63 = vld [vmem:[%s4114_s5 + $0x40] ss:$8 sps:$4 sm:$0xff]  }
 0x13d   : > { %1776 = vmatprep.mubr.bf16.mxu1 %v3578_v0  ;;  %2252 = vmatpush1.bf16.msra.mxu0 %v3024_v8  ;;  %v3038_v0 = vld [vmem:[%s4114_s5 + $0x34] ss:$8 sps:$4 sm:$0xff]  }
 0x13e   : > { %2253 = vmatprep.subr.bf16.mxu0 %v3029_v9  ;;  %v3116_v8 = vld [vmem:[%s4114_s5 + $0x194] ss:$8 sps:$4 sm:$0xff]   ;;  %v3114_v9 = vld [vmem:[%s4114_s5 + $0x190] ss:$8 sps:$4 sm:$0xff]  }
 0x141   : > { %2254 = vmatpush1.bf16.msra.mxu0 %v3027_v10  ;;  %v3119_v10 = vld [vmem:[%s4114_s5 + $0x184] ss:$8 sps:$4 sm:$0xff]  }
 0x142   : > { %2255 = vmatprep.subr.bf16.mxu0 %v3032_v48  ;;  %v3117_v48 = vld [vmem:[%s4114_s5 + $0x180] ss:$8 sps:$4 sm:$0xff]  }
 0x143   : > { %1704 = vmatmul.mubr.bf16.gmra.mxu0 %v3567_v56  ;;  %v3036_v56 = vld [vmem:[%s4114_s5 + $0x30] ss:$8 sps:$4 sm:$0xff]  }
 0x144   : > { %1777 = vmatmul.mubr.bf16.gmra.mxu1 %v3569_v57  ;;  %1713 = vmatprep.mubr.bf16.mxu0 %v3620_v39  ;;  %v3041_v57 = vld [vmem:[%s4114_s5 + $0x24] ss:$8 sps:$4 sm:$0xff]   ;;  %v3074_v39 = vld [vmem:[%s4114_s5 + $0x174] ss:$8 sps:$4 sm:$0xff]  }
 0x145   : > { %1786 = vmatprep.mubr.bf16.mxu1 %v3622_v45  ;;  %2256 = vmatpush1.bf16.msra.mxu0 %v3030_v22  ;;  %v3072_v45 = vld [vmem:[%s4114_s5 + $0x170] ss:$8 sps:$4 sm:$0xff]   ;;  %v3995_v22 = vld [vmem:[%s4113_s4] sm:$0xf] }
 0x146   : > { %2257 = vmatprep.subr.bf16.mxu0 %v3035_v23  ;;  %2324 = vmatprep.subr.bf16.mxu1 %v3074_v39  ;;  %v3999_v23 = vrot.slane %v3995_v22, %v3494_v41 }
 0x147   : > { %2325 = vmatpush1.bf16.msra.mxu1 %v3072_v45 }
 0x148   : > { %2326 = vmatprep.subr.bf16.mxu1 %v3077_v11 }
 0x149   : > { %2258 = vmatpush1.bf16.msra.mxu0 %v3033_v63  ;;  %v4003_v63 = vrot.slane %v3995_v22, %v3498_v43 }
 0x14a   : > { %2259 = vmatprep.subr.bf16.mxu0 %v3038_v0 }
 0x14b   : > { %1714 = vmatmul.mubr.bf16.gmra.mxu0 %v3611_v32  ;;  %v3044_v32 = vld [vmem:[%s4114_s5 + $0x14] ss:$8 sps:$4 sm:$0xff]  }
 0x14c   : > { %1787 = vmatmul.mubr.bf16.gmra.mxu1 %v3613_v33  ;;  %1723 = vmatprep.mubr.bf16.mxu0 %v3662_v14  ;;  %v3075_v33 = vld [vmem:[%s4114_s5 + $0x160] ss:$8 sps:$4 sm:$0xff]   ;;  %v3080_v14 = vld [vmem:[%s4114_s5 + $0x154] ss:$8 sps:$4 sm:$0xff]  }
 0x14d   : > { %1796 = vmatprep.mubr.bf16.mxu1 %v3664_v15  ;;  %2260 = vmatpush1.bf16.msra.mxu0 %v3036_v56  ;;  %v3042_v15 = vld [vmem:[%s4114_s5 + $0x10] ss:$8 sps:$4 sm:$0xff]  }
 0x14e   : > { %2261 = vmatprep.subr.bf16.mxu0 %v3041_v57  ;;  %2327 = vmatpush1.bf16.msra.mxu1 %v3075_v33 }
 0x14f   : > { %2328 = vmatprep.subr.bf16.mxu1 %v3080_v14 }
 0x151   : > { %2262 = vmatpush1.bf16.msra.mxu0 %v3039_v12 }
 0x152   : > { %2263 = vmatprep.subr.bf16.mxu0 %v3044_v32  ;;  %2329 = vmatpush1.bf16.msra.mxu1 %v3078_v19 }
 0x153   : > { %1724 = vmatmul.mubr.bf16.gmra.mxu0 %v3655_v49  ;;  %v3050_v49 = vld [vmem:[%s4114_s5 + $0xf4] ss:$8 sps:$4 sm:$0xff]   ;;  %2330 = vmatprep.subr.bf16.mxu1 %v3083_v20 }
 0x154   : > { %1797 = vmatmul.mubr.bf16.gmra.mxu1 %v3660_v13  ;;  %v3081_v13 = vld [vmem:[%s4114_s5 + $0x140] ss:$8 sps:$4 sm:$0xff]  }
 0x155   : > { %2264 = vmatpush1.bf16.msra.mxu0 %v3042_v15 }
 0x156   : > { %2265 = vmatprep.subr.bf16.mxu0 %v3047_v18  ;;  %2331 = vmatpush1.bf16.msra.mxu1 %v3081_v13 }
 0x157   : > { %2332 = vmatprep.subr.bf16.mxu1 %v3086_v24 }
 0x159   : > { %2266 = vmatpush1.bf16.msra.mxu0 %v3045_v21 }
 0x15a   : > { %2267 = vmatprep.subr.bf16.mxu0 %v3050_v49  ;;  %2333 = vmatpush1.bf16.msra.mxu1 %v3084_v27 }
 0x15b   : > { %2334 = vmatprep.subr.bf16.mxu1 %v3089_v16 }
 0x15d   : > { %2268 = vmatpush2.bf16.msra.mxu0 %v3048_v25 }
 0x15e   : > { %2269 = vmatprep.subr.bf16.mxu0 %v3053_v26  ;;  %2335 = vmatpush1.bf16.msra.mxu1 %v3087_v29 }
 0x15f   : > { %2336 = vmatprep.subr.bf16.mxu1 %v3092_v30 }
 0x161   : > { %2270 = vmatpush2.bf16.msra.mxu0 %v3051_v28 }
 0x162   : > { %2271 = vmatprep.subr.bf16.mxu0 %v3056_v17  ;;  %2337 = vmatpush1.bf16.msra.mxu1 %v3090_v35 }
 0x163   : > { %2338 = vmatprep.subr.bf16.mxu1 %v3095_v36 }
 0x165   : > { %2272 = vmatpush2.bf16.msra.mxu0 %v3054_v31 }
 0x166   : > { %2273 = vmatprep.subr.bf16.mxu0 %v3059_v34  ;;  %2339 = vmatpush1.bf16.msra.mxu1 %v3093_v46 }
 0x167   : > { %2340 = vmatprep.subr.bf16.mxu1 %v3098_v47 }
 0x169   : > { %2274 = vmatpush2.bf16.msra.mxu0 %v3057_v37 }
 0x16a   : > { %2275 = vmatprep.subr.bf16.mxu0 %v3062_v38  ;;  %2341 = vmatpush2.bf16.msra.mxu1 %v3096_v54 }
 0x16b   : > { %2342 = vmatprep.subr.bf16.mxu1 %v3101_v55 }
 0x16d   : > { %2276 = vmatpush2.bf16.msra.mxu0 %v3060_v52 }
 0x16e   : > { %2277 = vmatprep.subr.bf16.mxu0 %v3065_v53  ;;  %2343 = vmatpush2.bf16.msra.mxu1 %v3099_v60 }
 0x16f   : > { %2344 = vmatprep.subr.bf16.mxu1 %v3104_v61 }
 0x171   : > { %2278 = vmatpush2.bf16.msra.mxu0 %v3063_v58 }
 0x172   : > { %2279 = vmatprep.subr.bf16.mxu0 %v3068_v59  ;;  %2345 = vmatpush2.bf16.msra.mxu1 %v3102_v2 }
 0x173   : > { %2346 = vmatprep.subr.bf16.mxu1 %v3107_v3 }
 0x175   : > { %2280 = vmatpush2.bf16.msra.mxu0 %v3066_v62 }
 0x176   : > { %2281 = vmatprep.subr.bf16.mxu0 %v3071_v1  ;;  %2347 = vmatpush2.bf16.msra.mxu1 %v3105_v5 }
 0x177   : > { %2348 = vmatprep.subr.bf16.mxu1 %v3110_v50 }
 0x179   : > { %2282 = vmatpush2.bf16.msra.mxu0 %v3069_v4 }
 0x17a   : > { %2349 = vmatpush2.bf16.msra.mxu1 %v3108_v6 }
 0x17b   : > { %2350 = vmatprep.subr.bf16.mxu1 %v3113_v51 }
 0x17e   : > { %2351 = vmatpush2.bf16.msra.mxu1 %v3111_v7 }
 0x17f   : > { %2352 = vmatprep.subr.bf16.mxu1 %v3116_v8 }
 0x182   : > { %2353 = vmatpush2.bf16.msra.mxu1 %v3114_v9 }
 0x183   : > { %2354 = vmatprep.subr.bf16.mxu1 %v3119_v10 }
 0x186   : > { %2355 = vmatpush2.bf16.msra.mxu1 %v3117_v48 }
 0x1bb   : > { %v1549_v0 = vpop.f32.mrf.mxu0  ;;  %v1622_v56 = vpop.f32.mrf.mxu1 }
 0x1bc   : > { %v1550_v11 = vadd.f32 %v1549_v0, %v4003_v63 }
 0x1bd   : > { %v1551_v57 = vpop.f32.mrf.mxu0  ;;  %v1624_v39 = vpop.f32.mrf.mxu1 }
 0x1be   : > { %v1552_v45 = vadd.f32 %v1551_v57, %v3999_v23  ;;  %v1623_v21 = vadd.f32 %v1622_v56, %v1550_v11 }
 0x1bf   : > { %v1553_v12 = vpop.f32.mrf.mxu0  ;;  %v1626_v32 = vpop.f32.mrf.mxu1 }
 0x1c0   : > { %v1554_v33 = vadd.f32 %v1553_v12, %v4003_v63  ;;  %v1625_v15 = vadd.f32 %v1624_v39, %v1552_v45  ;;  %v1807_v30 = vmax.f32 %v1623_v21, 0.0 }
 0x1c1   : > { %v1555_v14 = vpop.f32.mrf.mxu0  ;;  %v1628_v20 = vpop.f32.mrf.mxu1 }
 0x1c2   : > { %v1627_v18 = vadd.f32 %v1626_v32, %v1554_v33  ;;  %v1556_v19 = vadd.f32 %v1555_v14, %v3999_v23  ;;  %v1808_v16 = vmax.f32 %v1625_v15, 0.0 }
 0x1c3   : > { %v1559_v49 = vpop.f32.mrf.mxu0 }
 0x1c4   : > { %v1629_v13 = vadd.f32 %v1628_v20, %v1556_v19  ;;  %v1560_v24 = vadd.f32 %v1559_v49, %v4003_v63  ;;  %v1632_v25 = vpop.f32.mrf.mxu1  ;;  %v1811_v26 = vmax.f32 %v1627_v18, 0.0 }
 0x1c5   : > { %v1561_v27 = vpop.f32.mrf.mxu0 }
 0x1c6   : > { %v1812_v28 = vmax.f32 %v1629_v13, 0.0  ;;  %v1562_v17 = vadd.f32 %v1561_v27, %v3999_v23  ;;  %v1634_v29 = vpop.f32.mrf.mxu1  ;;  %v1633_v31 = vadd.f32 %v1632_v25, %v1560_v24  ;;  %v1839_v46 = vpack.c.bf16 %v1811_v26, %v1807_v30 }
 0x1c7   : > { %v1563_v34 = vpop.f32.mrf.mxu0 }
 0x1c8   : > { %v1840_v35 = vpack.c.bf16 %v1812_v28, %v1808_v16  ;;  %v1564_v36 = vadd.f32 %v1563_v34, %v4003_v63  ;;  %v1635_v37 = vadd.f32 %v1634_v29, %v1562_v17  ;;  %v1636_v38 = vpop.f32.mrf.mxu1  ;;  %v1815_v55 = vmax.f32 %v1633_v31, 0.0 }
 0x1c9   : > { %v1565_v47 = vpop.f32.mrf.mxu0 }
 0x1ca   : > { %2283 = vmatprep.mubr.bf16.mxu0 %v1840_v35  ;;  %v1566_v52 = vadd.f32 %v1565_v47, %v3999_v23  ;;  %v1637_v53 = vadd.f32 %v1636_v38, %v1564_v36  ;;  %v1638_v54 = vpop.f32.mrf.mxu1  ;;  %v1816_v59 = vmax.f32 %v1635_v37, 0.0 }
 0x1cb   : > { %2284 = vmatmul.mubr.bf16.vlgmr.msra.gmra.mxu0 %v1839_v46  ;;  %v1569_v58 = vpop.f32.mrf.mxu0 }
 0x1cc   : > { %v1819_v60 = vmax.f32 %v1637_v53, 0.0  ;;  %v1570_v61 = vadd.f32 %v1569_v58, %v4003_v63  ;;  %v1639_v62 = vadd.f32 %v1638_v54, %v1566_v52  ;;  %v1642_v1 = vpop.f32.mrf.mxu1 }
 0x1cd   : > { %v1571_v2 = vpop.f32.mrf.mxu0 }
 0x1ce   : > { %v1820_v3 = vmax.f32 %v1639_v62, 0.0  ;;  %v1572_v4 = vadd.f32 %v1571_v2, %v3999_v23  ;;  %v1644_v5 = vpop.f32.mrf.mxu1  ;;  %v1843_v50 = vpack.c.bf16 %v1819_v60, %v1815_v55  ;;  %v1643_v6 = vadd.f32 %v1642_v1, %v1570_v61 }
 0x1cf   : > { %v1573_v51 = vpop.f32.mrf.mxu0 }
 0x1d0   : > { %v1844_v7 = vpack.c.bf16 %v1820_v3, %v1816_v59  ;;  %v1574_v8 = vadd.f32 %v1573_v51, %v4003_v63  ;;  %v1645_v9 = vadd.f32 %v1644_v5, %v1572_v4  ;;  %v1646_v10 = vpop.f32.mrf.mxu1  ;;  %v1823_v39 = vmax.f32 %v1643_v6, 0.0 }
 0x1d1   : > { %v1575_v48 = vpop.f32.mrf.mxu0 }
 0x1d2   : > { %v1576_v0 = vadd.f32 %v1575_v48, %v3999_v23  ;;  %v1647_v56 = vadd.f32 %v1646_v10, %v1574_v8  ;;  %2293 = vmatprep.mubr.bf16.mxu0 %v1844_v7  ;;  %v1648_v57 = vpop.f32.mrf.mxu1  ;;  %v1824_v11 = vmax.f32 %v1645_v9, 0.0 }
 0x1d3   : > { %v1579_v45 = vpop.f32.mrf.mxu0  ;;  %2294 = vmatmul.mubr.bf16.gmra.mxu0 %v1843_v50 }
 0x1d4   : > { %v1827_v12 = vmax.f32 %v1647_v56, 0.0  ;;  %v1580_v32 = vadd.f32 %v1579_v45, %v4003_v63  ;;  %v1649_v33 = vadd.f32 %v1648_v57, %v1576_v0  ;;  %v1652_v14 = vpop.f32.mrf.mxu1 }
 0x1d5   : > { %v1581_v15 = vpop.f32.mrf.mxu0 }
 0x1d6   : > { %v1828_v18 = vmax.f32 %v1649_v33, 0.0  ;;  %v1582_v19 = vadd.f32 %v1581_v15, %v3999_v23  ;;  %v1654_v20 = vpop.f32.mrf.mxu1  ;;  %v1847_v21 = vpack.c.bf16 %v1827_v12, %v1823_v39  ;;  %v1653_v49 = vadd.f32 %v1652_v14, %v1580_v32 }
 0x1d7   : > { %v1583_v13 = vpop.f32.mrf.mxu0 }
 0x1d8   : > { %v1848_v24 = vpack.c.bf16 %v1828_v18, %v1824_v11  ;;  %v1584_v25 = vadd.f32 %v1583_v13, %v4003_v63  ;;  %v1655_v26 = vadd.f32 %v1654_v20, %v1582_v19  ;;  %v1656_v27 = vpop.f32.mrf.mxu1  ;;  %v1831_v30 = vmax.f32 %v1653_v49, 0.0 }
 0x1d9   : > { %v1585_v16 = vpop.f32.mrf.mxu0  ;;  %v4024_v63 = vrot.slane %v3995_v22, %v341_v42 }
 0x1da   : > { %v1586_v28 = vadd.f32 %v1585_v16, %v3999_v23  ;;  %v1657_v17 = vadd.f32 %v1656_v27, %v1584_v25  ;;  %2303 = vmatprep.mubr.bf16.mxu0 %v1848_v24  ;;  %v1658_v29 = vpop.f32.mrf.mxu1  ;;  %v1832_v31 = vmax.f32 %v1655_v26, 0.0  ;;  %v4029_v23 = vrot.slane %v3995_v22, %v337_v44 }
 0x1db   : > { %2304 = vmatmul.mubr.bf16.gmra.mxu0 %v1847_v21 }
 0x1dc   : > { %v1835_v34 = vmax.f32 %v1657_v17, 0.0  ;;  %v1659_v35 = vadd.f32 %v1658_v29, %v1586_v28 }
 0x1de   : > { %v1836_v36 = vmax.f32 %v1659_v35, 0.0  ;;  %v1851_v37 = vpack.c.bf16 %v1835_v34, %v1831_v30 }
 0x1e0   : > { %v1852_v38 = vpack.c.bf16 %v1836_v36, %v1832_v31 }
 0x1e2   : > { %2313 = vmatprep.mubr.bf16.mxu0 %v1852_v38 }
 0x1e3   : > { %2314 = vmatmul.mubr.bf16.gmra.mxu0 %v1851_v37 }
 0x1fb   : > { %v1695_v46 = vpop.f32.mrf.mxu0 }
 0x1fc   : > { %v1768_v47 = vpop.f32.mrf.mxu1  ;;  %v1696_v55 = vadd.f32 %v1695_v46, %v4029_v23 }
 0x1fd   : > { %v1697_v52 = vpop.f32.mrf.mxu0 }
 0x1fe   : > { %v1698_v53 = vadd.f32 %v1697_v52, %v4024_v63  ;;  %v1770_v54 = vpop.f32.mrf.mxu1  ;;  %v1769_v44 = vadd.f32 %v1768_v47, %v1696_v55 }
 0x1ff   : > { %v1699_v58 = vpop.f32.mrf.mxu0 }
 0x200   : > { %v1700_v59 = vadd.f32 %v1699_v58, %v4029_v23  ;;  %v1772_v60 = vpop.f32.mrf.mxu1  ;;  %v1771_v42 = vadd.f32 %v1770_v54, %v1698_v53  ;;  %v1809_v8 = vmax.f32 %v1769_v44, 0.0 }
 0x201   : > { %v1701_v61 = vpop.f32.mrf.mxu0 }
 0x202   : > { %v1773_v62 = vadd.f32 %v1772_v60, %v1700_v59  ;;  %v1702_v40 = vadd.f32 %v1701_v61, %v4024_v63  ;;  %v1774_v1 = vpop.f32.mrf.mxu1  ;;  %v1810_v50 = vmax.f32 %v1771_v42, 0.0 }
 0x203   : > { %v1705_v22 = vpop.f32.mrf.mxu0 }
 0x204   : > { %v1775_v2 = vadd.f32 %v1774_v1, %v1702_v40  ;;  %v1778_v3 = vpop.f32.mrf.mxu1  ;;  %v1813_v4 = vmax.f32 %v1773_v62, 0.0  ;;  %v1706_v9 = vadd.f32 %v1705_v22, %v4029_v23 }
 0x205   : > { %v1707_v5 = vpop.f32.mrf.mxu0 }
 0x206   : > { %v1814_v6 = vmax.f32 %v1775_v2, 0.0  ;;  %v1708_v51 = vadd.f32 %v1707_v5, %v4024_v63  ;;  %v1780_v7 = vpop.f32.mrf.mxu1  ;;  %v1841_v57 = vpack.c.bf16 %v1813_v4, %v1809_v8  ;;  %v1779_v33 = vadd.f32 %v1778_v3, %v1706_v9 }
 0x207   : > { %v1709_v10 = vpop.f32.mrf.mxu0 }
 0x208   : > { %v1842_v48 = vpack.c.bf16 %v1814_v6, %v1810_v50  ;;  %v1710_v0 = vadd.f32 %v1709_v10, %v4029_v23  ;;  %v1782_v56 = vpop.f32.mrf.mxu1  ;;  %v1781_v45 = vadd.f32 %v1780_v7, %v1708_v51  ;;  %v1817_v25 = vmax.f32 %v1779_v33, 0.0 }
 0x209   : > { %v1711_v39 = vpop.f32.mrf.mxu0 }
 0x20a   : > { %v1783_v11 = vadd.f32 %v1782_v56, %v1710_v0  ;;  %v1712_v12 = vadd.f32 %v1711_v39, %v4024_v63  ;;  %v1784_v32 = vpop.f32.mrf.mxu1  ;;  %2356 = vmatprep.mubr.bf16.mxu1 %v1842_v48  ;;  %v1818_v21 = vmax.f32 %v1781_v45, 0.0 }
 0x20b   : > { %v1715_v14 = vpop.f32.mrf.mxu0  ;;  %2357 = vmatmul.mubr.bf16.vlgmr.msra.gmra.mxu1 %v1841_v57 }
 0x20c   : > { %v1785_v15 = vadd.f32 %v1784_v32, %v1712_v12  ;;  %v1788_v18 = vpop.f32.mrf.mxu1  ;;  %v1821_v19 = vmax.f32 %v1783_v11, 0.0  ;;  %v1716_v26 = vadd.f32 %v1715_v14, %v4029_v23  ;;  %v1919_v11 = vld [vmem:[%s4115_s6] sm:$0x3] }
 0x20d   : > { %v1717_v20 = vpop.f32.mrf.mxu0  ;;  %v4051_v32 = vrot.slane %v1919_v11, %v3498_v43  ;;  %v4054_v33 = vrot.slane %v1919_v11, %v3494_v41 }
 0x20e   : > { %v1822_v49 = vmax.f32 %v1785_v15, 0.0  ;;  %v1718_v13 = vadd.f32 %v1717_v20, %v4024_v63  ;;  %v1790_v24 = vpop.f32.mrf.mxu1  ;;  %v1845_v29 = vpack.c.bf16 %v1821_v19, %v1817_v25  ;;  %v1789_v37 = vadd.f32 %v1788_v18, %v1716_v26 }
 0x20f   : > { %v1719_v27 = vpop.f32.mrf.mxu0 }
 0x210   : > { %v1846_v16 = vpack.c.bf16 %v1822_v49, %v1818_v21  ;;  %v1720_v28 = vadd.f32 %v1719_v27, %v4029_v23  ;;  %v1792_v17 = vpop.f32.mrf.mxu1  ;;  %v1791_v31 = vadd.f32 %v1790_v24, %v1718_v13  ;;  %v1825_v60 = vmax.f32 %v1789_v37, 0.0 }
 0x211   : > { %v1721_v30 = vpop.f32.mrf.mxu0 }
 0x212   : > { %v1793_v34 = vadd.f32 %v1792_v17, %v1720_v28  ;;  %v1722_v35 = vadd.f32 %v1721_v30, %v4024_v63  ;;  %v1794_v36 = vpop.f32.mrf.mxu1  ;;  %2366 = vmatprep.mubr.bf16.mxu1 %v1846_v16  ;;  %v1826_v54 = vmax.f32 %v1791_v31, 0.0 }
 0x213   : > { %v1725_v38 = vpop.f32.mrf.mxu0  ;;  %2367 = vmatmul.mubr.bf16.gmra.mxu1 %v1845_v29 }
 0x214   : > { %v1795_v46 = vadd.f32 %v1794_v36, %v1722_v35  ;;  %v1798_v47 = vpop.f32.mrf.mxu1  ;;  %v1829_v52 = vmax.f32 %v1793_v34, 0.0  ;;  %v1726_v61 = vadd.f32 %v1725_v38, %v4029_v23 }
 0x215   : > { %v1727_v53 = vpop.f32.mrf.mxu0 }
 0x216   : > { %v1830_v55 = vmax.f32 %v1795_v46, 0.0  ;;  %v1728_v58 = vadd.f32 %v1727_v53, %v4024_v63  ;;  %v1800_v59 = vpop.f32.mrf.mxu1  ;;  %v1849_v44 = vpack.c.bf16 %v1829_v52, %v1825_v60  ;;  %v1799_v5 = vadd.f32 %v1798_v47, %v1726_v61 }
 0x217   : > { %v1729_v42 = vpop.f32.mrf.mxu0 }
 0x218   : > { %v1850_v62 = vpack.c.bf16 %v1830_v55, %v1826_v54  ;;  %v1730_v40 = vadd.f32 %v1729_v42, %v4029_v23  ;;  %v1802_v1 = vpop.f32.mrf.mxu1  ;;  %v1801_v2 = vadd.f32 %v1800_v59, %v1728_v58  ;;  %v1833_v9 = vmax.f32 %v1799_v5, 0.0 }
 0x219   : > { %v1731_v22 = vpop.f32.mrf.mxu0 }
 0x21a   : > { %v1803_v3 = vadd.f32 %v1802_v1, %v1730_v40  ;;  %v1732_v4 = vadd.f32 %v1731_v22, %v4024_v63  ;;  %2376 = vmatprep.mubr.bf16.mxu1 %v1850_v62  ;;  %v1804_v50 = vpop.f32.mrf.mxu1  ;;  %v1834_v7 = vmax.f32 %v1801_v2, 0.0 }
 0x21b   : > { %2377 = vmatmul.mubr.bf16.gmra.mxu1 %v1849_v44 }
 0x21c   : > { %v1805_v6 = vadd.f32 %v1804_v50, %v1732_v4  ;;  %v1837_v51 = vmax.f32 %v1803_v3, 0.0 }
 0x21e   : > { %v1838_v8 = vmax.f32 %v1805_v6, 0.0  ;;  %v1853_v48 = vpack.c.bf16 %v1837_v51, %v1833_v9 }
 0x220   : > { %v1854_v10 = vpack.c.bf16 %v1838_v8, %v1834_v7 }
 0x222   : > { %2386 = vmatprep.mubr.bf16.mxu1 %v1854_v10 }
 0x223   : > { %2387 = vmatmul.mubr.bf16.gmra.mxu1 %v1853_v48 }
 0x28b   : > { %v2285_v23 = vpop.f32.mrf.mxu0 }
 0x28c   : > { %v2286_v18 = vadd.f32 %v2285_v23, %v4051_v32 }
 0x28d   : > { %v2287_v0 = vpop.f32.mrf.mxu0 }
 0x28e   : > { %v2288_v19 = vadd.f32 %v2287_v0, %v4054_v33 }
 0x28f   : > { %v2289_v56 = vpop.f32.mrf.mxu0 }
 0x290   : > { %v2290_v24 = vadd.f32 %v2289_v56, %v4051_v32 }
 0x291   : > { %v2291_v57 = vpop.f32.mrf.mxu0 }
 0x292   : > { %v2292_v25 = vadd.f32 %v2291_v57, %v4054_v33 }
 0x293   : > { %v2295_v39 = vpop.f32.mrf.mxu0 }
 0x294   : > { %v2296_v30 = vadd.f32 %v2295_v39, %v4051_v32 }
 0x295   : > { %v2297_v63 = vpop.f32.mrf.mxu0 }
 0x296   : > { %v2298_v31 = vadd.f32 %v2297_v63, %v4054_v33 }
 0x297   : > { %v2299_v45 = vpop.f32.mrf.mxu0 }
 0x298   : > { %v2300_v47 = vadd.f32 %v2299_v45, %v4051_v32 }
 0x299   : > { %v2301_v12 = vpop.f32.mrf.mxu0 }
 0x29a   : > { %v2302_v52 = vadd.f32 %v2301_v12, %v4054_v33 }
 0x29b   : > { %v2305_v14 = vpop.f32.mrf.mxu0 }
 0x29c   : > { %v2306_v61 = vadd.f32 %v2305_v14, %v4051_v32 }
 0x29d   : > { %v2307_v20 = vpop.f32.mrf.mxu0 }
 0x29e   : > { %v2308_v42 = vadd.f32 %v2307_v20, %v4054_v33 }
 0x29f   : > { %v2309_v27 = vpop.f32.mrf.mxu0 }
 0x2a0   : > { %v2310_v3 = vadd.f32 %v2309_v27, %v4051_v32 }
 0x2a1   : > { %v2311_v35 = vpop.f32.mrf.mxu0 }
 0x2a2   : > { %v2312_v4 = vadd.f32 %v2311_v35, %v4054_v33 }
 0x2a3   : > { %v2315_v54 = vpop.f32.mrf.mxu0 }
 0x2a4   : > { %v2316_v9 = vadd.f32 %v2315_v54, %v4051_v32 }
 0x2a5   : > { %v2317_v40 = vpop.f32.mrf.mxu0 }
 0x2a6   : > { %v2318_v10 = vadd.f32 %v2317_v40, %v4054_v33 }
 0x2a7   : > { %v2319_v50 = vpop.f32.mrf.mxu0 }
 0x2a8   : > { %v2320_v63 = vadd.f32 %v2319_v50, %v4051_v32 }
 0x2a9   : > { %v2321_v23 = vpop.f32.mrf.mxu0 }
 0x2aa   : > { %v2322_v45 = vadd.f32 %v2321_v23, %v4054_v33 }
 0x2cb   : > { %v2358_v15 = vpop.f32.mrf.mxu1 }
 0x2cc   : > { %v2359_v49 = vadd.f32 %v2358_v15, %v2286_v18 }
 0x2cd   : > { %v2360_v21 = vpop.f32.mrf.mxu1 }
 0x2ce   : > { %v2361_v13 = vadd.f32 %v2360_v21, %v2288_v19 }
 0x2cf   : > { %v2362_v43 = vpop.f32.mrf.mxu1 }
 0x2d0   : > { %v2763_v26 = vpack.c.bf16 %v2361_v13, %v2359_v49  ;;  %v2363_v28 = vadd.f32 %v2362_v43, %v2290_v24 }
 0x2d1   : > { %v2364_v16 = vpop.f32.mrf.mxu1 }
 0x2d2   : > { %2448 = vst.msk [vmem:[%s4062_s29] sm:$0xff] %vm4064_vm2, %v2763_v26  ;;  %v2365_v17 = vadd.f32 %v2364_v16, %v2292_v25 }
 0x2d3   : > { %v2368_v29 = vpop.f32.mrf.mxu1 }
 0x2d4   : > { %v2764_v34 = vpack.c.bf16 %v2365_v17, %v2363_v28  ;;  %v2369_v37 = vadd.f32 %v2368_v29, %v2296_v30 }
 0x2d5   : > { %v2370_v36 = vpop.f32.mrf.mxu1 }
 0x2d6   : > { %2449 = vst.msk [vmem:[%s4062_s29 + $0x8] sm:$0xff] %vm4064_vm2, %v2764_v34  ;;  %v2371_v38 = vadd.f32 %v2370_v36, %v2298_v31 }
 0x2d7   : > { %v2372_v46 = vpop.f32.mrf.mxu1 }
 0x2d8   : > { %v2765_v53 = vpack.c.bf16 %v2371_v38, %v2369_v37  ;;  %v2373_v58 = vadd.f32 %v2372_v46, %v2300_v47 }
 0x2d9   : > { %v2374_v55 = vpop.f32.mrf.mxu1 }
 0x2da   : > { %2450 = vst.msk [vmem:[%s4062_s29 + $0x10] sm:$0xff] %vm4064_vm2, %v2765_v53  ;;  %v2375_v59 = vadd.f32 %v2374_v55, %v2302_v52 }
 0x2db   : > { %v2378_v60 = vpop.f32.mrf.mxu1 }
 0x2dc   : > { %v2766_v62 = vpack.c.bf16 %v2375_v59, %v2373_v58  ;;  %v2379_v44 = vadd.f32 %v2378_v60, %v2306_v61 }
 0x2dd   : > { %v2380_v1 = vpop.f32.mrf.mxu1 }
 0x2de   : > { %2451 = vst.msk [vmem:[%s4062_s29 + $0x18] sm:$0xff] %vm4064_vm2, %v2766_v62  ;;  %v2381_v22 = vadd.f32 %v2380_v1, %v2308_v42 }
 0x2df   : > { %v2382_v2 = vpop.f32.mrf.mxu1 }
 0x2e0   : > { %v2767_v5 = vpack.c.bf16 %v2381_v22, %v2379_v44  ;;  %v2383_v51 = vadd.f32 %v2382_v2, %v2310_v3 }
 0x2e1   : > { %v2384_v6 = vpop.f32.mrf.mxu1 }
 0x2e2   : > { %2452 = vst.msk [vmem:[%s4062_s29 + $0x20] sm:$0xff] %vm4064_vm2, %v2767_v5  ;;  %v2385_v7 = vadd.f32 %v2384_v6, %v2312_v4 }
 0x2e3   : > { %v2388_v8 = vpop.f32.mrf.mxu1 }
 0x2e4   : > { %v2768_v48 = vpack.c.bf16 %v2385_v7, %v2383_v51  ;;  %v2389_v56 = vadd.f32 %v2388_v8, %v2316_v9 }
 0x2e5   : > { %v2390_v0 = vpop.f32.mrf.mxu1 }
 0x2e6   : > { %2453 = vst.msk [vmem:[%s4062_s29 + $0x28] sm:$0xff] %vm4064_vm2, %v2768_v48  ;;  %v2391_v57 = vadd.f32 %v2390_v0, %v2318_v10 }
 0x2e7   : > { %v2392_v39 = vpop.f32.mrf.mxu1 }
 0x2e8   : > { %v2769_v11 = vpack.c.bf16 %v2391_v57, %v2389_v56  ;;  %v2393_v14 = vadd.f32 %v2392_v39, %v2320_v63 }
 0x2e9   : > { %v2394_v12 = vpop.f32.mrf.mxu1 }
 0x2ea   : > { %2454 = vst.msk [vmem:[%s4062_s29 + $0x30] sm:$0xff] %vm4064_vm2, %v2769_v11  ;;  %v2395_v15 = vadd.f32 %v2394_v12, %v2322_v45 }
 0x2ec   : > { %v2770_v18 = vpack.c.bf16 %v2395_v15, %v2393_v14 }
 0x2ee   : > { %2455 = vst.msk [vmem:[%s4062_s29 + $0x38] sm:$0xff] %vm4064_vm2, %v2770_v18 }
 0x2ef PF: > { %s17_s24 = sadd.s32 1, %s3126_s24  }
 0x2f0   : > { %p14_p4 = scmp.ge.s32.totalorder %s17_s24, 4  }
 0x2f2   :  { %16 = sbr.rel (!%p14_p4) target bundleno = 1 (0x1), region = 78 }

// kernel: glow_forward.18
= control target key start
LH: loop header
LB: loop body
LE: loop exit
PB: predicated region body
PF: predicated region fallthrough
CT: control target
= control target key end

     0   :  { %s417_s12 = smov 0   ;;  %s449_s0 = inlined_call_operand.vmem [shape: bf16[32,64], index: 0, kind: input, shape index: {}]   ;;  %s450_s1 = inlined_call_operand.vmem [shape: bf16[64,64], index: 1, kind: input, shape index: {}]   ;;  %s451_s2 = inlined_call_operand.vmem [shape: f32[1,64], index: 2, kind: input, shape index: {}]   ;;  %s452_s3 = inlined_call_operand.vmem [shape: bf16[32,64], index: 3, kind: output, shape index: {}]  }
   0x1 LB: > { %s333_s13 = sadd.s32 4294967295, %s393_s12   ;;  %p337_p0 = scmp.ge.s32.totalorder %s393_s12, 1  ;;  %s393_s12 = sphi %s417_s12, %s13_s12  }
   0x2   : > { %p138_p1 = scmp.lt.s32.totalorder %s393_s12, 3 }
   0x4   : > { %p139_p2 = pnand %p337_p0, %p138_p1 }
   0x5   : > { %s338_s18 = sshll.u32 (!%p139_p2), %s333_s13, 1 }
   0x6   : > { %142 = sbr.rel (%p139_p2) target bundleno = 230 (0xe6), region = 32  ;;  %p163_p3 = scmp.lt.s32.totalorder (!%p139_p2), %s338_s18, 3 }
   0xb   : > { %v382_v0 = vld [vmem:[%s450_s1 + $0x18] sm:$0xff]   ;;  %v395_v1 = vmov 0.0   ;;  %v383_v2 = vld [vmem:[%s450_s1 + $0x10] sm:$0xff]   ;;  %vm396_vm0 = vmmov 0   ;;  %s454_s18 = smov (!%p163_p3, %s338_s18), 3  ;;  %v384_v3 = vld [vmem:[%s450_s1 + $0x8] sm:$0xff]  }
   0xc   : > { %360 = vmatprep.subr.bf16.mxu0 %v395_v1  ;;  %368 = vmatprep.mubr.msk.bf16.mxu0 %vm396_vm0, %v395_v1  ;;  %s339_s21 = sshll.u32 %s454_s18, 2  ;;  %v385_v4 = vld [vmem:[%s450_s1] sm:$0xff]   ;;  %vm221_vm1 = vcmask 523264   ;;  %vm274_vm2 = vcmask 519168  }
   0xd   : > { %361 = vmatpush3.bf16.msra.mxu0 %v382_v0  ;;  %s166_s24 = scalar_lea.vmem %s449_s0, %s339_s21  ;;  %v342_v6 = vld [vmem:[%s451_s2] ss:$0 sm:$0xff]  ;;  %s172_s4 = scalar_lea.vmem %s452_s3, %s339_s21 }
   0xe   : > { %362 = vmatprep.subr.bf16.mxu0 %v395_v1  ;;  %v386_v5 = vld [vmem:[%s166_s24] sm:$0xff]  }
  0x11   : > { %363 = vmatpush3.bf16.msra.mxu0 %v383_v2 }
  0x12   : > { %364 = vmatprep.subr.bf16.mxu0 %v395_v1 }
  0x15   : > { %365 = vmatpush3.bf16.msra.mxu0 %v384_v3 }
  0x16   : > { %366 = vmatprep.subr.bf16.mxu0 %v395_v1 }
  0x19   : > { %367 = vmatpush3.bf16.msra.mxu0 %v385_v4 }
  0x1c   : > { %369 = vmatmul.mubr.msk.bf16.vlgmr.msra.gmra.mxu0 %vm221_vm1, %v386_v5 }
  0xdc   : > { %v259_v7 = vpop.f32.mrf.mxu0 }
  0xdd   : > { %v260_v8 = vadd.f32 %v342_v6, %v259_v7 }
  0xde   : > { %v370_v9 = vpop.f32.mrf.mxu0 }
  0xdf   : > { %v353_v10 = vpack.c.bf16 %v260_v8, %v260_v8 }
  0xe0   : > { %v262_v11 = vpop.f32.mrf.mxu0 }
  0xe1   : > { %275 = vst.msk [vmem:[%s172_s4] sm:$0xf] %vm274_vm2, %v353_v10  ;;  %v263_v12 = vadd.f32 %v342_v6, %v262_v11 }
  0xe2   : > { %v371_v13 = vpop.f32.mrf.mxu0 }
  0xe3   : > { %v354_v14 = vpack.c.bf16 %v263_v12, %v263_v12 }
  0xe5   : > { %276 = vst.msk [vmem:[%s172_s4 + $0x4] sm:$0xf] %vm274_vm2, %v354_v14 }
  0xe6 PF: > { %s13_s12 = sadd.s32 1, %s393_s12  }
  0xe7   : > { %p10_p4 = scmp.ge.s32.totalorder %s13_s12, 4  }
  0xe9   :  { %12 = sbr.rel (!%p10_p4) target bundleno = 1 (0x1), region = 62 }

// kernel: glow_forward.20
= control target key start
LH: loop header
LB: loop body
LE: loop exit
PB: predicated region body
PF: predicated region fallthrough
CT: control target
= control target key end

     0   :  { %s389_s12 = smov 0   ;;  %s416_s0 = inlined_call_operand.vmem [shape: f32[32,64], index: 0, kind: input, shape index: {}]   ;;  %s417_s1 = inlined_call_operand.vmem [shape: bf16[32,64], index: 1, kind: input, shape index: {}]   ;;  %s418_s2 = inlined_call_operand.vmem [shape: f32[1,64], index: 2, kind: input, shape index: {}]   ;;  %s419_s3 = inlined_call_operand.vmem [shape: bf16[32,64], index: 3, kind: output, shape index: {}]  }
   0x1 LB: > { %s319_s13 = sadd.s32 4294967295, %s366_s12   ;;  %p323_p0 = scmp.ge.s32.totalorder %s366_s12, 1  ;;  %s366_s12 = sphi %s389_s12, %s13_s12  }
   0x2   : > { %p149_p1 = scmp.lt.s32.totalorder %s366_s12, 3 }
   0x4   : > { %p150_p2 = pnand %p323_p0, %p149_p1 }
   0x5   : > { %s324_s14 = sshll.u32 (!%p150_p2), %s319_s13, 1  ;;  %s368_s25 = smov (!%p150_p2), 32  }
   0x6   : > { %153 = sbr.rel (%p150_p2) target bundleno = 176 (0xb0), region = 32  ;;  %p179_p3 = scmp.lt.s32.totalorder (!%p150_p2), %s324_s14, 3 }
   0xb   : > { %s421_s14 = smov (!%p179_p3, %s324_s14), 3  ;;  %v330_v0 = vld [vmem:[%s418_s2] ss:$0 sm:$0xff]  ;;  %vm237_vm0 = vcmask 261120   ;;  %vm248_vm1 = vcmask 519168  }
   0xc   : > { %s325_s15 = sshll.u32 %s421_s14, 3  ;;  %s327_s21 = sshll.u32 %s421_s14, 2 }
   0xd   : > { %s182_s20 = scalar_lea.vmem %s416_s0, %s325_s15  ;;  %s188_s24 = scalar_lea.vmem %s417_s1, %s327_s21 }
   0xe   : > { %v196_v1 = vld [vmem:[%s182_s20] sm:$0xff]  ;;  %v197_v2 = vld [vmem:[%s182_s20 + $0x8] sm:$0xff]  ;;  %s194_s28 = scalar_lea.vmem %s419_s3, %s327_s21 }
   0xf   : > { %v205_v3 = vadd.f32 %v330_v0, %v196_v1  ;;  %v206_v4 = vadd.f32 %v330_v0, %v197_v2  ;;  %v340_v9 = vld [vmem:[%s188_s24] sm:$0xff]  }
  0x10   : > { %v341_v10 = vunpack.c.l.bf16 %v340_v9  ;;  %v342_v16 = vunpack.c.h.bf16 %v340_v9 }
  0x11   : > { %v213_v5 = vadd.f32 2.0, %v205_v3  ;;  %v214_v6 = vadd.f32 2.0, %v206_v4 }
  0x12   : > { %v211_v15 = vadd.f32 %v341_v10, %v205_v3  ;;  %v212_v17 = vadd.f32 %v342_v16, %v206_v4 }
  0x13   : > { %v331_v7 = vmul.f32 -1.442695, %v213_v5  ;;  %v332_v8 = vmul.f32 -1.442695, %v214_v6 }
  0x15   : > { %352 = vpow2.f32 %v331_v7 }
  0x16   : > { %354 = vpow2.f32 %v332_v8 }
  0x22   : > { %v353_v11 = vpop.eup %352 }
  0x23   : > { %v355_v12 = vpop.eup %354  ;;  %v221_v13 = vadd.f32 1.0, %v353_v11 }
  0x24   : > { %v222_v14 = vadd.f32 1.0, %v355_v12 }
  0x25   : > { %356 = vrcp.f32 %v221_v13 }
  0x26   : > { %358 = vrcp.f32 %v222_v14 }
  0x32   : > { %v357_v18 = vpop.eup %356 }
  0x33   : > { %229 = vrot.lane.b32.xlu0 %v357_v18, %s368_s25  ;;  %v359_v19 = vpop.eup %358 }
  0x37   : > { %231 = vrot.lane.b32.xlu0 %v359_v19, %s368_s25 }
  0xa5   : > { %v230_v20 = vpop.permute.xlu0 %229 }
  0xa6   : > { %v235_v21 = vmul.f32 %v230_v20, %v211_v15 }
  0xa8   : > { %v238_v22 = vsel %vm237_vm0, %v341_v10, %v235_v21 }
  0xa9   : > { %v337_v23 = vpack.c.bf16 %v238_v22, %v238_v22  ;;  %v232_v24 = vpop.permute.xlu0 %231 }
  0xaa   : > { %v236_v25 = vmul.f32 %v232_v24, %v212_v17 }
  0xab   : > { %249 = vst.msk [vmem:[%s194_s28] sm:$0xf] %vm248_vm1, %v337_v23 }
  0xac   : > { %v239_v26 = vsel %vm237_vm0, %v342_v16, %v236_v25 }
  0xad   : > { %v338_v27 = vpack.c.bf16 %v239_v26, %v239_v26 }
  0xaf   : > { %250 = vst.msk [vmem:[%s194_s28 + $0x4] sm:$0xf] %vm248_vm1, %v338_v27 }
  0xb0 PF: > { %s13_s12 = sadd.s32 1, %s366_s12  }
  0xb1   : > { %p10_p4 = scmp.ge.s32.totalorder %s13_s12, 4  }
  0xb3   :  { %12 = sbr.rel (!%p10_p4) target bundleno = 1 (0x1), region = 65 }

// kernel: glow_forward.19
= control target key start
LH: loop header
LB: loop body
LE: loop exit
PB: predicated region body
PF: predicated region fallthrough
CT: control target
= control target key end

     0   :  { %s4544_s24 = smov 0   ;;  %s5810_s0 = inlined_call_operand.vmem [shape: bf16[32,384], index: 0, kind: input, shape index: {}]   ;;  %s5811_s1 = inlined_call_operand.vmem [shape: bf16[384,512], index: 1, kind: input, shape index: {}]   ;;  %s5812_s2 = inlined_call_operand.vmem [shape: f32[1,512], index: 2, kind: input, shape index: {}]   ;;  %s5813_s3 = inlined_call_operand.vmem [shape: bf16[512,512], index: 3, kind: input, shape index: {}]   ;;  %s5814_s4 = inlined_call_operand.vmem [shape: f32[1,512], index: 4, kind: input, shape index: {}]   ;;  %s5815_s5 = inlined_call_operand.vmem [shape: bf16[512,576], index: 5, kind: input, shape index: {}]   ;;  %s5816_s6 = inlined_call_operand.vmem [shape: f32[1,576], index: 6, kind: input, shape index: {}]   ;;  %s5817_s7 = inlined_call_operand.vmem [shape: bf16[32,576], index: 7, kind: output, shape index: {}]  }
   0x1 LB: > { %s3466_s25 = sadd.s32 4294967295, %s4501_s24   ;;  %p3470_p0 = scmp.ge.s32.totalorder %s4501_s24, 1  ;;  %s4501_s24 = sphi %s4544_s24, %s17_s24  }
   0x2   : > { %p239_p1 = scmp.lt.s32.totalorder %s4501_s24, 3 }
   0x4   : > { %p240_p2 = pnand %p3470_p0, %p239_p1 }
   0x5   : > { %s3471_s21 = sshll.u32 (!%p240_p2), %s3466_s25, 1 }
   0x6   : > { %243 = sbr.rel (%p240_p2) target bundleno = 889 (0x379), region = 48  ;;  %p274_p3 = scmp.lt.s32.totalorder (!%p240_p2), %s3471_s21, 3 }
   0xb   : > { %v3931_v0 = vld [vmem:[%s5811_s1 + $0xe4] ss:$16 sps:$4 sm:$0xff]   ;;  %v4503_v2 = vmov 0   ;;  %v3935_v3 = vld [vmem:[%s5811_s1 + $0xe0] ss:$16 sps:$4 sm:$0xff]   ;;  %s5819_s21 = smov (!%p274_p3, %s3471_s21), 3 }
   0xc   : > { %v3933_v1 = vld [vmem:[%s5811_s1 + $0x2e4] ss:$16 sps:$4 sm:$0xff]   ;;  %981 = vmatprep.mubr.bf16.mxu1 %v4503_v2  ;;  %906 = vmatprep.subr.bf16.mxu0 %v3931_v0  ;;  %v3936_v4 = vld [vmem:[%s5811_s1 + $0x2e0] ss:$16 sps:$4 sm:$0xff]   ;;  %s3920_s29 = smul.u32 12, %s5819_s21  ;;  %vm3403_vm0 = vcmask 519168  }
   0xd   : > { %949 = vmatprep.subr.bf16.mxu1 %v3933_v1  ;;  %v3937_v5 = vld [vmem:[%s5811_s1 + $0xc4] ss:$16 sps:$4 sm:$0xff]   ;;  %907 = vmatpush1.bf16.msra.mxu0 %v3935_v3  ;;  %v3941_v7 = vld [vmem:[%s5811_s1 + $0xc0] ss:$16 sps:$4 sm:$0xff]   ;;  %v3984_v34 = vld [vmem:[%s5811_s1 + $0xec] ss:$16 sps:$4 sm:$0xff]  }
   0xe   : > { %950 = vmatpush1.bf16.msra.mxu1 %v3936_v4  ;;  %v3939_v6 = vld [vmem:[%s5811_s1 + $0x2c4] ss:$16 sps:$4 sm:$0xff]   ;;  %908 = vmatprep.subr.bf16.mxu0 %v3937_v5  ;;  %v3942_v8 = vld [vmem:[%s5811_s1 + $0x2c0] ss:$16 sps:$4 sm:$0xff]   ;;  %s4637_s16 = scalar_lea.vmem %s5810_s0, %s3920_s29  ;;  %v3982_v36 = vld [vmem:[%s5811_s1 + $0xe8] ss:$16 sps:$4 sm:$0xff]  }
   0xf   : > { %951 = vmatprep.subr.bf16.mxu1 %v3939_v6  ;;  %v3943_v9 = vld [vmem:[%s5811_s1 + $0xa4] ss:$16 sps:$4 sm:$0xff]   ;;  %v3947_v11 = vld [vmem:[%s5811_s1 + $0xa0] ss:$16 sps:$4 sm:$0xff]   ;;  %v3990_v39 = vld [vmem:[%s5811_s1 + $0xcc] ss:$16 sps:$4 sm:$0xff]  }
  0x10   : > { %v3945_v10 = vld [vmem:[%s5811_s1 + $0x2a4] ss:$16 sps:$4 sm:$0xff]   ;;  %v3948_v12 = vld [vmem:[%s5811_s1 + $0x2a0] ss:$16 sps:$4 sm:$0xff]   ;;  %v3988_v40 = vld [vmem:[%s5811_s1 + $0xc8] ss:$16 sps:$4 sm:$0xff]  }
  0x11   : > { %909 = vmatpush1.bf16.msra.mxu0 %v3941_v7  ;;  %v3949_v13 = vld [vmem:[%s5811_s1 + $0x84] ss:$16 sps:$4 sm:$0xff]   ;;  %v3953_v15 = vld [vmem:[%s5811_s1 + $0x80] ss:$16 sps:$4 sm:$0xff]   ;;  %v3996_v43 = vld [vmem:[%s5811_s1 + $0xac] ss:$16 sps:$4 sm:$0xff]  }
  0x12   : > { %952 = vmatpush1.bf16.msra.mxu1 %v3942_v8  ;;  %910 = vmatprep.subr.bf16.mxu0 %v3943_v9  ;;  %v3951_v14 = vld [vmem:[%s5811_s1 + $0x284] ss:$16 sps:$4 sm:$0xff]   ;;  %v3954_v16 = vld [vmem:[%s5811_s1 + $0x280] ss:$16 sps:$4 sm:$0xff]   ;;  %v3994_v44 = vld [vmem:[%s5811_s1 + $0xa8] ss:$16 sps:$4 sm:$0xff]  }
  0x13   : > { %953 = vmatprep.subr.bf16.mxu1 %v3945_v10  ;;  %v3955_v17 = vld [vmem:[%s5811_s1 + $0x64] ss:$16 sps:$4 sm:$0xff]   ;;  %v3959_v19 = vld [vmem:[%s5811_s1 + $0x60] ss:$16 sps:$4 sm:$0xff]   ;;  %v4002_v47 = vld [vmem:[%s5811_s1 + $0x8c] ss:$16 sps:$4 sm:$0xff]  }
  0x14   : > { %v3957_v18 = vld [vmem:[%s5811_s1 + $0x264] ss:$16 sps:$4 sm:$0xff]   ;;  %v3960_v20 = vld [vmem:[%s5811_s1 + $0x260] ss:$16 sps:$4 sm:$0xff]   ;;  %v4000_v48 = vld [vmem:[%s5811_s1 + $0x88] ss:$16 sps:$4 sm:$0xff]  }
  0x15   : > { %911 = vmatpush1.bf16.msra.mxu0 %v3947_v11  ;;  %v3961_v21 = vld [vmem:[%s5811_s1 + $0x44] ss:$16 sps:$4 sm:$0xff]   ;;  %v3965_v23 = vld [vmem:[%s5811_s1 + $0x40] ss:$16 sps:$4 sm:$0xff]   ;;  %v4008_v52 = vld [vmem:[%s5811_s1 + $0x6c] ss:$16 sps:$4 sm:$0xff]  }
  0x16   : > { %954 = vmatpush1.bf16.msra.mxu1 %v3948_v12  ;;  %912 = vmatprep.subr.bf16.mxu0 %v3949_v13  ;;  %v3963_v22 = vld [vmem:[%s5811_s1 + $0x244] ss:$16 sps:$4 sm:$0xff]   ;;  %v3966_v24 = vld [vmem:[%s5811_s1 + $0x240] ss:$16 sps:$4 sm:$0xff]   ;;  %v4006_v53 = vld [vmem:[%s5811_s1 + $0x68] ss:$16 sps:$4 sm:$0xff]  }
  0x17   : > { %955 = vmatprep.subr.bf16.mxu1 %v3951_v14  ;;  %v3967_v25 = vld [vmem:[%s5811_s1 + $0x24] ss:$16 sps:$4 sm:$0xff]   ;;  %v3971_v27 = vld [vmem:[%s5811_s1 + $0x20] ss:$16 sps:$4 sm:$0xff]   ;;  %v4014_v56 = vld [vmem:[%s5811_s1 + $0x4c] ss:$16 sps:$4 sm:$0xff]  }
  0x18   : > { %v3969_v26 = vld [vmem:[%s5811_s1 + $0x224] ss:$16 sps:$4 sm:$0xff]   ;;  %v3972_v28 = vld [vmem:[%s5811_s1 + $0x220] ss:$16 sps:$4 sm:$0xff]   ;;  %v4012_v57 = vld [vmem:[%s5811_s1 + $0x48] ss:$16 sps:$4 sm:$0xff]  }
  0x19   : > { %913 = vmatpush1.bf16.msra.mxu0 %v3953_v15  ;;  %v3973_v29 = vld [vmem:[%s5811_s1 + $0x4] ss:$16 sps:$4 sm:$0xff]   ;;  %v3977_v31 = vld [vmem:[%s5811_s1] ss:$16 sps:$4 sm:$0xff]   ;;  %v4020_v60 = vld [vmem:[%s5811_s1 + $0x2c] ss:$16 sps:$4 sm:$0xff]  }
  0x1a   : > { %956 = vmatpush1.bf16.msra.mxu1 %v3954_v16  ;;  %914 = vmatprep.subr.bf16.mxu0 %v3955_v17  ;;  %v3975_v30 = vld [vmem:[%s5811_s1 + $0x204] ss:$16 sps:$4 sm:$0xff]   ;;  %v3978_v32 = vld [vmem:[%s5811_s1 + $0x200] ss:$16 sps:$4 sm:$0xff]   ;;  %v4018_v61 = vld [vmem:[%s5811_s1 + $0x28] ss:$16 sps:$4 sm:$0xff]  }
  0x1b   : > { %957 = vmatprep.subr.bf16.mxu1 %v3957_v18  ;;  %v3979_v33 = vld [vmem:[%s5811_s1 + $0x1e4] ss:$16 sps:$4 sm:$0xff]   ;;  %v3985_v37 = vld [vmem:[%s5811_s1 + $0x1e0] ss:$16 sps:$4 sm:$0xff]   ;;  %v4026_v0 = vld [vmem:[%s5811_s1 + $0xc] ss:$16 sps:$4 sm:$0xff]  }
  0x1c   : > { %v4664_v35 = vld [vmem:[%s4637_s16 + $0x8] ss:$12 sps:$4 sm:$0xff]   ;;  %v3991_v41 = vld [vmem:[%s5811_s1 + $0x1c0] ss:$16 sps:$4 sm:$0xff]   ;;  %v4033_v4 = vld [vmem:[%s5811_s1 + $0x1ec] ss:$16 sps:$4 sm:$0xff]  }
  0x1d   : > { %915 = vmatpush1.bf16.msra.mxu0 %v3959_v19  ;;  %v3986_v38 = vld [vmem:[%s5811_s1 + $0x1c4] ss:$16 sps:$4 sm:$0xff]   ;;  %v3997_v45 = vld [vmem:[%s5811_s1 + $0x1a0] ss:$16 sps:$4 sm:$0xff]   ;;  %v4024_v1 = vld [vmem:[%s5811_s1 + $0x8] ss:$16 sps:$4 sm:$0xff]  }
  0x1e   : > { %958 = vmatpush1.bf16.msra.mxu1 %v3960_v20  ;;  %916 = vmatprep.subr.bf16.mxu0 %v3961_v21  ;;  %v3992_v42 = vld [vmem:[%s5811_s1 + $0x1a4] ss:$16 sps:$4 sm:$0xff]   ;;  %v4003_v49 = vld [vmem:[%s5811_s1 + $0x180] ss:$16 sps:$4 sm:$0xff]   ;;  %v4036_v5 = vld [vmem:[%s5811_s1 + $0x2ec] ss:$16 sps:$4 sm:$0xff]  }
  0x1f   : > { %959 = vmatprep.subr.bf16.mxu1 %v3963_v22  ;;  %v3998_v46 = vld [vmem:[%s5811_s1 + $0x184] ss:$16 sps:$4 sm:$0xff]   ;;  %v4009_v54 = vld [vmem:[%s5811_s1 + $0x160] ss:$16 sps:$4 sm:$0xff]   ;;  %v4031_v7 = vld [vmem:[%s5811_s1 + $0x1e8] ss:$16 sps:$4 sm:$0xff]  }
  0x20   : > { %v4004_v50 = vld [vmem:[%s5811_s1 + $0x164] ss:$16 sps:$4 sm:$0xff]   ;;  %v4015_v58 = vld [vmem:[%s5811_s1 + $0x140] ss:$16 sps:$4 sm:$0xff]   ;;  %v4034_v8 = vld [vmem:[%s5811_s1 + $0x2e8] ss:$16 sps:$4 sm:$0xff]  }
  0x21   : > { %917 = vmatpush1.bf16.msra.mxu0 %v3965_v23  ;;  %v4030_v51 = vld [vmem:[%s4637_s16 + $0x4] ss:$12 sps:$4 sm:$0xff]   ;;  %v4765_v6 = vld [vmem:[%s4637_s16] ss:$12 sps:$4 sm:$0xff]   ;;  %v4037_v11 = vld [vmem:[%s5811_s1 + $0x1c8] ss:$16 sps:$4 sm:$0xff]  }
  0x22   : > { %960 = vmatpush1.bf16.msra.mxu1 %v3966_v24  ;;  %918 = vmatprep.subr.bf16.mxu0 %v3967_v25  ;;  %v4010_v55 = vld [vmem:[%s5811_s1 + $0x144] ss:$16 sps:$4 sm:$0xff]   ;;  %v4021_v62 = vld [vmem:[%s5811_s1 + $0x120] ss:$16 sps:$4 sm:$0xff]   ;;  %v4039_v9 = vld [vmem:[%s5811_s1 + $0x1cc] ss:$16 sps:$4 sm:$0xff]  }
  0x23   : > { %961 = vmatprep.subr.bf16.mxu1 %v3969_v26  ;;  %938 = vmatprep.mubr.bf16.mxu0 %v4030_v51  ;;  %v4016_v59 = vld [vmem:[%s5811_s1 + $0x124] ss:$16 sps:$4 sm:$0xff]   ;;  %v4027_v3 = vld [vmem:[%s5811_s1 + $0x100] ss:$16 sps:$4 sm:$0xff]   ;;  %v4042_v10 = vld [vmem:[%s5811_s1 + $0x2cc] ss:$16 sps:$4 sm:$0xff]  }
  0x24   : > { %v4022_v63 = vld [vmem:[%s5811_s1 + $0x104] ss:$16 sps:$4 sm:$0xff]   ;;  %v4040_v12 = vld [vmem:[%s5811_s1 + $0x2c8] ss:$16 sps:$4 sm:$0xff]   ;;  %v4045_v13 = vld [vmem:[%s5811_s1 + $0x1ac] ss:$16 sps:$4 sm:$0xff]  }
  0x25   : > { %919 = vmatpush1.bf16.msra.mxu0 %v3971_v27  ;;  %v4048_v14 = vld [vmem:[%s5811_s1 + $0x2ac] ss:$16 sps:$4 sm:$0xff]   ;;  %v4043_v15 = vld [vmem:[%s5811_s1 + $0x1a8] ss:$16 sps:$4 sm:$0xff]   ;;  %s3921_s8 = smul.u32 20, %s5819_s21 }
  0x26   : > { %962 = vmatpush1.bf16.msra.mxu1 %v3972_v28  ;;  %920 = vmatprep.subr.bf16.mxu0 %v3973_v29  ;;  %v4046_v16 = vld [vmem:[%s5811_s1 + $0x2a8] ss:$16 sps:$4 sm:$0xff]   ;;  %v4051_v17 = vld [vmem:[%s5811_s1 + $0x18c] ss:$16 sps:$4 sm:$0xff]  }
  0x27   : > { %963 = vmatprep.subr.bf16.mxu1 %v3975_v30  ;;  %v4054_v18 = vld [vmem:[%s5811_s1 + $0x28c] ss:$16 sps:$4 sm:$0xff]   ;;  %v4052_v19 = vld [vmem:[%s5811_s1 + $0x288] ss:$16 sps:$4 sm:$0xff]   ;;  %s5796_s10 = scalar_lea.vmem %s5817_s7, %s3921_s8 }
  0x28   : > { %v4057_v20 = vld [vmem:[%s5811_s1 + $0x16c] ss:$16 sps:$4 sm:$0xff]   ;;  %v4055_v22 = vld [vmem:[%s5811_s1 + $0x168] ss:$16 sps:$4 sm:$0xff]  }
  0x29   : > { %921 = vmatpush1.bf16.msra.mxu0 %v3977_v31  ;;  %v4060_v21 = vld [vmem:[%s5811_s1 + $0x26c] ss:$16 sps:$4 sm:$0xff]   ;;  %v4058_v23 = vld [vmem:[%s5811_s1 + $0x268] ss:$16 sps:$4 sm:$0xff]  }
  0x2a   : > { %964 = vmatpush1.bf16.msra.mxu1 %v3978_v32  ;;  %922 = vmatprep.subr.bf16.mxu0 %v3979_v33  ;;  %v4063_v24 = vld [vmem:[%s5811_s1 + $0x14c] ss:$16 sps:$4 sm:$0xff]   ;;  %v4061_v26 = vld [vmem:[%s5811_s1 + $0x148] ss:$16 sps:$4 sm:$0xff]  }
  0x2b   : > { %992 = vmatprep.subr.bf16.mxu1 %v3984_v34  ;;  %v4066_v25 = vld [vmem:[%s5811_s1 + $0x24c] ss:$16 sps:$4 sm:$0xff]   ;;  %v4064_v27 = vld [vmem:[%s5811_s1 + $0x248] ss:$16 sps:$4 sm:$0xff]  }
  0x2c   : > { %v4069_v28 = vld [vmem:[%s5811_s1 + $0x12c] ss:$16 sps:$4 sm:$0xff]   ;;  %v4067_v30 = vld [vmem:[%s5811_s1 + $0x128] ss:$16 sps:$4 sm:$0xff]  }
  0x2d   : > { %982 = vmatmul.mubr.bf16.vlgmr.msra.gmra.mxu1 %v4664_v35  ;;  %923 = vmatpush2.bf16.msra.mxu0 %v3985_v37  ;;  %v4072_v29 = vld [vmem:[%s5811_s1 + $0x22c] ss:$16 sps:$4 sm:$0xff]   ;;  %v4070_v31 = vld [vmem:[%s5811_s1 + $0x228] ss:$16 sps:$4 sm:$0xff]   ;;  %v4081_v37 = vld [vmem:[%s5813_s3 + $0xe4] ss:$16 sps:$4 sm:$0xff]  }
  0x2e   : > { %993 = vmatpush1.bf16.msra.mxu1 %v3982_v36  ;;  %924 = vmatprep.subr.bf16.mxu0 %v3986_v38  ;;  %v4075_v32 = vld [vmem:[%s5811_s1 + $0x10c] ss:$16 sps:$4 sm:$0xff]   ;;  %v4073_v34 = vld [vmem:[%s5811_s1 + $0x108] ss:$16 sps:$4 sm:$0xff]   ;;  %v4079_v38 = vld [vmem:[%s5813_s3 + $0xe0] ss:$16 sps:$4 sm:$0xff]  }
  0x2f   : > { %994 = vmatprep.subr.bf16.mxu1 %v3990_v39  ;;  %1024 = vmatprep.mubr.bf16.mxu1 %v4030_v51  ;;  %v4078_v33 = vld [vmem:[%s5811_s1 + $0x20c] ss:$16 sps:$4 sm:$0xff]   ;;  %v4076_v36 = vld [vmem:[%s5811_s1 + $0x208] ss:$16 sps:$4 sm:$0xff]   ;;  %v4084_v39 = vld [vmem:[%s5813_s3 + $0xc4] ss:$16 sps:$4 sm:$0xff]  }
  0x30   : > { %v4096_v51 = vld [vmem:[%s5813_s3 + $0x44] ss:$16 sps:$4 sm:$0xff]  }
  0x31   : > { %925 = vmatpush2.bf16.msra.mxu0 %v3991_v41  ;;  %v4087_v41 = vld [vmem:[%s5813_s3 + $0xa4] ss:$16 sps:$4 sm:$0xff]  }
  0x32   : > { %995 = vmatpush1.bf16.msra.mxu1 %v3988_v40  ;;  %926 = vmatprep.subr.bf16.mxu0 %v3992_v42  ;;  %v4082_v40 = vld [vmem:[%s5813_s3 + $0xc0] ss:$16 sps:$4 sm:$0xff]  }
  0x33   : > { %996 = vmatprep.subr.bf16.mxu1 %v3996_v43  ;;  %v4085_v42 = vld [vmem:[%s5813_s3 + $0xa0] ss:$16 sps:$4 sm:$0xff]  }
  0x34   : > { %v4106_v43 = vld [vmem:[%s5813_s3 + $0x2e0] ss:$16 sps:$4 sm:$0xff]  }
  0x35   : > { %927 = vmatpush2.bf16.msra.mxu0 %v3997_v45  ;;  %v4088_v45 = vld [vmem:[%s5813_s3 + $0x80] ss:$16 sps:$4 sm:$0xff]  }
  0x36   : > { %997 = vmatpush1.bf16.msra.mxu1 %v3994_v44  ;;  %928 = vmatprep.subr.bf16.mxu0 %v3998_v46  ;;  %v4108_v44 = vld [vmem:[%s5813_s3 + $0x2e4] ss:$16 sps:$4 sm:$0xff]  }
  0x37   : > { %998 = vmatprep.subr.bf16.mxu1 %v4002_v47  ;;  %v4114_v46 = vld [vmem:[%s5813_s3 + $0x2c4] ss:$16 sps:$4 sm:$0xff]  }
  0x38   : > { %v4093_v47 = vld [vmem:[%s5813_s3 + $0x64] ss:$16 sps:$4 sm:$0xff]  }
  0x39   : > { %929 = vmatpush2.bf16.msra.mxu0 %v4003_v49  ;;  %v4120_v49 = vld [vmem:[%s5813_s3 + $0x2a4] ss:$16 sps:$4 sm:$0xff]  }
  0x3a   : > { %999 = vmatpush1.bf16.msra.mxu1 %v4000_v48  ;;  %930 = vmatprep.subr.bf16.mxu0 %v4004_v50  ;;  %v4112_v48 = vld [vmem:[%s5813_s3 + $0x2c0] ss:$16 sps:$4 sm:$0xff]  }
  0x3b   : > { %1000 = vmatprep.subr.bf16.mxu1 %v4008_v52  ;;  %v4091_v50 = vld [vmem:[%s5813_s3 + $0x60] ss:$16 sps:$4 sm:$0xff]  }
  0x3c   : > { %v4118_v52 = vld [vmem:[%s5813_s3 + $0x2a0] ss:$16 sps:$4 sm:$0xff]  }
  0x3d   : > { %931 = vmatpush2.bf16.msra.mxu0 %v4009_v54  ;;  %v4094_v54 = vld [vmem:[%s5813_s3 + $0x40] ss:$16 sps:$4 sm:$0xff]  }
  0x3e   : > { %1001 = vmatpush1.bf16.msra.mxu1 %v4006_v53  ;;  %932 = vmatprep.subr.bf16.mxu0 %v4010_v55  ;;  %v4126_v53 = vld [vmem:[%s5813_s3 + $0x284] ss:$16 sps:$4 sm:$0xff]  }
  0x3f   : > { %1002 = vmatprep.subr.bf16.mxu1 %v4014_v56  ;;  %v4099_v55 = vld [vmem:[%s5813_s3 + $0x24] ss:$16 sps:$4 sm:$0xff]   ;;  %v4124_v56 = vld [vmem:[%s5813_s3 + $0x280] ss:$16 sps:$4 sm:$0xff]  }
  0x41   : > { %933 = vmatpush2.bf16.msra.mxu0 %v4015_v58  ;;  %v4097_v58 = vld [vmem:[%s5813_s3 + $0x20] ss:$16 sps:$4 sm:$0xff]  }
  0x42   : > { %1003 = vmatpush1.bf16.msra.mxu1 %v4012_v57  ;;  %934 = vmatprep.subr.bf16.mxu0 %v4016_v59  ;;  %v4132_v57 = vld [vmem:[%s5813_s3 + $0x264] ss:$16 sps:$4 sm:$0xff]  }
  0x43   : > { %1004 = vmatprep.subr.bf16.mxu1 %v4020_v60  ;;  %v4102_v59 = vld [vmem:[%s5813_s3 + $0x4] ss:$16 sps:$4 sm:$0xff]   ;;  %v4130_v60 = vld [vmem:[%s5813_s3 + $0x260] ss:$16 sps:$4 sm:$0xff]  }
  0x45   : > { %935 = vmatpush2.bf16.msra.mxu0 %v4021_v62  ;;  %v4105_v62 = vld [vmem:[%s5813_s3 + $0x1e4] ss:$16 sps:$4 sm:$0xff]  }
  0x46   : > { %1005 = vmatpush1.bf16.msra.mxu1 %v4018_v61  ;;  %936 = vmatprep.subr.bf16.mxu0 %v4022_v63  ;;  %v4100_v61 = vld [vmem:[%s5813_s3] ss:$16 sps:$4 sm:$0xff]  }
  0x47   : > { %1006 = vmatprep.subr.bf16.mxu1 %v4026_v0  ;;  %v4103_v63 = vld [vmem:[%s5813_s3 + $0x1e0] ss:$16 sps:$4 sm:$0xff]   ;;  %v4111_v0 = vld [vmem:[%s5813_s3 + $0x1c4] ss:$16 sps:$4 sm:$0xff]  }
  0x49   : > { %937 = vmatpush2.bf16.msra.mxu0 %v4027_v3  ;;  %v4138_v3 = vld [vmem:[%s5813_s3 + $0x244] ss:$16 sps:$4 sm:$0xff]  }
  0x4a   : > { %1007 = vmatpush1.bf16.msra.mxu1 %v4024_v1  ;;  %1035 = vmatprep.subr.bf16.mxu0 %v4036_v5  ;;  %v4109_v1 = vld [vmem:[%s5813_s3 + $0x1c0] ss:$16 sps:$4 sm:$0xff]  }
  0x4b   : > { %1008 = vmatprep.subr.bf16.mxu1 %v4033_v4  ;;  %v4117_v4 = vld [vmem:[%s5813_s3 + $0x1a4] ss:$16 sps:$4 sm:$0xff]   ;;  %v4136_v5 = vld [vmem:[%s5813_s3 + $0x240] ss:$16 sps:$4 sm:$0xff]  }
  0x4c   : > { %939 = vmatmul.mubr.bf16.vlgmr.msra.gmra.mxu0 %v4765_v6 }
  0x4d   : > { %1036 = vmatpush1.bf16.msra.mxu0 %v4034_v8  ;;  %1067 = vmatprep.mubr.bf16.mxu0 %v4503_v2  ;;  %v4049_v2 = vld [vmem:[%s5811_s1 + $0x188] ss:$16 sps:$4 sm:$0xff]   ;;  %v4123_v8 = vld [vmem:[%s5813_s3 + $0x184] ss:$16 sps:$4 sm:$0xff]  }
  0x4e   : > { %1009 = vmatpush2.bf16.msra.mxu1 %v4031_v7  ;;  %1037 = vmatprep.subr.bf16.mxu0 %v4042_v10  ;;  %v4144_v7 = vld [vmem:[%s5813_s3 + $0x224] ss:$16 sps:$4 sm:$0xff]   ;;  %v4121_v10 = vld [vmem:[%s5813_s3 + $0x180] ss:$16 sps:$4 sm:$0xff]  }
  0x4f   : > { %1010 = vmatprep.subr.bf16.mxu1 %v4039_v9  ;;  %v4142_v9 = vld [vmem:[%s5813_s3 + $0x220] ss:$16 sps:$4 sm:$0xff]  }
  0x51   : > { %1038 = vmatpush1.bf16.msra.mxu0 %v4040_v12  ;;  %v4129_v12 = vld [vmem:[%s5813_s3 + $0x164] ss:$16 sps:$4 sm:$0xff]  }
  0x52   : > { %1011 = vmatpush2.bf16.msra.mxu1 %v4037_v11  ;;  %1039 = vmatprep.subr.bf16.mxu0 %v4048_v14  ;;  %v4150_v11 = vld [vmem:[%s5813_s3 + $0x204] ss:$16 sps:$4 sm:$0xff]   ;;  %v4127_v14 = vld [vmem:[%s5813_s3 + $0x160] ss:$16 sps:$4 sm:$0xff]  }
  0x53   : > { %1012 = vmatprep.subr.bf16.mxu1 %v4045_v13  ;;  %v4148_v13 = vld [vmem:[%s5813_s3 + $0x200] ss:$16 sps:$4 sm:$0xff]  }
  0x55   : > { %1040 = vmatpush1.bf16.msra.mxu0 %v4046_v16  ;;  %v4135_v16 = vld [vmem:[%s5813_s3 + $0x144] ss:$16 sps:$4 sm:$0xff]  }
  0x56   : > { %1013 = vmatpush2.bf16.msra.mxu1 %v4043_v15  ;;  %1041 = vmatprep.subr.bf16.mxu0 %v4054_v18  ;;  %v4153_v15 = vld [vmem:[%s5813_s3 + $0x3e4] ss:$16 sps:$4 sm:$0xff]   ;;  %v4133_v18 = vld [vmem:[%s5813_s3 + $0x140] ss:$16 sps:$4 sm:$0xff]  }
  0x57   : > { %1014 = vmatprep.subr.bf16.mxu1 %v4051_v17  ;;  %v4151_v17 = vld [vmem:[%s5813_s3 + $0x3e0] ss:$16 sps:$4 sm:$0xff]  }
  0x59   : > { %1042 = vmatpush1.bf16.msra.mxu0 %v4052_v19  ;;  %v4159_v19 = vld [vmem:[%s5813_s3 + $0x3c4] ss:$16 sps:$4 sm:$0xff]  }
  0x5a   : > { %1015 = vmatpush2.bf16.msra.mxu1 %v4049_v2  ;;  %1043 = vmatprep.subr.bf16.mxu0 %v4060_v21  ;;  %v4157_v2 = vld [vmem:[%s5813_s3 + $0x3c0] ss:$16 sps:$4 sm:$0xff]  }
  0x5b   : > { %1016 = vmatprep.subr.bf16.mxu1 %v4057_v20  ;;  %v4141_v20 = vld [vmem:[%s5813_s3 + $0x124] ss:$16 sps:$4 sm:$0xff]   ;;  %v4139_v21 = vld [vmem:[%s5813_s3 + $0x120] ss:$16 sps:$4 sm:$0xff]  }
  0x5d   : > { %1044 = vmatpush1.bf16.msra.mxu0 %v4058_v23  ;;  %v4165_v23 = vld [vmem:[%s5813_s3 + $0x3a4] ss:$16 sps:$4 sm:$0xff]  }
  0x5e   : > { %1017 = vmatpush2.bf16.msra.mxu1 %v4055_v22  ;;  %1045 = vmatprep.subr.bf16.mxu0 %v4066_v25  ;;  %v4163_v22 = vld [vmem:[%s5813_s3 + $0x3a0] ss:$16 sps:$4 sm:$0xff]  }
  0x5f   : > { %1018 = vmatprep.subr.bf16.mxu1 %v4063_v24  ;;  %v4147_v24 = vld [vmem:[%s5813_s3 + $0x104] ss:$16 sps:$4 sm:$0xff]   ;;  %v4145_v25 = vld [vmem:[%s5813_s3 + $0x100] ss:$16 sps:$4 sm:$0xff]  }
  0x61   : > { %1046 = vmatpush1.bf16.msra.mxu0 %v4064_v27  ;;  %v4171_v27 = vld [vmem:[%s5813_s3 + $0x384] ss:$16 sps:$4 sm:$0xff]  }
  0x62   : > { %1019 = vmatpush2.bf16.msra.mxu1 %v4061_v26  ;;  %1047 = vmatprep.subr.bf16.mxu0 %v4072_v29  ;;  %v4169_v26 = vld [vmem:[%s5813_s3 + $0x380] ss:$16 sps:$4 sm:$0xff]  }
  0x63   : > { %1020 = vmatprep.subr.bf16.mxu1 %v4069_v28  ;;  %v4156_v28 = vld [vmem:[%s5813_s3 + $0xec] ss:$16 sps:$4 sm:$0xff]   ;;  %v4175_v29 = vld [vmem:[%s5813_s3 + $0x360] ss:$16 sps:$4 sm:$0xff]  }
  0x65   : > { %1048 = vmatpush1.bf16.msra.mxu0 %v4070_v31  ;;  %v4183_v31 = vld [vmem:[%s5813_s3 + $0x344] ss:$16 sps:$4 sm:$0xff]  }
  0x66   : > { %1021 = vmatpush2.bf16.msra.mxu1 %v4067_v30  ;;  %1049 = vmatprep.subr.bf16.mxu0 %v4078_v33  ;;  %v4177_v30 = vld [vmem:[%s5813_s3 + $0x364] ss:$16 sps:$4 sm:$0xff]  }
  0x67   : > { %1022 = vmatprep.subr.bf16.mxu1 %v4075_v32  ;;  %v4181_v32 = vld [vmem:[%s5813_s3 + $0x340] ss:$16 sps:$4 sm:$0xff]   ;;  %v4189_v33 = vld [vmem:[%s5813_s3 + $0x324] ss:$16 sps:$4 sm:$0xff]  }
  0x69   : > { %1050 = vmatpush1.bf16.msra.mxu0 %v4076_v36  ;;  %v4195_v36 = vld [vmem:[%s5813_s3 + $0x304] ss:$16 sps:$4 sm:$0xff]  }
  0x6a   : > { %1023 = vmatpush2.bf16.msra.mxu1 %v4073_v34  ;;  %1880 = vmatprep.subr.bf16.mxu0 %v4081_v37  ;;  %v4187_v34 = vld [vmem:[%s5813_s3 + $0x320] ss:$16 sps:$4 sm:$0xff]  }
  0x6b   : > { %1923 = vmatprep.subr.bf16.mxu1 %v4108_v44  ;;  %v4193_v37 = vld [vmem:[%s5813_s3 + $0x300] ss:$16 sps:$4 sm:$0xff]  }
  0x6c   : > { %1068 = vmatmul.mubr.bf16.vlgmr.msra.gmra.mxu0 %v4664_v35  ;;  %v4090_v35 = vld [vmem:[%s5813_s3 + $0x84] ss:$16 sps:$4 sm:$0xff]  }
  0x6d   : > { %1025 = vmatmul.mubr.bf16.vlgmr.msra.gmra.mxu1 %v4765_v6  ;;  %1881 = vmatpush1.bf16.msra.mxu0 %v4079_v38  ;;  %v4115_v6 = vld [vmem:[%s5813_s3 + $0x1a0] ss:$16 sps:$4 sm:$0xff]   ;;  %v4204_v38 = vld [vmem:[%s5813_s3 + $0x2ec] ss:$16 sps:$4 sm:$0xff]  }
  0x6e   : > { %1882 = vmatprep.subr.bf16.mxu0 %v4084_v39  ;;  %1924 = vmatpush1.bf16.msra.mxu1 %v4106_v43  ;;  %v390_v39 = vlaneseq  ;;  %v388_v43 = vld [vmem:[%s5812_s2] sm:$0xf] }
  0x6f   : > { %1925 = vmatprep.subr.bf16.mxu1 %v4114_v46 }
  0x71   : > { %1883 = vmatpush1.bf16.msra.mxu0 %v4082_v40  ;;  %v5059_v40 = vshrl.u32 %v390_v39, 7 }
  0x72   : > { %1884 = vmatprep.subr.bf16.mxu0 %v4087_v41  ;;  %1926 = vmatpush1.bf16.msra.mxu1 %v4112_v48 }
  0x73   : > { %1927 = vmatprep.subr.bf16.mxu1 %v4120_v49  ;;  %v5062_v41 = vsub.s32 1, %v5059_v40 }
  0x75   : > { %1885 = vmatpush1.bf16.msra.mxu0 %v4085_v42  ;;  %v397_v44 = vrot.slane %v388_v43, %v5062_v41 }
  0x76   : > { %1886 = vmatprep.subr.bf16.mxu0 %v4090_v35  ;;  %1928 = vmatpush1.bf16.msra.mxu1 %v4118_v52  ;;  %v5065_v35 = vsub.s32 0, %v5059_v40 }
  0x77   : > { %1929 = vmatprep.subr.bf16.mxu1 %v4126_v53 }
  0x78   : > { %v393_v46 = vrot.slane %v388_v43, %v5065_v35 }
  0x79   : > { %1887 = vmatpush1.bf16.msra.mxu0 %v4088_v45 }
  0x7a   : > { %1888 = vmatprep.subr.bf16.mxu0 %v4093_v47  ;;  %1930 = vmatpush1.bf16.msra.mxu1 %v4124_v56 }
  0x7b   : > { %1931 = vmatprep.subr.bf16.mxu1 %v4132_v57 }
  0x7d   : > { %1889 = vmatpush1.bf16.msra.mxu0 %v4091_v50 }
  0x7e   : > { %1890 = vmatprep.subr.bf16.mxu0 %v4096_v51  ;;  %1932 = vmatpush1.bf16.msra.mxu1 %v4130_v60 }
  0x7f   : > { %1933 = vmatprep.subr.bf16.mxu1 %v4138_v3  ;;  %v4154_v3 = vld [vmem:[%s5813_s3 + $0xe8] ss:$16 sps:$4 sm:$0xff]  }
  0x81   : > { %1891 = vmatpush1.bf16.msra.mxu0 %v4094_v54 }
  0x82   : > { %1892 = vmatprep.subr.bf16.mxu0 %v4099_v55  ;;  %1934 = vmatpush1.bf16.msra.mxu1 %v4136_v5  ;;  %v4162_v5 = vld [vmem:[%s5813_s3 + $0xcc] ss:$16 sps:$4 sm:$0xff]  }
  0x83   : > { %1935 = vmatprep.subr.bf16.mxu1 %v4144_v7  ;;  %v4168_v7 = vld [vmem:[%s5813_s3 + $0xac] ss:$16 sps:$4 sm:$0xff]  }
  0x85   : > { %1893 = vmatpush1.bf16.msra.mxu0 %v4097_v58 }
  0x86   : > { %1894 = vmatprep.subr.bf16.mxu0 %v4102_v59  ;;  %1936 = vmatpush1.bf16.msra.mxu1 %v4142_v9  ;;  %v4174_v9 = vld [vmem:[%s5813_s3 + $0x8c] ss:$16 sps:$4 sm:$0xff]  }
  0x87   : > { %1937 = vmatprep.subr.bf16.mxu1 %v4150_v11  ;;  %v4180_v11 = vld [vmem:[%s5813_s3 + $0x6c] ss:$16 sps:$4 sm:$0xff]  }
  0x89   : > { %1895 = vmatpush1.bf16.msra.mxu0 %v4100_v61 }
  0x8a   : > { %1896 = vmatprep.subr.bf16.mxu0 %v4105_v62  ;;  %1938 = vmatpush1.bf16.msra.mxu1 %v4148_v13  ;;  %v5103_v13 = vsub.s32 2, %v5059_v40 }
  0x8b   : > { %1939 = vmatprep.subr.bf16.mxu1 %v4153_v15  ;;  %v4186_v15 = vld [vmem:[%s5813_s3 + $0x4c] ss:$16 sps:$4 sm:$0xff]  }
  0x8d   : > { %1897 = vmatpush2.bf16.msra.mxu0 %v4103_v63 }
  0x8e   : > { %1898 = vmatprep.subr.bf16.mxu0 %v4111_v0  ;;  %1940 = vmatpush2.bf16.msra.mxu1 %v4151_v17  ;;  %v401_v17 = vrot.slane %v388_v43, %v5103_v13 }
  0x8f   : > { %1941 = vmatprep.subr.bf16.mxu1 %v4159_v19  ;;  %v4184_v19 = vld [vmem:[%s5813_s3 + $0x48] ss:$16 sps:$4 sm:$0xff]  }
  0x91   : > { %1899 = vmatpush2.bf16.msra.mxu0 %v4109_v1 }
  0x92   : > { %1900 = vmatprep.subr.bf16.mxu0 %v4117_v4  ;;  %1942 = vmatpush2.bf16.msra.mxu1 %v4157_v2 }
  0x93   : > { %1943 = vmatprep.subr.bf16.mxu1 %v4165_v23 }
  0x95   : > { %1901 = vmatpush2.bf16.msra.mxu0 %v4115_v6  ;;  %v4160_v6 = vld [vmem:[%s5813_s3 + $0xc8] ss:$16 sps:$4 sm:$0xff]  }
  0x96   : > { %1902 = vmatprep.subr.bf16.mxu0 %v4123_v8  ;;  %1944 = vmatpush2.bf16.msra.mxu1 %v4163_v22  ;;  %v4166_v8 = vld [vmem:[%s5813_s3 + $0xa8] ss:$16 sps:$4 sm:$0xff]   ;;  %v4192_v22 = vld [vmem:[%s5813_s3 + $0x2c] ss:$16 sps:$4 sm:$0xff]  }
  0x97   : > { %1945 = vmatprep.subr.bf16.mxu1 %v4171_v27 }
  0x99   : > { %1903 = vmatpush2.bf16.msra.mxu0 %v4121_v10  ;;  %v4172_v10 = vld [vmem:[%s5813_s3 + $0x88] ss:$16 sps:$4 sm:$0xff]  }
  0x9a   : > { %1904 = vmatprep.subr.bf16.mxu0 %v4129_v12  ;;  %1946 = vmatpush2.bf16.msra.mxu1 %v4169_v26  ;;  %v5100_v12 = vsub.s32 3, %v5059_v40 }
  0x9b   : > { %1947 = vmatprep.subr.bf16.mxu1 %v4177_v30  ;;  %v4198_v30 = vld [vmem:[%s5813_s3 + $0xc] ss:$16 sps:$4 sm:$0xff]  }
  0x9d   : > { %1905 = vmatpush2.bf16.msra.mxu0 %v4127_v14  ;;  %v4178_v14 = vld [vmem:[%s5813_s3 + $0x68] ss:$16 sps:$4 sm:$0xff]  }
  0x9e   : > { %1906 = vmatprep.subr.bf16.mxu0 %v4135_v16  ;;  %1948 = vmatpush2.bf16.msra.mxu1 %v4175_v29  ;;  %v405_v16 = vrot.slane %v388_v43, %v5100_v12 }
  0x9f   : > { %1949 = vmatprep.subr.bf16.mxu1 %v4183_v31 }
  0xa1   : > { %1907 = vmatpush2.bf16.msra.mxu0 %v4133_v18 }
  0xa2   : > { %1908 = vmatprep.subr.bf16.mxu0 %v4141_v20  ;;  %1950 = vmatpush2.bf16.msra.mxu1 %v4181_v32 }
  0xa3   : > { %1951 = vmatprep.subr.bf16.mxu1 %v4189_v33 }
  0xa5   : > { %1909 = vmatpush2.bf16.msra.mxu0 %v4139_v21 }
  0xa6   : > { %1910 = vmatprep.subr.bf16.mxu0 %v4147_v24  ;;  %1952 = vmatpush2.bf16.msra.mxu1 %v4187_v34 }
  0xa7   : > { %1953 = vmatprep.subr.bf16.mxu1 %v4195_v36 }
  0xa9   : > { %1911 = vmatpush2.bf16.msra.mxu0 %v4145_v25 }
  0xaa   : > { %1966 = vmatprep.subr.bf16.mxu0 %v4156_v28  ;;  %1954 = vmatpush2.bf16.msra.mxu1 %v4193_v37  ;;  %v4190_v28 = vld [vmem:[%s5813_s3 + $0x28] ss:$16 sps:$4 sm:$0xff]  }
  0xab   : > { %2009 = vmatprep.subr.bf16.mxu1 %v4204_v38  ;;  %v4196_v38 = vld [vmem:[%s5813_s3 + $0x8] ss:$16 sps:$4 sm:$0xff]  }
  0xed   : > { %v983_v42 = vpop.f32.mrf.mxu1 }
  0xef   : > { %v985_v45 = vpop.f32.mrf.mxu1 }
  0xf1   : > { %v987_v50 = vpop.f32.mrf.mxu1 }
  0xf3   : > { %v989_v58 = vpop.f32.mrf.mxu1 }
 0x10c   : > { %v940_v47 = vpop.f32.mrf.mxu0 }
 0x10d   : > { %v941_v51 = vadd.f32 %v940_v47, %v393_v46  ;;  %v4199_v47 = vld [vmem:[%s5813_s3 + $0x1e8] ss:$16 sps:$4 sm:$0xff]  }
 0x10e   : > { %v942_v48 = vpop.f32.mrf.mxu0 }
 0x10f   : > { %v943_v49 = vadd.f32 %v942_v48, %v397_v44  ;;  %v984_v59 = vadd.f32 %v983_v42, %v941_v51  ;;  %v4201_v42 = vld [vmem:[%s5813_s3 + $0x1ec] ss:$16 sps:$4 sm:$0xff]   ;;  %v4202_v48 = vld [vmem:[%s5813_s3 + $0x2e8] ss:$16 sps:$4 sm:$0xff]  }
 0x110   : > { %v944_v52 = vpop.f32.mrf.mxu0  ;;  %v4210_v51 = vld [vmem:[%s5813_s3 + $0x2cc] ss:$16 sps:$4 sm:$0xff]  }
 0x111   : > { %v945_v53 = vadd.f32 %v944_v52, %v393_v46  ;;  %v986_v55 = vadd.f32 %v985_v45, %v943_v49  ;;  %v1078_v0 = vmax.f32 %v984_v59, 0.0  ;;  %v4205_v52 = vld [vmem:[%s5813_s3 + $0x1c8] ss:$16 sps:$4 sm:$0xff]   ;;  %v4222_v59 = vld [vmem:[%s5813_s3 + $0x28c] ss:$16 sps:$4 sm:$0xff]  }
 0x112   : > { %v946_v54 = vpop.f32.mrf.mxu0 }
 0x113   : > { %v988_v56 = vadd.f32 %v987_v50, %v945_v53  ;;  %v947_v57 = vadd.f32 %v946_v54, %v397_v44  ;;  %v1079_v62 = vmax.f32 %v986_v55, 0.0  ;;  %v4207_v50 = vld [vmem:[%s5813_s3 + $0x1cc] ss:$16 sps:$4 sm:$0xff]   ;;  %v4208_v53 = vld [vmem:[%s5813_s3 + $0x2c8] ss:$16 sps:$4 sm:$0xff]  }
 0x114   : > { %v4213_v54 = vld [vmem:[%s5813_s3 + $0x1ac] ss:$16 sps:$4 sm:$0xff]  }
 0x115   : > { %v990_v60 = vadd.f32 %v989_v58, %v947_v57  ;;  %v1082_v61 = vmax.f32 %v988_v56, 0.0  ;;  %v4216_v55 = vld [vmem:[%s5813_s3 + $0x2ac] ss:$16 sps:$4 sm:$0xff]   ;;  %v4211_v56 = vld [vmem:[%s5813_s3 + $0x1a8] ss:$16 sps:$4 sm:$0xff]  }
 0x116   : > { %v4214_v57 = vld [vmem:[%s5813_s3 + $0x2a8] ss:$16 sps:$4 sm:$0xff]   ;;  %v4219_v58 = vld [vmem:[%s5813_s3 + $0x18c] ss:$16 sps:$4 sm:$0xff]  }
 0x117   : > { %v1083_v63 = vmax.f32 %v990_v60, 0.0  ;;  %v5075_v4 = vpack.c.bf16 %v1082_v61, %v1078_v0  ;;  %v4217_v60 = vld [vmem:[%s5813_s3 + $0x188] ss:$16 sps:$4 sm:$0xff]  }
 0x118   : > { %v4220_v61 = vld [vmem:[%s5813_s3 + $0x288] ss:$16 sps:$4 sm:$0xff]  }
 0x119   : > { %v1087_v1 = vpack.c.bf16 %v1083_v63, %v1079_v62  ;;  %v4225_v62 = vld [vmem:[%s5813_s3 + $0x16c] ss:$16 sps:$4 sm:$0xff]   ;;  %v4223_v0 = vld [vmem:[%s5813_s3 + $0x168] ss:$16 sps:$4 sm:$0xff]  }
 0x11a   : > { %v4228_v63 = vld [vmem:[%s5813_s3 + $0x26c] ss:$16 sps:$4 sm:$0xff]  }
 0x11b   : > { %1912 = vmatprep.mubr.bf16.mxu0 %v1087_v1 }
 0x11c   : > { %1913 = vmatmul.mubr.bf16.vlgmr.msra.gmra.mxu0 %v5075_v4 }
 0x11d   : > { %1967 = vmatpush1.bf16.msra.mxu0 %v4154_v3  ;;  %1998 = vmatprep.mubr.bf16.mxu0 %v1087_v1  ;;  %v4226_v1 = vld [vmem:[%s5813_s3 + $0x268] ss:$16 sps:$4 sm:$0xff]   ;;  %v4231_v3 = vld [vmem:[%s5813_s3 + $0x14c] ss:$16 sps:$4 sm:$0xff]  }
 0x11e   : > { %1968 = vmatprep.subr.bf16.mxu0 %v4162_v5  ;;  %v4234_v5 = vld [vmem:[%s5813_s3 + $0x24c] ss:$16 sps:$4 sm:$0xff]  }
 0x121   : > { %1969 = vmatpush1.bf16.msra.mxu0 %v4160_v6  ;;  %v4229_v6 = vld [vmem:[%s5813_s3 + $0x148] ss:$16 sps:$4 sm:$0xff]  }
 0x122   : > { %1970 = vmatprep.subr.bf16.mxu0 %v4168_v7  ;;  %v4232_v7 = vld [vmem:[%s5813_s3 + $0x248] ss:$16 sps:$4 sm:$0xff]  }
 0x125   : > { %1971 = vmatpush1.bf16.msra.mxu0 %v4166_v8  ;;  %v4237_v8 = vld [vmem:[%s5813_s3 + $0x12c] ss:$16 sps:$4 sm:$0xff]  }
 0x126   : > { %1972 = vmatprep.subr.bf16.mxu0 %v4174_v9  ;;  %v4240_v9 = vld [vmem:[%s5813_s3 + $0x22c] ss:$16 sps:$4 sm:$0xff]  }
 0x129   : > { %1973 = vmatpush1.bf16.msra.mxu0 %v4172_v10  ;;  %v4235_v10 = vld [vmem:[%s5813_s3 + $0x128] ss:$16 sps:$4 sm:$0xff]  }
 0x12a   : > { %1974 = vmatprep.subr.bf16.mxu0 %v4180_v11  ;;  %v4238_v11 = vld [vmem:[%s5813_s3 + $0x228] ss:$16 sps:$4 sm:$0xff]  }
 0x12c   : > { %v1069_v2 = vpop.f32.mrf.mxu0 }
 0x12d   : > { %v1026_v18 = vpop.f32.mrf.mxu1  ;;  %1975 = vmatpush1.bf16.msra.mxu0 %v4178_v14  ;;  %v4243_v14 = vld [vmem:[%s5813_s3 + $0x10c] ss:$16 sps:$4 sm:$0xff]  }
 0x12e   : > { %v1071_v21 = vpop.f32.mrf.mxu0  ;;  %1976 = vmatprep.subr.bf16.mxu0 %v4186_v15  ;;  %v1027_v24 = vadd.f32 %v1026_v18, %v401_v17  ;;  %v4246_v15 = vld [vmem:[%s5813_s3 + $0x20c] ss:$16 sps:$4 sm:$0xff]  }
 0x12f   : > { %v1028_v20 = vpop.f32.mrf.mxu1  ;;  %v4249_v18 = vld [vmem:[%s5813_s3 + $0x3ec] ss:$16 sps:$4 sm:$0xff]  }
 0x130   : > { %v1029_v23 = vadd.f32 %v1028_v20, %v405_v16  ;;  %v1073_v26 = vpop.f32.mrf.mxu0  ;;  %v1070_v34 = vadd.f32 %v1069_v2, %v1027_v24  ;;  %v4273_v2 = vld [vmem:[%s5815_s5 + $0x11c] ss:$20 sps:$4 sm:$0xff]   ;;  %v4271_v20 = vld [vmem:[%s5815_s5 + $0x118] ss:$20 sps:$4 sm:$0xff]  }
 0x131   : > { %v1030_v25 = vpop.f32.mrf.mxu1  ;;  %1977 = vmatpush1.bf16.msra.mxu0 %v4184_v19  ;;  %v4247_v19 = vld [vmem:[%s5813_s3 + $0x3e8] ss:$16 sps:$4 sm:$0xff]   ;;  %v4274_v24 = vld [vmem:[%s5815_s5 + $0xf0] ss:$20 sps:$4 sm:$0xff]  }
 0x132   : > { %v1031_v27 = vadd.f32 %v1030_v25, %v401_v17  ;;  %1978 = vmatprep.subr.bf16.mxu0 %v4192_v22  ;;  %v1072_v31 = vadd.f32 %v1071_v21, %v1029_v23  ;;  %v1075_v36 = vpop.f32.mrf.mxu0  ;;  %v1080_v45 = vmax.f32 %v1070_v34, 0.0  ;;  %v4244_v17 = vld [vmem:[%s5813_s3 + $0x208] ss:$16 sps:$4 sm:$0xff]   ;;  %v4252_v21 = vld [vmem:[%s5813_s3 + $0x3cc] ss:$16 sps:$4 sm:$0xff]  }
 0x133   : > { %v1032_v29 = vpop.f32.mrf.mxu1  ;;  %v4276_v22 = vld [vmem:[%s5815_s5 + $0xf4] ss:$20 sps:$4 sm:$0xff]   ;;  %v4255_v25 = vld [vmem:[%s5813_s3 + $0x3ac] ss:$16 sps:$4 sm:$0xff]  }
 0x134   : > { %v1074_v32 = vadd.f32 %v1073_v26, %v1031_v27  ;;  %v1033_v33 = vadd.f32 %v1032_v29, %v405_v16  ;;  %v1081_v43 = vmax.f32 %v1072_v31, 0.0  ;;  %v4241_v16 = vld [vmem:[%s5813_s3 + $0x108] ss:$16 sps:$4 sm:$0xff]   ;;  %v4280_v31 = vld [vmem:[%s5815_s5 + $0xa0] ss:$20 sps:$4 sm:$0xff]  }
 0x135   : > { %1979 = vmatpush1.bf16.msra.mxu0 %v4190_v28  ;;  %v4250_v23 = vld [vmem:[%s5813_s3 + $0x3c8] ss:$16 sps:$4 sm:$0xff]   ;;  %v4258_v28 = vld [vmem:[%s5813_s3 + $0x38c] ss:$16 sps:$4 sm:$0xff]  }
 0x136   : > { %v1076_v37 = vadd.f32 %v1075_v36, %v1033_v33  ;;  %v1084_v39 = vmax.f32 %v1074_v32, 0.0  ;;  %1980 = vmatprep.subr.bf16.mxu0 %v4198_v30  ;;  %v4253_v26 = vld [vmem:[%s5813_s3 + $0x3a8] ss:$16 sps:$4 sm:$0xff]   ;;  %v4261_v32 = vld [vmem:[%s5813_s3 + $0x36c] ss:$16 sps:$4 sm:$0xff]  }
 0x137   : > { %v4277_v27 = vld [vmem:[%s5815_s5 + $0xc8] ss:$20 sps:$4 sm:$0xff]   ;;  %v4282_v29 = vld [vmem:[%s5815_s5 + $0xa4] ss:$20 sps:$4 sm:$0xff]  }
 0x138   : > { %v1085_v44 = vmax.f32 %v1076_v37, 0.0  ;;  %v5137_v49 = vpack.c.bf16 %v1084_v39, %v1080_v45  ;;  %v4256_v30 = vld [vmem:[%s5813_s3 + $0x388] ss:$16 sps:$4 sm:$0xff]   ;;  %v4285_v33 = vld [vmem:[%s5815_s5 + $0x7c] ss:$20 sps:$4 sm:$0xff]  }
 0x139   : > { %1981 = vmatpush1.bf16.msra.mxu0 %v4196_v38  ;;  %v4259_v34 = vld [vmem:[%s5813_s3 + $0x368] ss:$16 sps:$4 sm:$0xff]   ;;  %v4264_v37 = vld [vmem:[%s5813_s3 + $0x34c] ss:$16 sps:$4 sm:$0xff]  }
 0x13a   : > { %v1089_v46 = vpack.c.bf16 %v1085_v44, %v1081_v43  ;;  %1982 = vmatprep.subr.bf16.mxu0 %v4201_v42  ;;  %v4283_v36 = vld [vmem:[%s5815_s5 + $0x78] ss:$20 sps:$4 sm:$0xff]   ;;  %v4288_v38 = vld [vmem:[%s5815_s5 + $0x54] ss:$20 sps:$4 sm:$0xff]   ;;  %v4286_v42 = vld [vmem:[%s5815_s5 + $0x50] ss:$20 sps:$4 sm:$0xff]  }
 0x13b   : > { %v4262_v39 = vld [vmem:[%s5813_s3 + $0x348] ss:$16 sps:$4 sm:$0xff]   ;;  %v4267_v43 = vld [vmem:[%s5813_s3 + $0x32c] ss:$16 sps:$4 sm:$0xff]  }
 0x13c   : > { %1955 = vmatprep.mubr.bf16.mxu1 %v1089_v46  ;;  %v4291_v44 = vld [vmem:[%s5815_s5 + $0x2c] ss:$20 sps:$4 sm:$0xff]   ;;  %v4265_v45 = vld [vmem:[%s5813_s3 + $0x328] ss:$16 sps:$4 sm:$0xff]  }
 0x13d   : > { %1956 = vmatmul.mubr.bf16.vlgmr.msra.gmra.mxu1 %v5137_v49  ;;  %1983 = vmatpush2.bf16.msra.mxu0 %v4199_v47  ;;  %v4270_v47 = vld [vmem:[%s5813_s3 + $0x30c] ss:$16 sps:$4 sm:$0xff]  }
 0x13e   : > { %2010 = vmatpush1.bf16.msra.mxu1 %v4202_v48  ;;  %2041 = vmatprep.mubr.bf16.mxu1 %v1089_v46  ;;  %v4289_v46 = vld [vmem:[%s5815_s5 + $0x28] ss:$20 sps:$4 sm:$0xff]   ;;  %v4294_v48 = vld [vmem:[%s5815_s5 + $0x4] ss:$20 sps:$4 sm:$0xff]  }
 0x13f   : > { %1984 = vmatprep.subr.bf16.mxu0 %v4207_v50  ;;  %2011 = vmatprep.subr.bf16.mxu1 %v4210_v51  ;;  %v4268_v50 = vld [vmem:[%s5813_s3 + $0x308] ss:$16 sps:$4 sm:$0xff]   ;;  %v4292_v51 = vld [vmem:[%s5815_s5] ss:$20 sps:$4 sm:$0xff]  }
 0x141   : > { %1985 = vmatpush2.bf16.msra.mxu0 %v4205_v52  ;;  %v4297_v52 = vld [vmem:[%s5815_s5 + $0x25c] ss:$20 sps:$4 sm:$0xff]  }
 0x142   : > { %2012 = vmatpush1.bf16.msra.mxu1 %v4208_v53  ;;  %1986 = vmatprep.subr.bf16.mxu0 %v4213_v54  ;;  %v4295_v53 = vld [vmem:[%s5815_s5 + $0x258] ss:$20 sps:$4 sm:$0xff]   ;;  %v4300_v54 = vld [vmem:[%s5815_s5 + $0x234] ss:$20 sps:$4 sm:$0xff]  }
 0x143   : > { %2013 = vmatprep.subr.bf16.mxu1 %v4216_v55  ;;  %v4298_v55 = vld [vmem:[%s5815_s5 + $0x230] ss:$20 sps:$4 sm:$0xff]  }
 0x145   : > { %1987 = vmatpush2.bf16.msra.mxu0 %v4211_v56  ;;  %v4303_v56 = vld [vmem:[%s5815_s5 + $0x20c] ss:$20 sps:$4 sm:$0xff]  }
 0x146   : > { %2014 = vmatpush1.bf16.msra.mxu1 %v4214_v57  ;;  %1988 = vmatprep.subr.bf16.mxu0 %v4219_v58  ;;  %v4301_v57 = vld [vmem:[%s5815_s5 + $0x208] ss:$20 sps:$4 sm:$0xff]   ;;  %v4304_v58 = vld [vmem:[%s5815_s5 + $0x1e0] ss:$20 sps:$4 sm:$0xff]  }
 0x147   : > { %2015 = vmatprep.subr.bf16.mxu1 %v4222_v59  ;;  %v4309_v59 = vld [vmem:[%s5815_s5 + $0x1bc] ss:$20 sps:$4 sm:$0xff]  }
 0x149   : > { %1989 = vmatpush2.bf16.msra.mxu0 %v4217_v60  ;;  %v4319_v60 = vld [vmem:[%s5815_s5 + $0x398] ss:$20 sps:$4 sm:$0xff]  }
 0x14a   : > { %2016 = vmatpush1.bf16.msra.mxu1 %v4220_v61  ;;  %1990 = vmatprep.subr.bf16.mxu0 %v4225_v62  ;;  %v4321_v61 = vld [vmem:[%s5815_s5 + $0x39c] ss:$20 sps:$4 sm:$0xff]   ;;  %v4307_v62 = vld [vmem:[%s5815_s5 + $0x1b8] ss:$20 sps:$4 sm:$0xff]  }
 0x14b   : > { %2017 = vmatprep.subr.bf16.mxu1 %v4228_v63  ;;  %v4312_v63 = vld [vmem:[%s5815_s5 + $0x194] ss:$20 sps:$4 sm:$0xff]  }
 0x14d   : > { %1991 = vmatpush2.bf16.msra.mxu0 %v4223_v0  ;;  %v4325_v0 = vld [vmem:[%s5815_s5 + $0x370] ss:$20 sps:$4 sm:$0xff]  }
 0x14e   : > { %2018 = vmatpush1.bf16.msra.mxu1 %v4226_v1  ;;  %1992 = vmatprep.subr.bf16.mxu0 %v4231_v3  ;;  %v4327_v1 = vld [vmem:[%s5815_s5 + $0x374] ss:$20 sps:$4 sm:$0xff]   ;;  %v4310_v3 = vld [vmem:[%s5815_s5 + $0x190] ss:$20 sps:$4 sm:$0xff]  }
 0x14f   : > { %2019 = vmatprep.subr.bf16.mxu1 %v4234_v5  ;;  %v4315_v5 = vld [vmem:[%s5815_s5 + $0x16c] ss:$20 sps:$4 sm:$0xff]  }
 0x151   : > { %1993 = vmatpush2.bf16.msra.mxu0 %v4229_v6  ;;  %v4331_v6 = vld [vmem:[%s5815_s5 + $0x348] ss:$20 sps:$4 sm:$0xff]  }
 0x152   : > { %2020 = vmatpush1.bf16.msra.mxu1 %v4232_v7  ;;  %1994 = vmatprep.subr.bf16.mxu0 %v4237_v8  ;;  %v4333_v7 = vld [vmem:[%s5815_s5 + $0x34c] ss:$20 sps:$4 sm:$0xff]   ;;  %v4313_v8 = vld [vmem:[%s5815_s5 + $0x168] ss:$20 sps:$4 sm:$0xff]  }
 0x153   : > { %2021 = vmatprep.subr.bf16.mxu1 %v4240_v9  ;;  %v4318_v9 = vld [vmem:[%s5815_s5 + $0x144] ss:$20 sps:$4 sm:$0xff]  }
 0x155   : > { %1995 = vmatpush2.bf16.msra.mxu0 %v4235_v10  ;;  %v4337_v10 = vld [vmem:[%s5815_s5 + $0x320] ss:$20 sps:$4 sm:$0xff]  }
 0x156   : > { %2022 = vmatpush1.bf16.msra.mxu1 %v4238_v11  ;;  %1996 = vmatprep.subr.bf16.mxu0 %v4243_v14  ;;  %v4339_v11 = vld [vmem:[%s5815_s5 + $0x324] ss:$20 sps:$4 sm:$0xff]   ;;  %v4316_v14 = vld [vmem:[%s5815_s5 + $0x140] ss:$20 sps:$4 sm:$0xff]  }
 0x157   : > { %2023 = vmatprep.subr.bf16.mxu1 %v4246_v15  ;;  %v4324_v15 = vld [vmem:[%s5815_s5 + $0x124] ss:$20 sps:$4 sm:$0xff]  }
 0x159   : > { %1997 = vmatpush2.bf16.msra.mxu0 %v4241_v16  ;;  %v4343_v16 = vld [vmem:[%s5815_s5 + $0x2f8] ss:$20 sps:$4 sm:$0xff]  }
 0x15a   : > { %2024 = vmatpush1.bf16.msra.mxu1 %v4244_v17  ;;  %3115 = vmatprep.subr.bf16.mxu0 %v4273_v2  ;;  %v4345_v17 = vld [vmem:[%s5815_s5 + $0x2fc] ss:$20 sps:$4 sm:$0xff]  }
 0x15b   : > { %2025 = vmatprep.subr.bf16.mxu1 %v4249_v18  ;;  %v4351_v18 = vld [vmem:[%s5815_s5 + $0x2d4] ss:$20 sps:$4 sm:$0xff]   ;;  %v4349_v2 = vld [vmem:[%s5815_s5 + $0x2d0] ss:$20 sps:$4 sm:$0xff]  }
 0x15c   : > { %1999 = vmatmul.mubr.bf16.vlgmr.msra.gmra.mxu0 %v5075_v4  ;;  %v4279_v4 = vld [vmem:[%s5815_s5 + $0xcc] ss:$20 sps:$4 sm:$0xff]  }
 0x15d   : > { %3116 = vmatpush1.bf16.msra.mxu0 %v4271_v20  ;;  %v4355_v20 = vld [vmem:[%s5815_s5 + $0x2a8] ss:$20 sps:$4 sm:$0xff]  }
 0x15e   : > { %2026 = vmatpush2.bf16.msra.mxu1 %v4247_v19  ;;  %3117 = vmatprep.subr.bf16.mxu0 %v4276_v22  ;;  %v4357_v19 = vld [vmem:[%s5815_s5 + $0x2ac] ss:$20 sps:$4 sm:$0xff]   ;;  %v4363_v22 = vld [vmem:[%s5815_s5 + $0x284] ss:$20 sps:$4 sm:$0xff]  }
 0x15f   : > { %2027 = vmatprep.subr.bf16.mxu1 %v4252_v21  ;;  %v4361_v21 = vld [vmem:[%s5815_s5 + $0x280] ss:$20 sps:$4 sm:$0xff]  }
 0x161   : > { %3118 = vmatpush1.bf16.msra.mxu0 %v4274_v24  ;;  %v4369_v24 = vld [vmem:[%s5815_s5 + $0x4dc] ss:$20 sps:$4 sm:$0xff]  }
 0x162   : > { %2028 = vmatpush2.bf16.msra.mxu1 %v4250_v23  ;;  %3119 = vmatprep.subr.bf16.mxu0 %v4279_v4  ;;  %v4367_v23 = vld [vmem:[%s5815_s5 + $0x4d8] ss:$20 sps:$4 sm:$0xff]   ;;  %v4375_v4 = vld [vmem:[%s5815_s5 + $0x4b4] ss:$20 sps:$4 sm:$0xff]  }
 0x163   : > { %2029 = vmatprep.subr.bf16.mxu1 %v4255_v25  ;;  %v4373_v25 = vld [vmem:[%s5815_s5 + $0x4b0] ss:$20 sps:$4 sm:$0xff]  }
 0x165   : > { %3120 = vmatpush1.bf16.msra.mxu0 %v4277_v27  ;;  %v4381_v27 = vld [vmem:[%s5815_s5 + $0x48c] ss:$20 sps:$4 sm:$0xff]  }
 0x166   : > { %2030 = vmatpush2.bf16.msra.mxu1 %v4253_v26  ;;  %3121 = vmatprep.subr.bf16.mxu0 %v4282_v29  ;;  %v4379_v26 = vld [vmem:[%s5815_s5 + $0x488] ss:$20 sps:$4 sm:$0xff]   ;;  %v4387_v29 = vld [vmem:[%s5815_s5 + $0x464] ss:$20 sps:$4 sm:$0xff]  }
 0x167   : > { %2031 = vmatprep.subr.bf16.mxu1 %v4258_v28  ;;  %v4385_v28 = vld [vmem:[%s5815_s5 + $0x460] ss:$20 sps:$4 sm:$0xff]  }
 0x169   : > { %3122 = vmatpush1.bf16.msra.mxu0 %v4280_v31  ;;  %v4393_v31 = vld [vmem:[%s5815_s5 + $0x43c] ss:$20 sps:$4 sm:$0xff]  }
 0x16a   : > { %2032 = vmatpush2.bf16.msra.mxu1 %v4256_v30  ;;  %3123 = vmatprep.subr.bf16.mxu0 %v4285_v33  ;;  %v4391_v30 = vld [vmem:[%s5815_s5 + $0x438] ss:$20 sps:$4 sm:$0xff]   ;;  %v4397_v33 = vld [vmem:[%s5815_s5 + $0x410] ss:$20 sps:$4 sm:$0xff]  }
 0x16b   : > { %2033 = vmatprep.subr.bf16.mxu1 %v4261_v32  ;;  %v4399_v32 = vld [vmem:[%s5815_s5 + $0x414] ss:$20 sps:$4 sm:$0xff]  }
 0x16d   : > { %3124 = vmatpush1.bf16.msra.mxu0 %v4283_v36  ;;  %v4403_v36 = vld [vmem:[%s5815_s5 + $0x3e8] ss:$20 sps:$4 sm:$0xff]  }
 0x16e   : > { %2034 = vmatpush2.bf16.msra.mxu1 %v4259_v34  ;;  %3125 = vmatprep.subr.bf16.mxu0 %v4288_v38  ;;  %v4405_v34 = vld [vmem:[%s5815_s5 + $0x3ec] ss:$20 sps:$4 sm:$0xff]  }
 0x16f   : > { %2035 = vmatprep.subr.bf16.mxu1 %v4264_v37  ;;  %v4411_v37 = vld [vmem:[%s5815_s5 + $0x3c4] ss:$20 sps:$4 sm:$0xff]   ;;  %v4409_v38 = vld [vmem:[%s5815_s5 + $0x3c0] ss:$20 sps:$4 sm:$0xff]  }
 0x171   : > { %3126 = vmatpush1.bf16.msra.mxu0 %v4286_v42 }
 0x172   : > { %2036 = vmatpush2.bf16.msra.mxu1 %v4262_v39  ;;  %3127 = vmatprep.subr.bf16.mxu0 %v4291_v44  ;;  %v4417_v39 = vld [vmem:[%s5815_s5 + $0x3a4] ss:$20 sps:$4 sm:$0xff]   ;;  %v5475_v44 = vld [vmem:[%s5814_s4] sm:$0xf] }
 0x173   : > { %2037 = vmatprep.subr.bf16.mxu1 %v4267_v43 }
 0x175   : > { %3128 = vmatpush1.bf16.msra.mxu0 %v4289_v46  ;;  %v1227_v46 = vrot.slane %v5475_v44, %v5062_v41 }
 0x176   : > { %2038 = vmatpush2.bf16.msra.mxu1 %v4265_v45  ;;  %3129 = vmatprep.subr.bf16.mxu0 %v4294_v48 }
 0x177   : > { %2039 = vmatprep.subr.bf16.mxu1 %v4270_v47  ;;  %v1223_v47 = vrot.slane %v5475_v44, %v5065_v35 }
 0x179   : > { %3130 = vmatpush1.bf16.msra.mxu0 %v4292_v51 }
 0x17a   : > { %2040 = vmatpush2.bf16.msra.mxu1 %v4268_v50  ;;  %3131 = vmatprep.subr.bf16.mxu0 %v4297_v52 }
 0x17b   : > { %3158 = vmatprep.subr.bf16.mxu1 %v4321_v61 }
 0x17d   : > { %2042 = vmatmul.mubr.bf16.vlgmr.msra.gmra.mxu1 %v5137_v49  ;;  %3132 = vmatpush2.bf16.msra.mxu0 %v4295_v53  ;;  %v4306_v49 = vld [vmem:[%s5815_s5 + $0x1e4] ss:$20 sps:$4 sm:$0xff]  }
 0x17e   : > { %3133 = vmatprep.subr.bf16.mxu0 %v4300_v54  ;;  %3159 = vmatpush1.bf16.msra.mxu1 %v4319_v60 }
 0x17f   : > { %3160 = vmatprep.subr.bf16.mxu1 %v4327_v1 }
 0x181   : > { %3134 = vmatpush2.bf16.msra.mxu0 %v4298_v55 }
 0x182   : > { %3135 = vmatprep.subr.bf16.mxu0 %v4303_v56  ;;  %3161 = vmatpush1.bf16.msra.mxu1 %v4325_v0 }
 0x183   : > { %3162 = vmatprep.subr.bf16.mxu1 %v4333_v7  ;;  %v4328_v7 = vld [vmem:[%s5815_s5 + $0xf8] ss:$20 sps:$4 sm:$0xff]  }
 0x185   : > { %3136 = vmatpush2.bf16.msra.mxu0 %v4301_v57 }
 0x186   : > { %3137 = vmatprep.subr.bf16.mxu0 %v4306_v49  ;;  %3163 = vmatpush1.bf16.msra.mxu1 %v4331_v6  ;;  %v4330_v6 = vld [vmem:[%s5815_s5 + $0xfc] ss:$20 sps:$4 sm:$0xff]  }
 0x187   : > { %3164 = vmatprep.subr.bf16.mxu1 %v4339_v11  ;;  %v4340_v11 = vld [vmem:[%s5815_s5 + $0xa8] ss:$20 sps:$4 sm:$0xff]  }
 0x189   : > { %3138 = vmatpush2.bf16.msra.mxu0 %v4304_v58 }
 0x18a   : > { %3139 = vmatprep.subr.bf16.mxu0 %v4309_v59  ;;  %3165 = vmatpush1.bf16.msra.mxu1 %v4337_v10  ;;  %v4342_v10 = vld [vmem:[%s5815_s5 + $0xac] ss:$20 sps:$4 sm:$0xff]  }
 0x18b   : > { %3166 = vmatprep.subr.bf16.mxu1 %v4345_v17  ;;  %v4352_v17 = vld [vmem:[%s5815_s5 + $0x58] ss:$20 sps:$4 sm:$0xff]  }
 0x18d   : > { %3140 = vmatpush2.bf16.msra.mxu0 %v4307_v62 }
 0x18e   : > { %3141 = vmatprep.subr.bf16.mxu0 %v4312_v63  ;;  %3167 = vmatpush1.bf16.msra.mxu1 %v4343_v16  ;;  %v4354_v16 = vld [vmem:[%s5815_s5 + $0x5c] ss:$20 sps:$4 sm:$0xff]  }
 0x18f   : > { %3168 = vmatprep.subr.bf16.mxu1 %v4351_v18  ;;  %v4360_v18 = vld [vmem:[%s5815_s5 + $0x34] ss:$20 sps:$4 sm:$0xff]  }
 0x191   : > { %3142 = vmatpush2.bf16.msra.mxu0 %v4310_v3  ;;  %v4322_v3 = vld [vmem:[%s5815_s5 + $0x120] ss:$20 sps:$4 sm:$0xff]  }
 0x192   : > { %3143 = vmatprep.subr.bf16.mxu0 %v4315_v5  ;;  %3169 = vmatpush1.bf16.msra.mxu1 %v4349_v2  ;;  %v4358_v2 = vld [vmem:[%s5815_s5 + $0x30] ss:$20 sps:$4 sm:$0xff]  }
 0x193   : > { %3170 = vmatprep.subr.bf16.mxu1 %v4357_v19  ;;  %v4366_v19 = vld [vmem:[%s5815_s5 + $0xc] ss:$20 sps:$4 sm:$0xff]  }
 0x195   : > { %3144 = vmatpush2.bf16.msra.mxu0 %v4313_v8  ;;  %v4336_v8 = vld [vmem:[%s5815_s5 + $0xd4] ss:$20 sps:$4 sm:$0xff]  }
 0x196   : > { %3145 = vmatprep.subr.bf16.mxu0 %v4318_v9  ;;  %3171 = vmatpush1.bf16.msra.mxu1 %v4355_v20  ;;  %v4334_v9 = vld [vmem:[%s5815_s5 + $0xd0] ss:$20 sps:$4 sm:$0xff]   ;;  %v4364_v20 = vld [vmem:[%s5815_s5 + $0x8] ss:$20 sps:$4 sm:$0xff]  }
 0x197   : > { %3172 = vmatprep.subr.bf16.mxu1 %v4363_v22  ;;  %v4370_v22 = vld [vmem:[%s5815_s5 + $0x260] ss:$20 sps:$4 sm:$0xff]  }
 0x199   : > { %3146 = vmatpush2.bf16.msra.mxu0 %v4316_v14  ;;  %v4348_v14 = vld [vmem:[%s5815_s5 + $0x84] ss:$20 sps:$4 sm:$0xff]  }
 0x19a   : > { %3201 = vmatprep.subr.bf16.mxu0 %v4324_v15  ;;  %3173 = vmatpush1.bf16.msra.mxu1 %v4361_v21  ;;  %v4346_v15 = vld [vmem:[%s5815_s5 + $0x80] ss:$20 sps:$4 sm:$0xff]   ;;  %v4372_v21 = vld [vmem:[%s5815_s5 + $0x264] ss:$20 sps:$4 sm:$0xff]  }
 0x19b   : > { %3174 = vmatprep.subr.bf16.mxu1 %v4369_v24  ;;  %v4376_v24 = vld [vmem:[%s5815_s5 + $0x238] ss:$20 sps:$4 sm:$0xff]  }
 0x19e   : > { %3175 = vmatpush2.bf16.msra.mxu1 %v4367_v23  ;;  %v4378_v23 = vld [vmem:[%s5815_s5 + $0x23c] ss:$20 sps:$4 sm:$0xff]  }
 0x19f   : > { %3176 = vmatprep.subr.bf16.mxu1 %v4375_v4  ;;  %v4382_v4 = vld [vmem:[%s5815_s5 + $0x210] ss:$20 sps:$4 sm:$0xff]  }
 0x1a2   : > { %3177 = vmatpush2.bf16.msra.mxu1 %v4373_v25  ;;  %v4384_v25 = vld [vmem:[%s5815_s5 + $0x214] ss:$20 sps:$4 sm:$0xff]  }
 0x1a3   : > { %3178 = vmatprep.subr.bf16.mxu1 %v4381_v27 }
 0x1a6   : > { %3179 = vmatpush2.bf16.msra.mxu1 %v4379_v26  ;;  %v4390_v26 = vld [vmem:[%s5815_s5 + $0x1ec] ss:$20 sps:$4 sm:$0xff]  }
 0x1a7   : > { %3180 = vmatprep.subr.bf16.mxu1 %v4387_v29  ;;  %v4396_v29 = vld [vmem:[%s5815_s5 + $0x1c4] ss:$20 sps:$4 sm:$0xff]  }
 0x1aa   : > { %3181 = vmatpush2.bf16.msra.mxu1 %v4385_v28  ;;  %v4388_v28 = vld [vmem:[%s5815_s5 + $0x1e8] ss:$20 sps:$4 sm:$0xff]  }
 0x1ab   : > { %3182 = vmatprep.subr.bf16.mxu1 %v4393_v31  ;;  %v4394_v31 = vld [vmem:[%s5815_s5 + $0x1c0] ss:$20 sps:$4 sm:$0xff]  }
 0x1ae   : > { %3183 = vmatpush2.bf16.msra.mxu1 %v4391_v30 }
 0x1af   : > { %3184 = vmatprep.subr.bf16.mxu1 %v4399_v32  ;;  %v4402_v32 = vld [vmem:[%s5815_s5 + $0x19c] ss:$20 sps:$4 sm:$0xff]  }
 0x1b2   : > { %3185 = vmatpush2.bf16.msra.mxu1 %v4397_v33 }
 0x1b3   : > { %3186 = vmatprep.subr.bf16.mxu1 %v4405_v34  ;;  %v1235_v34 = vrot.slane %v5475_v44, %v5100_v12 }
 0x1b6   : > { %3187 = vmatpush2.bf16.msra.mxu1 %v4403_v36  ;;  %v4400_v36 = vld [vmem:[%s5815_s5 + $0x198] ss:$20 sps:$4 sm:$0xff]  }
 0x1b7   : > { %3188 = vmatprep.subr.bf16.mxu1 %v4411_v37  ;;  %v1231_v37 = vrot.slane %v5475_v44, %v5103_v13  ;;  %v4414_v44 = vld [vmem:[%s5815_s5 + $0x14c] ss:$20 sps:$4 sm:$0xff]  }
 0x1ba   : > { %3189 = vmatpush2.bf16.msra.mxu1 %v4409_v38 }
 0x1bb   : > { %3244 = vmatprep.subr.bf16.mxu1 %v4417_v39  ;;  %v4408_v39 = vld [vmem:[%s5815_s5 + $0x174] ss:$20 sps:$4 sm:$0xff]  }
 0x1dc   : > { %v1914_v42 = vpop.f32.mrf.mxu0 }
 0x1dd   : > { %v1915_v54 = vadd.f32 %v1914_v42, %v1223_v47 }
 0x1de   : > { %v1916_v43 = vpop.f32.mrf.mxu0 }
 0x1df   : > { %v1917_v52 = vadd.f32 %v1916_v43, %v1227_v46 }
 0x1e0   : > { %v1918_v45 = vpop.f32.mrf.mxu0 }
 0x1e1   : > { %v1919_v53 = vadd.f32 %v1918_v45, %v1223_v47  ;;  %v4406_v47 = vld [vmem:[%s5815_s5 + $0x170] ss:$20 sps:$4 sm:$0xff]  }
 0x1e2   : > { %v1920_v50 = vpop.f32.mrf.mxu0 }
 0x1e3   : > { %v1921_v56 = vadd.f32 %v1920_v50, %v1227_v46 }
 0x1fd   : > { %v1957_v48 = vpop.f32.mrf.mxu1 }
 0x1fe   : > { %v1958_v58 = vadd.f32 %v1957_v48, %v1915_v54 }
 0x1ff   : > { %v1959_v51 = vpop.f32.mrf.mxu1 }
 0x200   : > { %v1960_v57 = vadd.f32 %v1959_v51, %v1917_v52  ;;  %v2052_v0 = vmax.f32 %v1958_v58, 0.0  ;;  %v4418_v58 = vld [vmem:[%s5815_s5 + $0x268] ss:$20 sps:$4 sm:$0xff]  }
 0x201   : > { %v1961_v55 = vpop.f32.mrf.mxu1 }
 0x202   : > { %v1962_v49 = vadd.f32 %v1961_v55, %v1919_v53  ;;  %v2053_v62 = vmax.f32 %v1960_v57, 0.0  ;;  %v4412_v57 = vld [vmem:[%s5815_s5 + $0x148] ss:$20 sps:$4 sm:$0xff]  }
 0x203   : > { %v1963_v59 = vpop.f32.mrf.mxu1 }
 0x204   : > { %v1964_v60 = vadd.f32 %v1963_v59, %v1921_v56  ;;  %v2056_v61 = vmax.f32 %v1962_v49, 0.0 }
 0x206   : > { %v2057_v63 = vmax.f32 %v1964_v60, 0.0  ;;  %v5486_v5 = vpack.c.bf16 %v2056_v61, %v2052_v0 }
 0x208   : > { %v5481_v1 = vpack.c.bf16 %v2057_v63, %v2053_v62  ;;  %v4415_v63 = vld [vmem:[%s5815_s5 + $0x3a0] ss:$20 sps:$4 sm:$0xff]  }
 0x20a   : > { %3147 = vmatprep.mubr.bf16.mxu0 %v5481_v1 }
 0x20b   : > { %3148 = vmatmul.mubr.bf16.vlgmr.msra.gmra.mxu0 %v5486_v5 }
 0x20c   : > { %3202 = vmatpush1.bf16.msra.mxu0 %v4322_v3  ;;  %3233 = vmatprep.mubr.bf16.mxu0 %v5481_v1  ;;  %v4419_v3 = vld [vmem:[%s5815_s5 + $0x128] ss:$20 sps:$4 sm:$0xff]  }
 0x20d   : > { %3203 = vmatprep.subr.bf16.mxu0 %v4330_v6  ;;  %v4422_v6 = vld [vmem:[%s5815_s5 + $0x37c] ss:$20 sps:$4 sm:$0xff]  }
 0x210   : > { %3204 = vmatpush1.bf16.msra.mxu0 %v4328_v7  ;;  %v4423_v7 = vld [vmem:[%s5815_s5 + $0x240] ss:$20 sps:$4 sm:$0xff]  }
 0x211   : > { %3205 = vmatprep.subr.bf16.mxu0 %v4336_v8  ;;  %v4420_v8 = vld [vmem:[%s5815_s5 + $0x378] ss:$20 sps:$4 sm:$0xff]  }
 0x214   : > { %3206 = vmatpush1.bf16.msra.mxu0 %v4334_v9  ;;  %v4424_v9 = vld [vmem:[%s5815_s5 + $0x100] ss:$20 sps:$4 sm:$0xff]  }
 0x215   : > { %3207 = vmatprep.subr.bf16.mxu0 %v4342_v10  ;;  %v4427_v10 = vld [vmem:[%s5815_s5 + $0x354] ss:$20 sps:$4 sm:$0xff]  }
 0x218   : > { %3208 = vmatpush1.bf16.msra.mxu0 %v4340_v11  ;;  %v4428_v11 = vld [vmem:[%s5815_s5 + $0x218] ss:$20 sps:$4 sm:$0xff]  }
 0x219   : > { %3209 = vmatprep.subr.bf16.mxu0 %v4348_v14  ;;  %v4425_v14 = vld [vmem:[%s5815_s5 + $0x350] ss:$20 sps:$4 sm:$0xff]  }
 0x21c   : > { %3210 = vmatpush1.bf16.msra.mxu0 %v4346_v15  ;;  %v2000_v27 = vpop.f32.mrf.mxu0  ;;  %v4432_v15 = vld [vmem:[%s5815_s5 + $0x32c] ss:$20 sps:$4 sm:$0xff]  }
 0x21d   : > { %3211 = vmatprep.subr.bf16.mxu0 %v4354_v16  ;;  %v2001_v48 = vadd.f32 %v2000_v27, %v1231_v37  ;;  %v4433_v16 = vld [vmem:[%s5815_s5 + $0x1f0] ss:$20 sps:$4 sm:$0xff]  }
 0x21e   : > { %v2002_v30 = vpop.f32.mrf.mxu0  ;;  %v4445_v27 = vld [vmem:[%s5815_s5 + $0x2b0] ss:$20 sps:$4 sm:$0xff]  }
 0x21f   : > { %v2003_v45 = vadd.f32 %v2002_v30, %v1235_v34  ;;  %v4453_v30 = vld [vmem:[%s5815_s5 + $0x150] ss:$20 sps:$4 sm:$0xff]  }
 0x220   : > { %3212 = vmatpush1.bf16.msra.mxu0 %v4352_v17  ;;  %v2004_v33 = vpop.f32.mrf.mxu0  ;;  %v4430_v17 = vld [vmem:[%s5815_s5 + $0x328] ss:$20 sps:$4 sm:$0xff]  }
 0x221   : > { %3213 = vmatprep.subr.bf16.mxu0 %v4360_v18  ;;  %v2005_v46 = vadd.f32 %v2004_v33, %v1231_v37  ;;  %v4434_v18 = vld [vmem:[%s5815_s5 + $0xb0] ss:$20 sps:$4 sm:$0xff]   ;;  %v4458_v37 = vld [vmem:[%s5815_s5 + $0x4b8] ss:$20 sps:$4 sm:$0xff]  }
 0x222   : > { %v2006_v42 = vpop.f32.mrf.mxu0  ;;  %v4457_v33 = vld [vmem:[%s5815_s5 + $0x4e4] ss:$20 sps:$4 sm:$0xff]  }
 0x223   : > { %v2007_v51 = vadd.f32 %v2006_v42, %v1235_v34  ;;  %v4455_v34 = vld [vmem:[%s5815_s5 + $0x4e0] ss:$20 sps:$4 sm:$0xff]  }
 0x224   : > { %3214 = vmatpush1.bf16.msra.mxu0 %v4358_v2  ;;  %v4437_v2 = vld [vmem:[%s5815_s5 + $0x304] ss:$20 sps:$4 sm:$0xff]   ;;  %v4466_v42 = vld [vmem:[%s5815_s5 + $0x46c] ss:$20 sps:$4 sm:$0xff]  }
 0x225   : > { %3215 = vmatprep.subr.bf16.mxu0 %v4366_v19  ;;  %v4438_v19 = vld [vmem:[%s5815_s5 + $0x1c8] ss:$20 sps:$4 sm:$0xff]  }
 0x228   : > { %3216 = vmatpush1.bf16.msra.mxu0 %v4364_v20  ;;  %v4435_v20 = vld [vmem:[%s5815_s5 + $0x300] ss:$20 sps:$4 sm:$0xff]  }
 0x229   : > { %3217 = vmatprep.subr.bf16.mxu0 %v4372_v21  ;;  %v4439_v21 = vld [vmem:[%s5815_s5 + $0x88] ss:$20 sps:$4 sm:$0xff]  }
 0x22c   : > { %3218 = vmatpush2.bf16.msra.mxu0 %v4370_v22  ;;  %v4442_v22 = vld [vmem:[%s5815_s5 + $0x2dc] ss:$20 sps:$4 sm:$0xff]  }
 0x22d   : > { %3219 = vmatprep.subr.bf16.mxu0 %v4378_v23  ;;  %v4443_v23 = vld [vmem:[%s5815_s5 + $0x1a0] ss:$20 sps:$4 sm:$0xff]  }
 0x230   : > { %3220 = vmatpush2.bf16.msra.mxu0 %v4376_v24  ;;  %v4440_v24 = vld [vmem:[%s5815_s5 + $0x2d8] ss:$20 sps:$4 sm:$0xff]  }
 0x231   : > { %3221 = vmatprep.subr.bf16.mxu0 %v4384_v25  ;;  %v4444_v25 = vld [vmem:[%s5815_s5 + $0x60] ss:$20 sps:$4 sm:$0xff]  }
 0x234   : > { %3222 = vmatpush2.bf16.msra.mxu0 %v4382_v4  ;;  %v4447_v4 = vld [vmem:[%s5815_s5 + $0x2b4] ss:$20 sps:$4 sm:$0xff]  }
 0x235   : > { %3223 = vmatprep.subr.bf16.mxu0 %v4390_v26  ;;  %v4448_v26 = vld [vmem:[%s5815_s5 + $0x178] ss:$20 sps:$4 sm:$0xff]  }
 0x238   : > { %3224 = vmatpush2.bf16.msra.mxu0 %v4388_v28  ;;  %v4449_v28 = vld [vmem:[%s5815_s5 + $0x38] ss:$20 sps:$4 sm:$0xff]  }
 0x239   : > { %3225 = vmatprep.subr.bf16.mxu0 %v4396_v29  ;;  %v4452_v29 = vld [vmem:[%s5815_s5 + $0x28c] ss:$20 sps:$4 sm:$0xff]  }
 0x23c   : > { %3226 = vmatpush2.bf16.msra.mxu0 %v4394_v31  ;;  %v4450_v31 = vld [vmem:[%s5815_s5 + $0x288] ss:$20 sps:$4 sm:$0xff]  }
 0x23d   : > { %v2043_v38 = vpop.f32.mrf.mxu1  ;;  %3227 = vmatprep.subr.bf16.mxu0 %v4402_v32  ;;  %v4454_v32 = vld [vmem:[%s5815_s5 + $0x10] ss:$20 sps:$4 sm:$0xff]  }
 0x23e   : > { %v2044_v54 = vadd.f32 %v2043_v38, %v2001_v48  ;;  %v4463_v38 = vld [vmem:[%s5815_s5 + $0x494] ss:$20 sps:$4 sm:$0xff]  }
 0x23f   : > { %v2045_v43 = vpop.f32.mrf.mxu1  ;;  %v4475_v48 = vld [vmem:[%s5815_s5 + $0x3f4] ss:$20 sps:$4 sm:$0xff]  }
 0x240   : > { %3228 = vmatpush2.bf16.msra.mxu0 %v4400_v36  ;;  %v2046_v52 = vadd.f32 %v2045_v43, %v2003_v45  ;;  %v2054_v61 = vmax.f32 %v2044_v54, 0.0  ;;  %v4460_v36 = vld [vmem:[%s5815_s5 + $0x4bc] ss:$20 sps:$4 sm:$0xff]   ;;  %v4469_v43 = vld [vmem:[%s5815_s5 + $0x444] ss:$20 sps:$4 sm:$0xff]  }
 0x241   : > { %v2047_v50 = vpop.f32.mrf.mxu1  ;;  %3229 = vmatprep.subr.bf16.mxu0 %v4408_v39  ;;  %v4461_v39 = vld [vmem:[%s5815_s5 + $0x490] ss:$20 sps:$4 sm:$0xff]   ;;  %v4467_v45 = vld [vmem:[%s5815_s5 + $0x440] ss:$20 sps:$4 sm:$0xff]  }
 0x242   : > { %v2048_v53 = vadd.f32 %v2047_v50, %v2005_v46  ;;  %v2055_v59 = vmax.f32 %v2046_v52, 0.0  ;;  %v4472_v46 = vld [vmem:[%s5815_s5 + $0x41c] ss:$20 sps:$4 sm:$0xff]   ;;  %v4481_v54 = vld [vmem:[%s5815_s5 + $0x4c0] ss:$20 sps:$4 sm:$0xff]  }
 0x243   : > { %v2049_v55 = vpop.f32.mrf.mxu1  ;;  %v4473_v50 = vld [vmem:[%s5815_s5 + $0x3f0] ss:$20 sps:$4 sm:$0xff]   ;;  %v4479_v52 = vld [vmem:[%s5815_s5 + $0x4e8] ss:$20 sps:$4 sm:$0xff]  }
 0x244   : > { %v2050_v56 = vadd.f32 %v2049_v55, %v2007_v51  ;;  %3230 = vmatpush2.bf16.msra.mxu0 %v4406_v47  ;;  %v2058_v49 = vmax.f32 %v2048_v53, 0.0  ;;  %v4470_v47 = vld [vmem:[%s5815_s5 + $0x418] ss:$20 sps:$4 sm:$0xff]   ;;  %v4476_v51 = vld [vmem:[%s5815_s5 + $0x3c8] ss:$20 sps:$4 sm:$0xff]  }
 0x245   : > { %3231 = vmatprep.subr.bf16.mxu0 %v4414_v44  ;;  %v4478_v44 = vld [vmem:[%s5815_s5 + $0x3cc] ss:$20 sps:$4 sm:$0xff]   ;;  %v4480_v53 = vld [vmem:[%s5815_s5 + $0x3a8] ss:$20 sps:$4 sm:$0xff]  }
 0x246   : > { %v2059_v60 = vmax.f32 %v2050_v56, 0.0  ;;  %v5593_v0 = vpack.c.bf16 %v2058_v49, %v2054_v61  ;;  %v4482_v55 = vld [vmem:[%s5815_s5 + $0x380] ss:$20 sps:$4 sm:$0xff]   ;;  %v4483_v56 = vld [vmem:[%s5815_s5 + $0x498] ss:$20 sps:$4 sm:$0xff]  }
 0x247   : > { %v4485_v49 = vld [vmem:[%s5815_s5 + $0x470] ss:$20 sps:$4 sm:$0xff]   ;;  %v4489_v61 = vld [vmem:[%s5815_s5 + $0x420] ss:$20 sps:$4 sm:$0xff]  }
 0x248   : > { %v5588_v62 = vpack.c.bf16 %v2059_v60, %v2055_v59  ;;  %3232 = vmatpush2.bf16.msra.mxu0 %v4412_v57  ;;  %v4484_v57 = vld [vmem:[%s5815_s5 + $0x358] ss:$20 sps:$4 sm:$0xff]   ;;  %v4487_v59 = vld [vmem:[%s5815_s5 + $0x448] ss:$20 sps:$4 sm:$0xff]  }
 0x249   : > { %3876 = vmatprep.subr.bf16.mxu0 %v4418_v58  ;;  %v4486_v58 = vld [vmem:[%s5815_s5 + $0x330] ss:$20 sps:$4 sm:$0xff]   ;;  %v4488_v60 = vld [vmem:[%s5815_s5 + $0x308] ss:$20 sps:$4 sm:$0xff]  }
 0x24a   : > { %3190 = vmatprep.mubr.bf16.mxu1 %v5588_v62 }
 0x24b   : > { %3191 = vmatmul.mubr.bf16.vlgmr.msra.gmra.mxu1 %v5593_v0  ;;  %3234 = vmatmul.mubr.bf16.vlgmr.msra.gmra.mxu0 %v5486_v5 }
 0x24c   : > { %3245 = vmatpush1.bf16.msra.mxu1 %v4415_v63  ;;  %3276 = vmatprep.mubr.bf16.mxu1 %v5588_v62  ;;  %v4491_v63 = vld [vmem:[%s5815_s5 + $0x3f8] ss:$20 sps:$4 sm:$0xff]  }
 0x24d   : > { %3877 = vmatpush3.bf16.msra.mxu0 %v4419_v3  ;;  %3319 = vmatprep.mubr.bf16.mxu0 %v5481_v1  ;;  %v4429_v1 = vld [vmem:[%s5815_s5 + $0xd8] ss:$20 sps:$4 sm:$0xff]  }
 0x24e   : > { %3246 = vmatprep.subr.bf16.mxu1 %v4422_v6  ;;  %3878 = vmatprep.subr.bf16.mxu0 %v4423_v7  ;;  %v4492_v3 = vld [vmem:[%s5815_s5 + $0x2b8] ss:$20 sps:$4 sm:$0xff]   ;;  %v4493_v6 = vld [vmem:[%s5815_s5 + $0x3d0] ss:$20 sps:$4 sm:$0xff]  }
 0x24f   : > { %v4494_v7 = vld [vmem:[%s5815_s5 + $0x290] ss:$20 sps:$4 sm:$0xff]  }
 0x250   : > { %3247 = vmatpush1.bf16.msra.mxu1 %v4420_v8 }
 0x251   : > { %3879 = vmatpush3.bf16.msra.mxu0 %v4424_v9  ;;  %3248 = vmatprep.subr.bf16.mxu1 %v4427_v10  ;;  %v2256_v9 = vld [vmem:[%s5816_s6] sm:$0x1f] }
 0x252   : > { %3880 = vmatprep.subr.bf16.mxu0 %v4428_v11  ;;  %v2261_v11 = vrot.slane %v2256_v9, %v5065_v35 }
 0x254   : > { %3249 = vmatpush1.bf16.msra.mxu1 %v4425_v14  ;;  %v2265_v14 = vrot.slane %v2256_v9, %v5062_v41 }
 0x255   : > { %3881 = vmatpush3.bf16.msra.mxu0 %v4429_v1  ;;  %3250 = vmatprep.subr.bf16.mxu1 %v4432_v15 }
 0x256   : > { %3882 = vmatprep.subr.bf16.mxu0 %v4433_v16 }
 0x258   : > { %3251 = vmatpush1.bf16.msra.mxu1 %v4430_v17 }
 0x259   : > { %3883 = vmatpush3.bf16.msra.mxu0 %v4434_v18  ;;  %3252 = vmatprep.subr.bf16.mxu1 %v4437_v2 }
 0x25a   : > { %3884 = vmatprep.subr.bf16.mxu0 %v4438_v19 }
 0x25c   : > { %3253 = vmatpush1.bf16.msra.mxu1 %v4435_v20 }
 0x25d   : > { %3885 = vmatpush3.bf16.msra.mxu0 %v4439_v21  ;;  %3254 = vmatprep.subr.bf16.mxu1 %v4442_v22 }
 0x25e   : > { %3886 = vmatprep.subr.bf16.mxu0 %v4443_v23 }
 0x260   : > { %3255 = vmatpush1.bf16.msra.mxu1 %v4440_v24 }
 0x261   : > { %3887 = vmatpush3.bf16.msra.mxu0 %v4444_v25  ;;  %3256 = vmatprep.subr.bf16.mxu1 %v4447_v4 }
 0x262   : > { %3888 = vmatprep.subr.bf16.mxu0 %v4448_v26 }
 0x264   : > { %3257 = vmatpush1.bf16.msra.mxu1 %v4445_v27  ;;  %v2269_v27 = vrot.slane %v2256_v9, %v5103_v13 }
 0x265   : > { %3889 = vmatpush3.bf16.msra.mxu0 %v4449_v28  ;;  %3258 = vmatprep.subr.bf16.mxu1 %v4452_v29  ;;  %v2273_v28 = vrot.slane %v2256_v9, %v5100_v12 }
 0x266   : > { %3890 = vmatprep.subr.bf16.mxu0 %v4453_v30 }
 0x268   : > { %3259 = vmatpush1.bf16.msra.mxu1 %v4450_v31 }
 0x269   : > { %3891 = vmatpush3.bf16.msra.mxu0 %v4454_v32  ;;  %3260 = vmatprep.subr.bf16.mxu1 %v4457_v33 }
 0x26c   : > { %3261 = vmatpush2.bf16.msra.mxu1 %v4455_v34  ;;  %3320 = vmatmul.mubr.bf16.vlgmr.msra.gmra.mxu0 %v5486_v5  ;;  %v4464_v5 = vld [vmem:[%s5815_s5 + $0x468] ss:$20 sps:$4 sm:$0xff]  }
 0x26d   : > { %3262 = vmatprep.subr.bf16.mxu1 %v4460_v36 }
 0x270   : > { %3263 = vmatpush2.bf16.msra.mxu1 %v4458_v37 }
 0x271   : > { %3264 = vmatprep.subr.bf16.mxu1 %v4463_v38 }
 0x274   : > { %3265 = vmatpush2.bf16.msra.mxu1 %v4461_v39 }
 0x275   : > { %3266 = vmatprep.subr.bf16.mxu1 %v4466_v42 }
 0x278   : > { %3267 = vmatpush2.bf16.msra.mxu1 %v4464_v5 }
 0x279   : > { %3268 = vmatprep.subr.bf16.mxu1 %v4469_v43 }
 0x27c   : > { %3269 = vmatpush2.bf16.msra.mxu1 %v4467_v45 }
 0x27d   : > { %3270 = vmatprep.subr.bf16.mxu1 %v4472_v46 }
 0x280   : > { %3271 = vmatpush2.bf16.msra.mxu1 %v4470_v47 }
 0x281   : > { %3272 = vmatprep.subr.bf16.mxu1 %v4475_v48  ;;  %v2276_v48 = vsub.s32 4, %v5059_v40 }
 0x284   : > { %3273 = vmatpush2.bf16.msra.mxu1 %v4473_v50 }
 0x285   : > { %3274 = vmatprep.subr.bf16.mxu1 %v4478_v44  ;;  %v2277_v44 = vrot.slane %v2256_v9, %v2276_v48 }
 0x288   : > { %3275 = vmatpush2.bf16.msra.mxu1 %v4476_v51 }
 0x289   : > { %3898 = vmatprep.subr.bf16.mxu1 %v4479_v52 }
 0x28b   : > { %3277 = vmatmul.mubr.bf16.vlgmr.msra.gmra.mxu1 %v5593_v0 }
 0x28c   : > { %3899 = vmatpush3.bf16.msra.mxu1 %v4480_v53  ;;  %3360 = vmatprep.mubr.bf16.mxu1 %v5588_v62  ;;  %v4490_v62 = vld [vmem:[%s5815_s5 + $0x2e0] ss:$20 sps:$4 sm:$0xff]  }
 0x28d   : > { %3900 = vmatprep.subr.bf16.mxu1 %v4481_v54 }
 0x290   : > { %3901 = vmatpush3.bf16.msra.mxu1 %v4482_v55 }
 0x291   : > { %3902 = vmatprep.subr.bf16.mxu1 %v4483_v56 }
 0x294   : > { %3903 = vmatpush3.bf16.msra.mxu1 %v4484_v57 }
 0x295   : > { %3904 = vmatprep.subr.bf16.mxu1 %v4485_v49 }
 0x298   : > { %3905 = vmatpush3.bf16.msra.mxu1 %v4486_v58 }
 0x299   : > { %3906 = vmatprep.subr.bf16.mxu1 %v4487_v59 }
 0x29c   : > { %3907 = vmatpush3.bf16.msra.mxu1 %v4488_v60 }
 0x29d   : > { %3908 = vmatprep.subr.bf16.mxu1 %v4489_v61 }
 0x2a0   : > { %3909 = vmatpush3.bf16.msra.mxu1 %v4490_v62 }
 0x2a1   : > { %3910 = vmatprep.subr.bf16.mxu1 %v4491_v63 }
 0x2a4   : > { %3911 = vmatpush3.bf16.msra.mxu1 %v4492_v3 }
 0x2a5   : > { %3912 = vmatprep.subr.bf16.mxu1 %v4493_v6 }
 0x2a8   : > { %3913 = vmatpush3.bf16.msra.mxu1 %v4494_v7 }
 0x2ab   : > { %3361 = vmatmul.mubr.bf16.vlgmr.msra.gmra.mxu1 %v5593_v0 }
 0x2cb   : > { %v3149_v8 = vpop.f32.mrf.mxu0 }
 0x2cc   : > { %v3150_v16 = vadd.f32 %v3149_v8, %v2261_v11 }
 0x2cd   : > { %v3151_v10 = vpop.f32.mrf.mxu0 }
 0x2ce   : > { %v3152_v17 = vadd.f32 %v3151_v10, %v2265_v14 }
 0x2cf   : > { %v3153_v1 = vpop.f32.mrf.mxu0 }
 0x2d0   : > { %v3154_v35 = vadd.f32 %v3153_v1, %v2261_v11 }
 0x2d1   : > { %v3155_v18 = vpop.f32.mrf.mxu0 }
 0x2d2   : > { %v3156_v21 = vadd.f32 %v3155_v18, %v2265_v14 }
 0x30b   : > { %v3192_v15 = vpop.f32.mrf.mxu1  ;;  %v3235_v4 = vpop.f32.mrf.mxu0 }
 0x30c   : > { %v3193_v19 = vadd.f32 %v3192_v15, %v3150_v16  ;;  %v3236_v31 = vadd.f32 %v3235_v4, %v2269_v27 }
 0x30d   : > { %v3194_v2 = vpop.f32.mrf.mxu1  ;;  %v3237_v26 = vpop.f32.mrf.mxu0 }
 0x30e   : > { %v3195_v20 = vadd.f32 %v3194_v2, %v3152_v17  ;;  %v3238_v32 = vadd.f32 %v3237_v26, %v2273_v28 }
 0x30f   : > { %v3196_v0 = vpop.f32.mrf.mxu1  ;;  %v3239_v29 = vpop.f32.mrf.mxu0 }
 0x310   : > { %v3870_v41 = vpack.c.bf16 %v3195_v20, %v3193_v19  ;;  %v3197_v23 = vadd.f32 %v3196_v0, %v3154_v35  ;;  %v3240_v39 = vadd.f32 %v3239_v29, %v2269_v27 }
 0x311   : > { %v3198_v22 = vpop.f32.mrf.mxu1  ;;  %v3241_v33 = vpop.f32.mrf.mxu0 }
 0x312   : > { %3401 = vst [vmem:[%s5796_s10] sm:$0xff] %v3870_v41  ;;  %v3199_v24 = vadd.f32 %v3198_v22, %v3156_v21  ;;  %v3242_v42 = vadd.f32 %v3241_v33, %v2273_v28 }
 0x314   : > { %v3873_v25 = vpack.c.bf16 %v3199_v24, %v3197_v23 }
 0x316   : > { %3405 = vst [vmem:[%s5796_s10 + $0x14] sm:$0xff] %v3873_v25 }
 0x32c   : > { %v3892_v12 = vpop.f32.mrf.mxu0 }
 0x32e   : > { %v3893_v47 = vpop.f32.mrf.mxu0 }
 0x32f   : > { %v3894_v51 = vadd.f32 %v3893_v47, %v3892_v12 }
 0x330   : > { %v3895_v50 = vpop.f32.mrf.mxu0 }
 0x331   : > { %v3322_v55 = vadd.f32 %v3894_v51, %v2277_v44 }
 0x332   : > { %v3896_v52 = vpop.f32.mrf.mxu0 }
 0x333   : > { %v3897_v56 = vadd.f32 %v3896_v52, %v3895_v50 }
 0x335   : > { %v3325_v60 = vadd.f32 %v3897_v56, %v2277_v44 }
 0x34b   : > { %v3278_v30 = vpop.f32.mrf.mxu1 }
 0x34c   : > { %v3279_v36 = vadd.f32 %v3278_v30, %v3236_v31 }
 0x34d   : > { %v3280_v34 = vpop.f32.mrf.mxu1 }
 0x34e   : > { %v3281_v37 = vadd.f32 %v3280_v34, %v3238_v32 }
 0x34f   : > { %v3282_v38 = vpop.f32.mrf.mxu1 }
 0x350   : > { %v3871_v5 = vpack.c.bf16 %v3281_v37, %v3279_v36  ;;  %v3283_v45 = vadd.f32 %v3282_v38, %v3240_v39 }
 0x351   : > { %v3284_v43 = vpop.f32.mrf.mxu1 }
 0x352   : > { %3402 = vst [vmem:[%s5796_s10 + $0x8] sm:$0xff] %v3871_v5  ;;  %v3285_v46 = vadd.f32 %v3284_v43, %v3242_v42 }
 0x354   : > { %v3874_v13 = vpack.c.bf16 %v3285_v46, %v3283_v45 }
 0x356   : > { %3406 = vst [vmem:[%s5796_s10 + $0x1c] sm:$0xff] %v3874_v13 }
 0x36b   : > { %v3914_v53 = vpop.f32.mrf.mxu1 }
 0x36d   : > { %v3915_v54 = vpop.f32.mrf.mxu1 }
 0x36e   : > { %v3916_v57 = vadd.f32 %v3915_v54, %v3914_v53 }
 0x36f   : > { %v3917_v49 = vpop.f32.mrf.mxu1 }
 0x370   : > { %v3363_v58 = vadd.f32 %v3916_v57, %v3322_v55 }
 0x371   : > { %v3918_v59 = vpop.f32.mrf.mxu1 }
 0x372   : > { %v3872_v61 = vpack.c.bf16 %v3363_v58, %v3363_v58  ;;  %v3919_v62 = vadd.f32 %v3918_v59, %v3917_v49 }
 0x374   : > { %3404 = vst.msk [vmem:[%s5796_s10 + $0x10] sm:$0xf] %vm3403_vm0, %v3872_v61  ;;  %v3366_v40 = vadd.f32 %v3919_v62, %v3325_v60 }
 0x376   : > { %v3875_v63 = vpack.c.bf16 %v3366_v40, %v3366_v40 }
 0x378   : > { %3407 = vst.msk [vmem:[%s5796_s10 + $0x24] sm:$0xf] %vm3403_vm0, %v3875_v63 }
 0x379 PF: > { %s17_s24 = sadd.s32 1, %s4501_s24  }
 0x37a   : > { %p14_p4 = scmp.ge.s32.totalorder %s17_s24, 4  }
 0x37c   :  { %16 = sbr.rel (!%p14_p4) target bundleno = 1 (0x1), region = 78 }

</bundles_post_ra>
